<compile_context>
chip_gen: v6e
topology: v6e:2x2x1
jax: 0.10.0
libtpu: 0.0.40
codegen_flags: <defaults>
</compile_context>

<pallas_src>
import functools

import jax
import jax.numpy as jnp
import numpy as np
from jax import lax
from jax.experimental import pallas as pl
from jax.experimental.pallas import tpu as pltpu


# Fixed layer widths of the module.
_C1, _C2, _C3 = 32, 64, 64
_K1, _S1 = 8, 4
_K2, _S2 = 4, 2
_K3, _S3 = 2, 1
_H_HID = 512            # FC hidden width per head
_ADV_PAD = 128          # adv block padded to one full lane tile
_VAL_COL = 128          # column of the packed head-2 output holding V(s)
_HEAD2_N = 256          # packed head-2 output width


def _vmem():
    return pl.BlockSpec(memory_space=pltpu.MemorySpace.VMEM)


# ----------------------------------------------------------------------------
# Fused kernel: conv1 -> conv2 -> conv3 -> merged heads -> dueling combine
# ----------------------------------------------------------------------------
def _fused_kernel(B, NA, NP3,
                  p1_ref, w1_ref, b1_ref, w2_ref, b2_ref, w3_ref, b3_ref,
                  wh1_ref, bh1_ref, wh2_ref, bh2_ref, o_ref):
    f32 = jnp.float32

    # conv1: every (duplicated) im2col patch in one MXU dot.
    a1 = jnp.dot(p1_ref[...], w1_ref[...], preferred_element_type=f32)
    a1 = jnp.maximum(a1 + b1_ref[...], 0.0)            # (16*4*NP3*B, 32)

    # conv2 as a sum over its 16 taps; each tap's rows are a contiguous block.
    rows2 = (_K3 * _K3) * NP3 * B
    acc2 = jnp.zeros((rows2, _C2), f32)
    for t2 in range(_K2 * _K2):
        blk = a1[t2 * rows2:(t2 + 1) * rows2, :]
        wt = w2_ref[t2 * _C1:(t2 + 1) * _C1, :]
        acc2 = acc2 + jnp.dot(blk, wt, preferred_element_type=f32)
    a2 = jnp.maximum(acc2 + b2_ref[...], 0.0)           # (4*NP3*B, 64)  rows (t3,p3,b)

    # conv3 as a sum over its 4 taps.
    rows3 = NP3 * B
    acc3 = jnp.zeros((rows3, _C3), f32)
    for t3 in range(_K3 * _K3):
        blk = a2[t3 * rows3:(t3 + 1) * rows3, :]
        wt = w3_ref[t3 * _C2:(t3 + 1) * _C2, :]
        acc3 = acc3 + jnp.dot(blk, wt, preferred_element_type=f32)
    a3 = jnp.maximum(acc3 + b3_ref[...], 0.0)           # (NP3*B, 64)  rows (p3, b)

    # Merged first FC layer of both heads: conv_out @ [wa1 | wv1],
    # accumulated per conv3 output position (avoids any in-kernel flatten).
    acc_h = jnp.zeros((B, 2 * _H_HID), f32)
    for p3 in range(NP3):
        blk = a3[p3 * B:(p3 + 1) * B, :]                # (B, 64)
        wt = wh1_ref[p3 * _C3:(p3 + 1) * _C3, :]        # (64, 1024)
        acc_h = acc_h + jnp.dot(blk, wt, preferred_element_type=f32)
    h1 = jnp.maximum(acc_h + bh1_ref[...], 0.0)         # (B, 1024)

    # Packed second FC layer (adv -> cols [0, NA), val -> col 128) + dueling.
    out2 = jnp.dot(h1, wh2_ref[...], preferred_element_type=f32) + bh2_ref[...]
    adv = out2[:, 0:_ADV_PAD]                           # zeros in padded columns
    val = out2[:, _VAL_COL:_VAL_COL + 1]                # (B, 1)
    mean = jnp.sum(adv) * (1.0 / (B * NA))              # adv.mean() over all elems
    o_ref[...] = val + adv - mean                       # lane-dense (B, 128) write


# ----------------------------------------------------------------------------
# Wrapper: shape bookkeeping, im2col of the raw input, weight packing
# ----------------------------------------------------------------------------
def _spatial_dims(H, W):
    Ho1 = (H - _K1) // _S1 + 1
    Wo1 = (W - _K1) // _S1 + 1
    Ho2 = (Ho1 - _K2) // _S2 + 1
    Wo2 = (Wo1 - _K2) // _S2 + 1
    Ho3 = (Ho2 - _K3) // _S3 + 1
    Wo3 = (Wo2 - _K3) // _S3 + 1
    assert Ho1 >= _K2 and Wo1 >= _K2 and Ho2 >= _K3 and Wo2 >= _K3, "input too small"
    return Ho1, Wo1, Ho2, Wo2, Ho3, Wo3


def _p1_index(Ho1, Wo1, Ho3, Wo3):
    """conv1 output position needed by (conv2 tap, conv3 tap, conv3 position)."""
    idx = []
    for i2 in range(_K2):
        for j2 in range(_K2):
            for i3 in range(_K3):
                for j3 in range(_K3):
                    for ho3 in range(Ho3):
                        for wo3 in range(Wo3):
                            ho2 = ho3 * _S3 + i3
                            wo2 = wo3 * _S3 + j3
                            h1 = ho2 * _S2 + i2
                            w1 = wo2 * _S2 + j2
                            idx.append(h1 * Wo1 + w1)
    return np.asarray(idx, dtype=np.int32)


def dueling_forward(params, x_nchw):
    fx = x_nchw.astype(jnp.float32)
    B, C, H, W = fx.shape
    Ho1, Wo1, Ho2, Wo2, Ho3, Wo3 = _spatial_dims(H, W)
    NP3 = Ho3 * Wo3
    NA = params["wa2"].shape[1]
    assert NA <= _ADV_PAD
    assert params["wa1"].shape[0] == _C3 * NP3

    # conv1 im2col on the raw input (wrapper-side XLA glue; a single small
    # gather feeding the kernel).  Rows are replicated and ordered
    # (conv2-tap, conv3-tap, conv3-position, batch) so every tap the kernel
    # consumes is a contiguous row block.
    cols = []
    for i in range(_K1):
        for j in range(_K1):
            cols.append(fx[:, :, i:i + _S1 * Ho1:_S1, j:j + _S1 * Wo1:_S1])
    pat = jnp.stack(cols, axis=2)                       # (B, C, 64, Ho1, Wo1)
    pat = pat.transpose(0, 3, 4, 1, 2)                  # (B, Ho1, Wo1, C, 64)
    pat = pat.reshape(B, Ho1 * Wo1, C * _K1 * _K1)      # (C, kh, kw) patch order
    p1_idx = _p1_index(Ho1, Wo1, Ho3, Wo3)              # (16*4*NP3,)
    p1 = pat[:, p1_idx, :]                              # (B, R, C*64)
    p1 = p1.transpose(1, 0, 2).reshape(int(p1_idx.size) * B, C * _K1 * _K1)

    # Weight packing (tiny; folded under the same jit).
    w1m = params["w1"].reshape(_C1, C * _K1 * _K1).T                    # (C*64, 32)
    w2t = params["w2"].transpose(2, 3, 1, 0).reshape(_K2 * _K2 * _C1, _C2)
    w3t = params["w3"].transpose(2, 3, 1, 0).reshape(_K3 * _K3 * _C2, _C3)

    # Merged head-1 weights; rows permuted from PyTorch (c, h, w) flatten order
    # to the kernel's (position, channel) order.
    perm = np.asarray([c * NP3 + p3 for p3 in range(NP3) for c in range(_C3)],
                      dtype=np.int32)
    wh1 = jnp.concatenate([params["wa1"], params["wv1"]], axis=1)[perm, :]
    bh1 = jnp.concatenate([params["ba1"], params["bv1"]], axis=0).reshape(1, 2 * _H_HID)

    # Packed lane-dense head-2 weights: adv -> cols [0, NA), val -> col 128,
    # zeros elsewhere (so the in-kernel adv sum over 128 cols is exact).
    wh2 = jnp.zeros((2 * _H_HID, _HEAD2_N), jnp.float32)
    wh2 = wh2.at[:_H_HID, :NA].set(params["wa2"])
    wh2 = wh2.at[_H_HID:, _VAL_COL].set(params["wv2"][:, 0])
    bh2 = jnp.zeros((_HEAD2_N,), jnp.float32)
    bh2 = bh2.at[:NA].set(params["ba2"]).at[_VAL_COL].set(params["bv2"][0])
    bh2 = bh2.reshape(1, _HEAD2_N)

    out_pad = pl.pallas_call(
        functools.partial(_fused_kernel, B, NA, NP3),
        out_shape=jax.ShapeDtypeStruct((B, _ADV_PAD), jnp.float32),
        in_specs=[_vmem()] * 11,
        out_specs=_vmem(),
    )(p1, w1m, params["b1"].reshape(1, _C1),
      w2t, params["b2"].reshape(1, _C2),
      w3t, params["b3"].reshape(1, _C3),
      wh1, bh1, wh2, bh2)

    return out_pad[:, :NA]


# ----------------------------------------------------------------------------
# Parameters (deterministic, PyTorch-default-like U(-1/sqrt(fan_in), +...))
# ----------------------------------------------------------------------------
def _u(key, shape, fan_in):
    bound = 1.0 / np.sqrt(fan_in)
    return jax.random.uniform(key, shape, jnp.float32, -bound, bound)


def init_params(key, in_ch, n_actions, conv_out_size):
    ks = jax.random.split(key, 14)
    p = {}
    p["w1"] = _u(ks[0], (_C1, in_ch, _K1, _K1), in_ch * _K1 * _K1)
    p["b1"] = _u(ks[1], (_C1,), in_ch * _K1 * _K1)
    p["w2"] = _u(ks[2], (_C2, _C1, _K2, _K2), _C1 * _K2 * _K2)
    p["b2"] = _u(ks[3], (_C2,), _C1 * _K2 * _K2)
    p["w3"] = _u(ks[4], (_C3, _C2, _K3, _K3), _C2 * _K3 * _K3)
    p["b3"] = _u(ks[5], (_C3,), _C2 * _K3 * _K3)
    p["wa1"] = _u(ks[6], (conv_out_size, _H_HID), conv_out_size)
    p["ba1"] = _u(ks[7], (_H_HID,), conv_out_size)
    p["wa2"] = _u(ks[8], (_H_HID, n_actions), _H_HID)
    p["ba2"] = _u(ks[9], (n_actions,), _H_HID)
    p["wv1"] = _u(ks[10], (conv_out_size, _H_HID), conv_out_size)
    p["bv1"] = _u(ks[11], (_H_HID,), conv_out_size)
    p["wv2"] = _u(ks[12], (_H_HID, 1), _H_HID)
    p["bv2"] = _u(ks[13], (1,), _H_HID)
    return p


# ----------------------------------------------------------------------------
# Pure-JAX reference (correctness check only)
# ----------------------------------------------------------------------------
def _ref_conv(x, w, b, stride):
    y = lax.conv_general_dilated(
        x, w, window_strides=(stride, stride), padding="VALID",
        dimension_numbers=("NCHW", "OIHW", "NCHW"))
    return jax.nn.relu(y + b[None, :, None, None])


def dueling_forward_ref(params, x_nchw):
    fx = x_nchw.astype(jnp.float32)
    h = _ref_conv(fx, params["w1"], params["b1"], _S1)
    h = _ref_conv(h, params["w2"], params["b2"], _S2)
    h = _ref_conv(h, params["w3"], params["b3"], _S3)
    conv_out = h.reshape(fx.shape[0], -1)    # NCHW flatten == PyTorch .view(B, -1)
    adv = jax.nn.relu(conv_out @ params["wa1"] + params["ba1"]) @ params["wa2"] + params["ba2"]
    val = jax.nn.relu(conv_out @ params["wv1"] + params["bv1"]) @ params["wv2"] + params["bv2"]
    return val + adv - adv.mean()


# ----------------------------------------------------------------------------
if __name__ == "__main__":
    B, C, H, W = 2, 4, 36, 36
    n_actions = 6
    Ho1, Wo1, Ho2, Wo2, Ho3, Wo3 = _spatial_dims(H, W)   # 8x8 -> 3x3 -> 2x2
    conv_out_size = _C3 * Ho3 * Wo3                      # 256

    key = jax.random.PRNGKey(0)
    kx, kp = jax.random.split(key)
    x = jax.random.normal(kx, (B, C, H, W), dtype=jnp.float32)
    params = init_params(kp, C, n_actions, conv_out_size)

    fwd = jax.jit(dueling_forward)
    out = jax.block_until_ready(fwd(params, x))
    assert out.shape == (B, n_actions), out.shape

    ref = jax.block_until_ready(dueling_forward_ref(params, x))
    np.testing.assert_allclose(np.asarray(out), np.asarray(ref),
                               rtol=2e-4, atol=2e-4)

    print("KERNEL_OK")
</pallas_src>

<mosaic_0001>
module attributes {stable_mosaic.version = 11 : i64} {
  func.func @_fused_kernel(%arg0: memref<512x256xf32, #tpu.memory_space<vmem>>, %arg1: memref<256x32xf32, #tpu.memory_space<vmem>>, %arg2: memref<1x32xf32, #tpu.memory_space<vmem>>, %arg3: memref<512x64xf32, #tpu.memory_space<vmem>>, %arg4: memref<1x64xf32, #tpu.memory_space<vmem>>, %arg5: memref<256x64xf32, #tpu.memory_space<vmem>>, %arg6: memref<1x64xf32, #tpu.memory_space<vmem>>, %arg7: memref<256x1024xf32, #tpu.memory_space<vmem>>, %arg8: memref<1x1024xf32, #tpu.memory_space<vmem>>, %arg9: memref<1024x256xf32, #tpu.memory_space<vmem>>, %arg10: memref<1x256xf32, #tpu.memory_space<vmem>>, %arg11: memref<2x128xf32, #tpu.memory_space<vmem>>) attributes {dimension_semantics = [], scalar_prefetch = 0 : i64, scratch_operands = 0 : i64, tpu.core_type = #tpu.core_type<tc>} {
    %c0 = arith.constant 0 : index
    %c0_0 = arith.constant 0 : index
    %0 = vector.load %arg0[%c0, %c0_0] : memref<512x256xf32, #tpu.memory_space<vmem>>, vector<512x256xf32>
    %c0_1 = arith.constant 0 : index
    %c0_2 = arith.constant 0 : index
    %1 = vector.load %arg1[%c0_1, %c0_2] : memref<256x32xf32, #tpu.memory_space<vmem>>, vector<256x32xf32>
    %cst = arith.constant dense<0.000000e+00> : vector<512x32xf32>
    %2 = tpu.matmul %0, %1, %cst {dimension_numbers = #tpu.dot_dimension_numbers<[1], [0], [0], [1], [0, 0, 1, 1], [], []>} : vector<512x256xf32>, vector<256x32xf32>, vector<512x32xf32> -> vector<512x32xf32>
    %c0_3 = arith.constant 0 : index
    %c0_4 = arith.constant 0 : index
    %3 = vector.load %arg2[%c0_3, %c0_4] : memref<1x32xf32, #tpu.memory_space<vmem>>, vector<1x32xf32>
    %4 = vector.broadcast %3 : vector<1x32xf32> to vector<512x32xf32>
    %5 = arith.addf %2, %4 : vector<512x32xf32>
    %cst_5 = arith.constant 0.000000e+00 : f32
    %6 = vector.broadcast %cst_5 : f32 to vector<512x32xf32>
    %7 = arith.maximumf %5, %6 : vector<512x32xf32>
    %cst_6 = arith.constant 0.000000e+00 : f32
    %8 = vector.broadcast %cst_6 : f32 to vector<32x64xf32>
    %9 = vector.extract_strided_slice %7 {offsets = [0, 0], sizes = [32, 32], strides = [1, 1]} : vector<512x32xf32> to vector<32x32xf32>
    %c0_7 = arith.constant 0 : index
    %c0_8 = arith.constant 0 : index
    %10 = vector.load %arg3[%c0_7, %c0_8] : memref<512x64xf32, #tpu.memory_space<vmem>>, vector<32x64xf32>
    %cst_9 = arith.constant dense<0.000000e+00> : vector<32x64xf32>
    %11 = tpu.matmul %9, %10, %cst_9 {dimension_numbers = #tpu.dot_dimension_numbers<[1], [0], [0], [1], [0, 0, 1, 1], [], []>} : vector<32x32xf32>, vector<32x64xf32>, vector<32x64xf32> -> vector<32x64xf32>
    %12 = arith.addf %8, %11 : vector<32x64xf32>
    %13 = vector.extract_strided_slice %7 {offsets = [32, 0], sizes = [32, 32], strides = [1, 1]} : vector<512x32xf32> to vector<32x32xf32>
    %c32 = arith.constant 32 : index
    %c0_10 = arith.constant 0 : index
    %14 = vector.load %arg3[%c32, %c0_10] : memref<512x64xf32, #tpu.memory_space<vmem>>, vector<32x64xf32>
    %cst_11 = arith.constant dense<0.000000e+00> : vector<32x64xf32>
    %15 = tpu.matmul %13, %14, %cst_11 {dimension_numbers = #tpu.dot_dimension_numbers<[1], [0], [0], [1], [0, 0, 1, 1], [], []>} : vector<32x32xf32>, vector<32x64xf32>, vector<32x64xf32> -> vector<32x64xf32>
    %16 = arith.addf %12, %15 : vector<32x64xf32>
    %17 = vector.extract_strided_slice %7 {offsets = [64, 0], sizes = [32, 32], strides = [1, 1]} : vector<512x32xf32> to vector<32x32xf32>
    %c64 = arith.constant 64 : index
    %c0_12 = arith.constant 0 : index
    %18 = vector.load %arg3[%c64, %c0_12] : memref<512x64xf32, #tpu.memory_space<vmem>>, vector<32x64xf32>
    %cst_13 = arith.constant dense<0.000000e+00> : vector<32x64xf32>
    %19 = tpu.matmul %17, %18, %cst_13 {dimension_numbers = #tpu.dot_dimension_numbers<[1], [0], [0], [1], [0, 0, 1, 1], [], []>} : vector<32x32xf32>, vector<32x64xf32>, vector<32x64xf32> -> vector<32x64xf32>
    %20 = arith.addf %16, %19 : vector<32x64xf32>
    %21 = vector.extract_strided_slice %7 {offsets = [96, 0], sizes = [32, 32], strides = [1, 1]} : vector<512x32xf32> to vector<32x32xf32>
    %c96 = arith.constant 96 : index
    %c0_14 = arith.constant 0 : index
    %22 = vector.load %arg3[%c96, %c0_14] : memref<512x64xf32, #tpu.memory_space<vmem>>, vector<32x64xf32>
    %cst_15 = arith.constant dense<0.000000e+00> : vector<32x64xf32>
    %23 = tpu.matmul %21, %22, %cst_15 {dimension_numbers = #tpu.dot_dimension_numbers<[1], [0], [0], [1], [0, 0, 1, 1], [], []>} : vector<32x32xf32>, vector<32x64xf32>, vector<32x64xf32> -> vector<32x64xf32>
    %24 = arith.addf %20, %23 : vector<32x64xf32>
    %25 = vector.extract_strided_slice %7 {offsets = [128, 0], sizes = [32, 32], strides = [1, 1]} : vector<512x32xf32> to vector<32x32xf32>
    %c128 = arith.constant 128 : index
    %c0_16 = arith.constant 0 : index
    %26 = vector.load %arg3[%c128, %c0_16] : memref<512x64xf32, #tpu.memory_space<vmem>>, vector<32x64xf32>
    %cst_17 = arith.constant dense<0.000000e+00> : vector<32x64xf32>
    %27 = tpu.matmul %25, %26, %cst_17 {dimension_numbers = #tpu.dot_dimension_numbers<[1], [0], [0], [1], [0, 0, 1, 1], [], []>} : vector<32x32xf32>, vector<32x64xf32>, vector<32x64xf32> -> vector<32x64xf32>
    %28 = arith.addf %24, %27 : vector<32x64xf32>
    %29 = vector.extract_strided_slice %7 {offsets = [160, 0], sizes = [32, 32], strides = [1, 1]} : vector<512x32xf32> to vector<32x32xf32>
    %c160 = arith.constant 160 : index
    %c0_18 = arith.constant 0 : index
    %30 = vector.load %arg3[%c160, %c0_18] : memref<512x64xf32, #tpu.memory_space<vmem>>, vector<32x64xf32>
    %cst_19 = arith.constant dense<0.000000e+00> : vector<32x64xf32>
    %31 = tpu.matmul %29, %30, %cst_19 {dimension_numbers = #tpu.dot_dimension_numbers<[1], [0], [0], [1], [0, 0, 1, 1], [], []>} : vector<32x32xf32>, vector<32x64xf32>, vector<32x64xf32> -> vector<32x64xf32>
    %32 = arith.addf %28, %31 : vector<32x64xf32>
    %33 = vector.extract_strided_slice %7 {offsets = [192, 0], sizes = [32, 32], strides = [1, 1]} : vector<512x32xf32> to vector<32x32xf32>
    %c192 = arith.constant 192 : index
    %c0_20 = arith.constant 0 : index
    %34 = vector.load %arg3[%c192, %c0_20] : memref<512x64xf32, #tpu.memory_space<vmem>>, vector<32x64xf32>
    %cst_21 = arith.constant dense<0.000000e+00> : vector<32x64xf32>
    %35 = tpu.matmul %33, %34, %cst_21 {dimension_numbers = #tpu.dot_dimension_numbers<[1], [0], [0], [1], [0, 0, 1, 1], [], []>} : vector<32x32xf32>, vector<32x64xf32>, vector<32x64xf32> -> vector<32x64xf32>
    %36 = arith.addf %32, %35 : vector<32x64xf32>
    %37 = vector.extract_strided_slice %7 {offsets = [224, 0], sizes = [32, 32], strides = [1, 1]} : vector<512x32xf32> to vector<32x32xf32>
    %c224 = arith.constant 224 : index
    %c0_22 = arith.constant 0 : index
    %38 = vector.load %arg3[%c224, %c0_22] : memref<512x64xf32, #tpu.memory_space<vmem>>, vector<32x64xf32>
    %cst_23 = arith.constant dense<0.000000e+00> : vector<32x64xf32>
    %39 = tpu.matmul %37, %38, %cst_23 {dimension_numbers = #tpu.dot_dimension_numbers<[1], [0], [0], [1], [0, 0, 1, 1], [], []>} : vector<32x32xf32>, vector<32x64xf32>, vector<32x64xf32> -> vector<32x64xf32>
    %40 = arith.addf %36, %39 : vector<32x64xf32>
    %41 = vector.extract_strided_slice %7 {offsets = [256, 0], sizes = [32, 32], strides = [1, 1]} : vector<512x32xf32> to vector<32x32xf32>
    %c256 = arith.constant 256 : index
    %c0_24 = arith.constant 0 : index
    %42 = vector.load %arg3[%c256, %c0_24] : memref<512x64xf32, #tpu.memory_space<vmem>>, vector<32x64xf32>
    %cst_25 = arith.constant dense<0.000000e+00> : vector<32x64xf32>
    %43 = tpu.matmul %41, %42, %cst_25 {dimension_numbers = #tpu.dot_dimension_numbers<[1], [0], [0], [1], [0, 0, 1, 1], [], []>} : vector<32x32xf32>, vector<32x64xf32>, vector<32x64xf32> -> vector<32x64xf32>
    %44 = arith.addf %40, %43 : vector<32x64xf32>
    %45 = vector.extract_strided_slice %7 {offsets = [288, 0], sizes = [32, 32], strides = [1, 1]} : vector<512x32xf32> to vector<32x32xf32>
    %c288 = arith.constant 288 : index
    %c0_26 = arith.constant 0 : index
    %46 = vector.load %arg3[%c288, %c0_26] : memref<512x64xf32, #tpu.memory_space<vmem>>, vector<32x64xf32>
    %cst_27 = arith.constant dense<0.000000e+00> : vector<32x64xf32>
    %47 = tpu.matmul %45, %46, %cst_27 {dimension_numbers = #tpu.dot_dimension_numbers<[1], [0], [0], [1], [0, 0, 1, 1], [], []>} : vector<32x32xf32>, vector<32x64xf32>, vector<32x64xf32> -> vector<32x64xf32>
    %48 = arith.addf %44, %47 : vector<32x64xf32>
    %49 = vector.extract_strided_slice %7 {offsets = [320, 0], sizes = [32, 32], strides = [1, 1]} : vector<512x32xf32> to vector<32x32xf32>
    %c320 = arith.constant 320 : index
    %c0_28 = arith.constant 0 : index
    %50 = vector.load %arg3[%c320, %c0_28] : memref<512x64xf32, #tpu.memory_space<vmem>>, vector<32x64xf32>
    %cst_29 = arith.constant dense<0.000000e+00> : vector<32x64xf32>
    %51 = tpu.matmul %49, %50, %cst_29 {dimension_numbers = #tpu.dot_dimension_numbers<[1], [0], [0], [1], [0, 0, 1, 1], [], []>} : vector<32x32xf32>, vector<32x64xf32>, vector<32x64xf32> -> vector<32x64xf32>
    %52 = arith.addf %48, %51 : vector<32x64xf32>
    %53 = vector.extract_strided_slice %7 {offsets = [352, 0], sizes = [32, 32], strides = [1, 1]} : vector<512x32xf32> to vector<32x32xf32>
    %c352 = arith.constant 352 : index
    %c0_30 = arith.constant 0 : index
    %54 = vector.load %arg3[%c352, %c0_30] : memref<512x64xf32, #tpu.memory_space<vmem>>, vector<32x64xf32>
    %cst_31 = arith.constant dense<0.000000e+00> : vector<32x64xf32>
    %55 = tpu.matmul %53, %54, %cst_31 {dimension_numbers = #tpu.dot_dimension_numbers<[1], [0], [0], [1], [0, 0, 1, 1], [], []>} : vector<32x32xf32>, vector<32x64xf32>, vector<32x64xf32> -> vector<32x64xf32>
    %56 = arith.addf %52, %55 : vector<32x64xf32>
    %57 = vector.extract_strided_slice %7 {offsets = [384, 0], sizes = [32, 32], strides = [1, 1]} : vector<512x32xf32> to vector<32x32xf32>
    %c384 = arith.constant 384 : index
    %c0_32 = arith.constant 0 : index
    %58 = vector.load %arg3[%c384, %c0_32] : memref<512x64xf32, #tpu.memory_space<vmem>>, vector<32x64xf32>
    %cst_33 = arith.constant dense<0.000000e+00> : vector<32x64xf32>
    %59 = tpu.matmul %57, %58, %cst_33 {dimension_numbers = #tpu.dot_dimension_numbers<[1], [0], [0], [1], [0, 0, 1, 1], [], []>} : vector<32x32xf32>, vector<32x64xf32>, vector<32x64xf32> -> vector<32x64xf32>
    %60 = arith.addf %56, %59 : vector<32x64xf32>
    %61 = vector.extract_strided_slice %7 {offsets = [416, 0], sizes = [32, 32], strides = [1, 1]} : vector<512x32xf32> to vector<32x32xf32>
    %c416 = arith.constant 416 : index
    %c0_34 = arith.constant 0 : index
    %62 = vector.load %arg3[%c416, %c0_34] : memref<512x64xf32, #tpu.memory_space<vmem>>, vector<32x64xf32>
    %cst_35 = arith.constant dense<0.000000e+00> : vector<32x64xf32>
    %63 = tpu.matmul %61, %62, %cst_35 {dimension_numbers = #tpu.dot_dimension_numbers<[1], [0], [0], [1], [0, 0, 1, 1], [], []>} : vector<32x32xf32>, vector<32x64xf32>, vector<32x64xf32> -> vector<32x64xf32>
    %64 = arith.addf %60, %63 : vector<32x64xf32>
    %65 = vector.extract_strided_slice %7 {offsets = [448, 0], sizes = [32, 32], strides = [1, 1]} : vector<512x32xf32> to vector<32x32xf32>
    %c448 = arith.constant 448 : index
    %c0_36 = arith.constant 0 : index
    %66 = vector.load %arg3[%c448, %c0_36] : memref<512x64xf32, #tpu.memory_space<vmem>>, vector<32x64xf32>
    %cst_37 = arith.constant dense<0.000000e+00> : vector<32x64xf32>
    %67 = tpu.matmul %65, %66, %cst_37 {dimension_numbers = #tpu.dot_dimension_numbers<[1], [0], [0], [1], [0, 0, 1, 1], [], []>} : vector<32x32xf32>, vector<32x64xf32>, vector<32x64xf32> -> vector<32x64xf32>
    %68 = arith.addf %64, %67 : vector<32x64xf32>
    %69 = vector.extract_strided_slice %7 {offsets = [480, 0], sizes = [32, 32], strides = [1, 1]} : vector<512x32xf32> to vector<32x32xf32>
    %c480 = arith.constant 480 : index
    %c0_38 = arith.constant 0 : index
    %70 = vector.load %arg3[%c480, %c0_38] : memref<512x64xf32, #tpu.memory_space<vmem>>, vector<32x64xf32>
    %cst_39 = arith.constant dense<0.000000e+00> : vector<32x64xf32>
    %71 = tpu.matmul %69, %70, %cst_39 {dimension_numbers = #tpu.dot_dimension_numbers<[1], [0], [0], [1], [0, 0, 1, 1], [], []>} : vector<32x32xf32>, vector<32x64xf32>, vector<32x64xf32> -> vector<32x64xf32>
    %72 = arith.addf %68, %71 : vector<32x64xf32>
    %c0_40 = arith.constant 0 : index
    %c0_41 = arith.constant 0 : index
    %73 = vector.load %arg4[%c0_40, %c0_41] : memref<1x64xf32, #tpu.memory_space<vmem>>, vector<1x64xf32>
    %74 = vector.broadcast %73 : vector<1x64xf32> to vector<32x64xf32>
    %75 = arith.addf %72, %74 : vector<32x64xf32>
    %cst_42 = arith.constant 0.000000e+00 : f32
    %76 = vector.broadcast %cst_42 : f32 to vector<32x64xf32>
    %77 = arith.maximumf %75, %76 : vector<32x64xf32>
    %cst_43 = arith.constant 0.000000e+00 : f32
    %78 = vector.broadcast %cst_43 : f32 to vector<8x64xf32>
    %79 = vector.extract_strided_slice %77 {offsets = [0, 0], sizes = [8, 64], strides = [1, 1]} : vector<32x64xf32> to vector<8x64xf32>
    %c0_44 = arith.constant 0 : index
    %c0_45 = arith.constant 0 : index
    %80 = vector.load %arg5[%c0_44, %c0_45] : memref<256x64xf32, #tpu.memory_space<vmem>>, vector<64x64xf32>
    %cst_46 = arith.constant dense<0.000000e+00> : vector<8x64xf32>
    %81 = tpu.matmul %79, %80, %cst_46 {dimension_numbers = #tpu.dot_dimension_numbers<[1], [0], [0], [1], [0, 0, 1, 1], [], []>} : vector<8x64xf32>, vector<64x64xf32>, vector<8x64xf32> -> vector<8x64xf32>
    %82 = arith.addf %78, %81 : vector<8x64xf32>
    %83 = vector.extract_strided_slice %77 {offsets = [8, 0], sizes = [8, 64], strides = [1, 1]} : vector<32x64xf32> to vector<8x64xf32>
    %c64_47 = arith.constant 64 : index
    %c0_48 = arith.constant 0 : index
    %84 = vector.load %arg5[%c64_47, %c0_48] : memref<256x64xf32, #tpu.memory_space<vmem>>, vector<64x64xf32>
    %cst_49 = arith.constant dense<0.000000e+00> : vector<8x64xf32>
    %85 = tpu.matmul %83, %84, %cst_49 {dimension_numbers = #tpu.dot_dimension_numbers<[1], [0], [0], [1], [0, 0, 1, 1], [], []>} : vector<8x64xf32>, vector<64x64xf32>, vector<8x64xf32> -> vector<8x64xf32>
    %86 = arith.addf %82, %85 : vector<8x64xf32>
    %87 = vector.extract_strided_slice %77 {offsets = [16, 0], sizes = [8, 64], strides = [1, 1]} : vector<32x64xf32> to vector<8x64xf32>
    %c128_50 = arith.constant 128 : index
    %c0_51 = arith.constant 0 : index
    %88 = vector.load %arg5[%c128_50, %c0_51] : memref<256x64xf32, #tpu.memory_space<vmem>>, vector<64x64xf32>
    %cst_52 = arith.constant dense<0.000000e+00> : vector<8x64xf32>
    %89 = tpu.matmul %87, %88, %cst_52 {dimension_numbers = #tpu.dot_dimension_numbers<[1], [0], [0], [1], [0, 0, 1, 1], [], []>} : vector<8x64xf32>, vector<64x64xf32>, vector<8x64xf32> -> vector<8x64xf32>
    %90 = arith.addf %86, %89 : vector<8x64xf32>
    %91 = vector.extract_strided_slice %77 {offsets = [24, 0], sizes = [8, 64], strides = [1, 1]} : vector<32x64xf32> to vector<8x64xf32>
    %c192_53 = arith.constant 192 : index
    %c0_54 = arith.constant 0 : index
    %92 = vector.load %arg5[%c192_53, %c0_54] : memref<256x64xf32, #tpu.memory_space<vmem>>, vector<64x64xf32>
    %cst_55 = arith.constant dense<0.000000e+00> : vector<8x64xf32>
    %93 = tpu.matmul %91, %92, %cst_55 {dimension_numbers = #tpu.dot_dimension_numbers<[1], [0], [0], [1], [0, 0, 1, 1], [], []>} : vector<8x64xf32>, vector<64x64xf32>, vector<8x64xf32> -> vector<8x64xf32>
    %94 = arith.addf %90, %93 : vector<8x64xf32>
    %c0_56 = arith.constant 0 : index
    %c0_57 = arith.constant 0 : index
    %95 = vector.load %arg6[%c0_56, %c0_57] : memref<1x64xf32, #tpu.memory_space<vmem>>, vector<1x64xf32>
    %96 = vector.broadcast %95 : vector<1x64xf32> to vector<8x64xf32>
    %97 = arith.addf %94, %96 : vector<8x64xf32>
    %cst_58 = arith.constant 0.000000e+00 : f32
    %98 = vector.broadcast %cst_58 : f32 to vector<8x64xf32>
    %99 = arith.maximumf %97, %98 : vector<8x64xf32>
    %cst_59 = arith.constant 0.000000e+00 : f32
    %100 = vector.broadcast %cst_59 : f32 to vector<2x1024xf32>
    %101 = vector.extract_strided_slice %99 {offsets = [0, 0], sizes = [2, 64], strides = [1, 1]} : vector<8x64xf32> to vector<2x64xf32>
    %c0_60 = arith.constant 0 : index
    %c0_61 = arith.constant 0 : index
    %102 = vector.load %arg7[%c0_60, %c0_61] : memref<256x1024xf32, #tpu.memory_space<vmem>>, vector<64x1024xf32>
    %cst_62 = arith.constant dense<0.000000e+00> : vector<2x1024xf32>
    %103 = tpu.matmul %101, %102, %cst_62 {dimension_numbers = #tpu.dot_dimension_numbers<[1], [0], [0], [1], [0, 0, 1, 1], [], []>} : vector<2x64xf32>, vector<64x1024xf32>, vector<2x1024xf32> -> vector<2x1024xf32>
    %104 = arith.addf %100, %103 : vector<2x1024xf32>
    %105 = vector.extract_strided_slice %99 {offsets = [2, 0], sizes = [2, 64], strides = [1, 1]} : vector<8x64xf32> to vector<2x64xf32>
    %c64_63 = arith.constant 64 : index
    %c0_64 = arith.constant 0 : index
    %106 = vector.load %arg7[%c64_63, %c0_64] : memref<256x1024xf32, #tpu.memory_space<vmem>>, vector<64x1024xf32>
    %cst_65 = arith.constant dense<0.000000e+00> : vector<2x1024xf32>
    %107 = tpu.matmul %105, %106, %cst_65 {dimension_numbers = #tpu.dot_dimension_numbers<[1], [0], [0], [1], [0, 0, 1, 1], [], []>} : vector<2x64xf32>, vector<64x1024xf32>, vector<2x1024xf32> -> vector<2x1024xf32>
    %108 = arith.addf %104, %107 : vector<2x1024xf32>
    %109 = vector.extract_strided_slice %99 {offsets = [4, 0], sizes = [2, 64], strides = [1, 1]} : vector<8x64xf32> to vector<2x64xf32>
    %c128_66 = arith.constant 128 : index
    %c0_67 = arith.constant 0 : index
    %110 = vector.load %arg7[%c128_66, %c0_67] : memref<256x1024xf32, #tpu.memory_space<vmem>>, vector<64x1024xf32>
    %cst_68 = arith.constant dense<0.000000e+00> : vector<2x1024xf32>
    %111 = tpu.matmul %109, %110, %cst_68 {dimension_numbers = #tpu.dot_dimension_numbers<[1], [0], [0], [1], [0, 0, 1, 1], [], []>} : vector<2x64xf32>, vector<64x1024xf32>, vector<2x1024xf32> -> vector<2x1024xf32>
    %112 = arith.addf %108, %111 : vector<2x1024xf32>
    %113 = vector.extract_strided_slice %99 {offsets = [6, 0], sizes = [2, 64], strides = [1, 1]} : vector<8x64xf32> to vector<2x64xf32>
    %c192_69 = arith.constant 192 : index
    %c0_70 = arith.constant 0 : index
    %114 = vector.load %arg7[%c192_69, %c0_70] : memref<256x1024xf32, #tpu.memory_space<vmem>>, vector<64x1024xf32>
    %cst_71 = arith.constant dense<0.000000e+00> : vector<2x1024xf32>
    %115 = tpu.matmul %113, %114, %cst_71 {dimension_numbers = #tpu.dot_dimension_numbers<[1], [0], [0], [1], [0, 0, 1, 1], [], []>} : vector<2x64xf32>, vector<64x1024xf32>, vector<2x1024xf32> -> vector<2x1024xf32>
    %116 = arith.addf %112, %115 : vector<2x1024xf32>
    %c0_72 = arith.constant 0 : index
    %c0_73 = arith.constant 0 : index
    %117 = vector.load %arg8[%c0_72, %c0_73] : memref<1x1024xf32, #tpu.memory_space<vmem>>, vector<1x1024xf32>
    %118 = vector.broadcast %117 : vector<1x1024xf32> to vector<2x1024xf32>
    %119 = arith.addf %116, %118 : vector<2x1024xf32>
    %cst_74 = arith.constant 0.000000e+00 : f32
    %120 = vector.broadcast %cst_74 : f32 to vector<2x1024xf32>
    %121 = arith.maximumf %119, %120 : vector<2x1024xf32>
    %c0_75 = arith.constant 0 : index
    %c0_76 = arith.constant 0 : index
    %122 = vector.load %arg9[%c0_75, %c0_76] : memref<1024x256xf32, #tpu.memory_space<vmem>>, vector<1024x256xf32>
    %cst_77 = arith.constant dense<0.000000e+00> : vector<2x256xf32>
    %123 = tpu.matmul %121, %122, %cst_77 {dimension_numbers = #tpu.dot_dimension_numbers<[1], [0], [0], [1], [0, 0, 1, 1], [], []>} : vector<2x1024xf32>, vector<1024x256xf32>, vector<2x256xf32> -> vector<2x256xf32>
    %c0_78 = arith.constant 0 : index
    %c0_79 = arith.constant 0 : index
    %124 = vector.load %arg10[%c0_78, %c0_79] : memref<1x256xf32, #tpu.memory_space<vmem>>, vector<1x256xf32>
    %125 = vector.broadcast %124 : vector<1x256xf32> to vector<2x256xf32>
    %126 = arith.addf %123, %125 : vector<2x256xf32>
    %127 = vector.extract_strided_slice %126 {offsets = [0, 0], sizes = [2, 128], strides = [1, 1]} : vector<2x256xf32> to vector<2x128xf32>
    %128 = vector.extract_strided_slice %126 {offsets = [0, 128], sizes = [2, 1], strides = [1, 1]} : vector<2x256xf32> to vector<2x1xf32>
    %129 = vector.shape_cast %127 : vector<2x128xf32> to vector<1x2x128xf32>
    %cst_80 = arith.constant dense<0.000000e+00> : vector<1xf32>
    %130 = vector.multi_reduction <add>, %129, %cst_80 [1, 2] : vector<1x2x128xf32> to vector<1xf32>
    %131 = vector.shape_cast %130 : vector<1xf32> to vector<1x1x1xf32>
    %132 = vector.extract %131[0, 0, 0] : f32 from vector<1x1x1xf32>
    %cst_81 = arith.constant 0.0833333358 : f32
    %133 = arith.mulf %132, %cst_81 : f32
    %134 = vector.broadcast %128 : vector<2x1xf32> to vector<2x128xf32>
    %135 = arith.addf %134, %127 : vector<2x128xf32>
    %136 = vector.broadcast %133 : f32 to vector<2x128xf32>
    %137 = arith.subf %135, %136 : vector<2x128xf32>
    %c0_82 = arith.constant 0 : index
    %c0_83 = arith.constant 0 : index
    %138 = vector.load %arg11[%c0_82, %c0_83] : memref<2x128xf32, #tpu.memory_space<vmem>>, vector<2x128xf32>
    tpu.vector_store %arg11[%c0_82, %c0_83], %137 {strides = array<i32>} : memref<2x128xf32, #tpu.memory_space<vmem>>, vector<2x128xf32>,
    return
  }
}

</mosaic_0001>

<bundles_post_ra>
// kernel: dueling_forward.1
= control target key start
LH: loop header
LB: loop body
LE: loop exit
PB: predicated region body
PF: predicated region fallthrough
CT: control target
= control target key end

     0   :  { %v5325_v1 = vmov 0.0   ;;  %s8090_s0 = inlined_call_operand.vmem [shape: f32[512,256], index: 0, kind: input, shape index: {}]   ;;  %s8091_s1 = inlined_call_operand.vmem [shape: f32[256,32], index: 1, kind: input, shape index: {}]   ;;  %s8092_s2 = inlined_call_operand.vmem [shape: f32[1,32], index: 2, kind: input, shape index: {}]   ;;  %s8093_s3 = inlined_call_operand.vmem [shape: f32[512,64], index: 3, kind: input, shape index: {}]   ;;  %s8094_s4 = inlined_call_operand.vmem [shape: f32[1,64], index: 4, kind: input, shape index: {}]   ;;  %s8095_s5 = inlined_call_operand.vmem [shape: f32[256,64], index: 5, kind: input, shape index: {}]   ;;  %s8096_s6 = inlined_call_operand.vmem [shape: f32[1,64], index: 6, kind: input, shape index: {}]   ;;  %s8097_s7 = inlined_call_operand.vmem [shape: f32[256,1024], index: 7, kind: input, shape index: {}]   ;;  %s8098_s8 = inlined_call_operand.vmem [shape: f32[1,1024], index: 8, kind: input, shape index: {}]   ;;  %s8099_s9 = inlined_call_operand.vmem [shape: f32[1024,256], index: 9, kind: input, shape index: {}]   ;;  %s8100_s10 = inlined_call_operand.vmem [shape: f32[1,256], index: 10, kind: input, shape index: {}]   ;;  %s8101_s11 = inlined_call_operand.hbm [shape: f32[2,128], index: 11, kind: output, shape index: {}]  }
   0x1   :  { %v182_v0 = vld [vmem:[%s8091_s1 + $0x78] sm:$0xff]  ;;  %206 = vmatprep.subr.mxu0 %v5325_v1  ;;  %v181_v2 = vld [vmem:[%s8091_s1 + $0x70] sm:$0xff]  ;;  %v180_v3 = vld [vmem:[%s8091_s1 + $0x68] sm:$0xff] }
   0x2   :  { %207 = vmatpush1.msra.mxu0 %v182_v0  ;;  %v179_v4 = vld [vmem:[%s8091_s1 + $0x60] sm:$0xff]  ;;  %v178_v5 = vld [vmem:[%s8091_s1 + $0x58] sm:$0xff]  ;;  %v177_v6 = vld [vmem:[%s8091_s1 + $0x50] sm:$0xff] }
   0x3   :  { %208 = vmatprep.subr.mxu0 %v5325_v1  ;;  %v40_v7 = vld [vmem:[%s8090_s0 + $0x8] sm:$0xff]  ;;  %v175_v9 = vld [vmem:[%s8091_s1 + $0x40] sm:$0xff]  ;;  %v174_v10 = vld [vmem:[%s8091_s1 + $0x38] sm:$0xff] }
   0x4   :  { %209 = vmatpush1.msra.mxu0 %v181_v2  ;;  %v176_v8 = vld [vmem:[%s8091_s1 + $0x48] sm:$0xff]  ;;  %270 = vmatprep.mubr.f32.mxu0 %v40_v7  ;;  %v173_v11 = vld [vmem:[%s8091_s1 + $0x30] sm:$0xff]  ;;  %v171_v13 = vld [vmem:[%s8091_s1 + $0x20] sm:$0xff] }
   0x5   :  { %210 = vmatprep.subr.mxu0 %v5325_v1  ;;  %v172_v12 = vld [vmem:[%s8091_s1 + $0x28] sm:$0xff]  ;;  %v170_v14 = vld [vmem:[%s8091_s1 + $0x18] sm:$0xff]  ;;  %v169_v15 = vld [vmem:[%s8091_s1 + $0x10] sm:$0xff] }
   0x6   :  { %211 = vmatpush1.msra.mxu0 %v180_v3 }
   0x7   :  { %212 = vmatprep.subr.mxu0 %v5325_v1 }
   0x8   :  { %213 = vmatpush1.msra.mxu0 %v179_v4 }
   0x9   :  { %214 = vmatprep.subr.mxu0 %v5325_v1 }
   0xa   :  { %215 = vmatpush1.msra.mxu0 %v178_v5 }
   0xb   :  { %216 = vmatprep.subr.mxu0 %v5325_v1 }
   0xc   :  { %217 = vmatpush1.msra.mxu0 %v177_v6 }
   0xd   :  { %218 = vmatprep.subr.mxu0 %v5325_v1 }
   0xe   :  { %219 = vmatpush1.msra.mxu0 %v176_v8 }
   0xf   :  { %220 = vmatprep.subr.mxu0 %v5325_v1 }
  0x10   :  { %221 = vmatpush1.msra.mxu0 %v175_v9 }
  0x11   :  { %222 = vmatprep.subr.mxu0 %v5325_v1 }
  0x12   :  { %223 = vmatpush1.msra.mxu0 %v174_v10 }
  0x13   :  { %224 = vmatprep.subr.mxu0 %v5325_v1 }
  0x14   :  { %225 = vmatpush1.msra.mxu0 %v173_v11 }
  0x15   :  { %226 = vmatprep.subr.mxu0 %v5325_v1 }
  0x16   :  { %227 = vmatpush1.msra.mxu0 %v172_v12 }
  0x17   :  { %228 = vmatprep.subr.mxu0 %v5325_v1 }
  0x18   :  { %229 = vmatpush1.msra.mxu0 %v171_v13 }
  0x19   :  { %230 = vmatprep.subr.mxu0 %v5325_v1 }
  0x1a   :  { %231 = vmatpush1.msra.mxu0 %v170_v14 }
  0x1b   :  { %16 = vsyncpa [#allocation3], 0  ;;  %232 = vmatprep.subr.mxu0 %v5325_v1  ;;  %v168_v16 = vld [vmem:[%s8091_s1 + $0x8] sm:$0xff]  ;;  %v167_v17 = vld [vmem:[%s8091_s1] sm:$0xff]  ;;  %vm663_vm0 = vcmask 261120   ;;  %vm5326_vm1 = vmmov 0  }
  0x1c   :  { %233 = vmatpush1.msra.mxu0 %v169_v15  ;;  %v198_v18 = vld [vmem:[%s8091_s1 + $0xf8] sm:$0xff]  ;;  %v197_v19 = vld [vmem:[%s8091_s1 + $0xf0] sm:$0xff]  ;;  %v196_v20 = vld [vmem:[%s8091_s1 + $0xe8] sm:$0xff]  ;;  %vm2359_vm2 = vcmask 523264   ;;  %vm4709_vm3 = vcmask 1041408  }
  0x1d   :  { %234 = vmatprep.subr.mxu0 %v5325_v1  ;;  %v195_v21 = vld [vmem:[%s8091_s1 + $0xe0] sm:$0xff]  ;;  %v194_v22 = vld [vmem:[%s8091_s1 + $0xd8] sm:$0xff]  ;;  %v193_v23 = vld [vmem:[%s8091_s1 + $0xd0] sm:$0xff] }
  0x1e   :  { %235 = vmatpush1.msra.mxu0 %v168_v16  ;;  %v192_v24 = vld [vmem:[%s8091_s1 + $0xc8] sm:$0xff]  ;;  %v191_v25 = vld [vmem:[%s8091_s1 + $0xc0] sm:$0xff]  ;;  %v190_v26 = vld [vmem:[%s8091_s1 + $0xb8] sm:$0xff] }
  0x1f   :  { %236 = vmatprep.subr.mxu0 %v5325_v1  ;;  %v189_v27 = vld [vmem:[%s8091_s1 + $0xb0] sm:$0xff]  ;;  %v188_v28 = vld [vmem:[%s8091_s1 + $0xa8] sm:$0xff]  ;;  %v187_v29 = vld [vmem:[%s8091_s1 + $0xa0] sm:$0xff] }
  0x20   :  { %237 = vmatpush1.msra.mxu0 %v167_v17  ;;  %v186_v30 = vld [vmem:[%s8091_s1 + $0x98] sm:$0xff]  ;;  %v185_v31 = vld [vmem:[%s8091_s1 + $0x90] sm:$0xff]  ;;  %v184_v32 = vld [vmem:[%s8091_s1 + $0x88] sm:$0xff] }
  0x21   :  { %238 = vmatprep.subr.mxu0 %v5325_v1  ;;  %v183_v33 = vld [vmem:[%s8091_s1 + $0x80] sm:$0xff]  ;;  %v42_v35 = vld [vmem:[%s8090_s0 + $0x18] sm:$0xff]  ;;  %v41_v36 = vld [vmem:[%s8090_s0 + $0x10] sm:$0xff] }
  0x22   :  { %239 = vmatpush2.msra.mxu0 %v198_v18  ;;  %v39_v34 = vld [vmem:[%s8090_s0] sm:$0xff]  ;;  %v44_v37 = vld [vmem:[%s8090_s0 + $0x28] sm:$0xff]  ;;  %v46_v39 = vld [vmem:[%s8090_s0 + $0x38] sm:$0xff] }
  0x23   :  { %240 = vmatprep.subr.mxu0 %v5325_v1  ;;  %v43_v38 = vld [vmem:[%s8090_s0 + $0x20] sm:$0xff]  ;;  %v45_v40 = vld [vmem:[%s8090_s0 + $0x30] sm:$0xff]  ;;  %v48_v41 = vld [vmem:[%s8090_s0 + $0x48] sm:$0xff] }
  0x24   :  { %241 = vmatpush2.msra.mxu0 %v197_v19  ;;  %v47_v42 = vld [vmem:[%s8090_s0 + $0x40] sm:$0xff]  ;;  %v50_v43 = vld [vmem:[%s8090_s0 + $0x58] sm:$0xff]  ;;  %v49_v44 = vld [vmem:[%s8090_s0 + $0x50] sm:$0xff] }
  0x25   :  { %242 = vmatprep.subr.mxu0 %v5325_v1  ;;  %v52_v45 = vld [vmem:[%s8090_s0 + $0x68] sm:$0xff]  ;;  %v51_v46 = vld [vmem:[%s8090_s0 + $0x60] sm:$0xff]  ;;  %v54_v47 = vld [vmem:[%s8090_s0 + $0x78] sm:$0xff] }
  0x26   :  { %243 = vmatpush2.msra.mxu0 %v196_v20  ;;  %v53_v48 = vld [vmem:[%s8090_s0 + $0x70] sm:$0xff]  ;;  %v56_v49 = vld [vmem:[%s8090_s0 + $0x88] sm:$0xff]  ;;  %v55_v50 = vld [vmem:[%s8090_s0 + $0x80] sm:$0xff] }
  0x27   :  { %244 = vmatprep.subr.mxu0 %v5325_v1  ;;  %v58_v51 = vld [vmem:[%s8090_s0 + $0x98] sm:$0xff]  ;;  %v57_v52 = vld [vmem:[%s8090_s0 + $0x90] sm:$0xff]  ;;  %v60_v53 = vld [vmem:[%s8090_s0 + $0xa8] sm:$0xff] }
  0x28   :  { %245 = vmatpush2.msra.mxu0 %v195_v21  ;;  %v59_v54 = vld [vmem:[%s8090_s0 + $0xa0] sm:$0xff]  ;;  %v62_v55 = vld [vmem:[%s8090_s0 + $0xb8] sm:$0xff]  ;;  %v61_v56 = vld [vmem:[%s8090_s0 + $0xb0] sm:$0xff] }
  0x29   :  { %246 = vmatprep.subr.mxu0 %v5325_v1  ;;  %v64_v57 = vld [vmem:[%s8090_s0 + $0xc8] sm:$0xff]  ;;  %v63_v58 = vld [vmem:[%s8090_s0 + $0xc0] sm:$0xff]  ;;  %v66_v59 = vld [vmem:[%s8090_s0 + $0xd8] sm:$0xff] }
  0x2a   :  { %247 = vmatpush2.msra.mxu0 %v194_v22  ;;  %v65_v60 = vld [vmem:[%s8090_s0 + $0xd0] sm:$0xff]  ;;  %v68_v61 = vld [vmem:[%s8090_s0 + $0xe8] sm:$0xff]  ;;  %v67_v62 = vld [vmem:[%s8090_s0 + $0xe0] sm:$0xff] }
  0x2b   :  { %248 = vmatprep.subr.mxu0 %v5325_v1  ;;  %v70_v63 = vld [vmem:[%s8090_s0 + $0xf8] sm:$0xff]  ;;  %v69_v0 = vld [vmem:[%s8090_s0 + $0xf0] sm:$0xff]  ;;  %v72_v2 = vld [vmem:[%s8090_s0 + $0x108] sm:$0xff] }
  0x2c   :  { %249 = vmatpush2.msra.mxu0 %v193_v23  ;;  %v71_v3 = vld [vmem:[%s8090_s0 + $0x100] sm:$0xff]  ;;  %v74_v4 = vld [vmem:[%s8090_s0 + $0x118] sm:$0xff]  ;;  %v73_v5 = vld [vmem:[%s8090_s0 + $0x110] sm:$0xff] }
  0x2d   :  { %250 = vmatprep.subr.mxu0 %v5325_v1  ;;  %v76_v6 = vld [vmem:[%s8090_s0 + $0x128] sm:$0xff]  ;;  %v75_v7 = vld [vmem:[%s8090_s0 + $0x120] sm:$0xff]  ;;  %v78_v8 = vld [vmem:[%s8090_s0 + $0x138] sm:$0xff] }
  0x2e   :  { %251 = vmatpush2.msra.mxu0 %v192_v24  ;;  %v77_v9 = vld [vmem:[%s8090_s0 + $0x130] sm:$0xff]  ;;  %v80_v10 = vld [vmem:[%s8090_s0 + $0x148] sm:$0xff]  ;;  %v79_v11 = vld [vmem:[%s8090_s0 + $0x140] sm:$0xff] }
  0x2f   :  { %252 = vmatprep.subr.mxu0 %v5325_v1  ;;  %v82_v12 = vld [vmem:[%s8090_s0 + $0x158] sm:$0xff]  ;;  %v81_v14 = vld [vmem:[%s8090_s0 + $0x150] sm:$0xff]  ;;  %v84_v15 = vld [vmem:[%s8090_s0 + $0x168] sm:$0xff] }
  0x30   :  { %253 = vmatpush2.msra.mxu0 %v191_v25  ;;  %v662_v13 = vld [vmem:[%s8093_s3 + $0x38] sm:$0xff]  ;;  %v661_v16 = vld [vmem:[%s8093_s3 + $0x30] sm:$0xff]  ;;  %v660_v17 = vld [vmem:[%s8093_s3 + $0x28] sm:$0xff] }
  0x31   :  { %254 = vmatprep.subr.mxu0 %v5325_v1  ;;  %4995 = vmatprep.subr.mxu1 %v662_v13  ;;  %v83_v18 = vld [vmem:[%s8090_s0 + $0x160] sm:$0xff]  ;;  %v86_v19 = vld [vmem:[%s8090_s0 + $0x178] sm:$0xff]  ;;  %v85_v21 = vld [vmem:[%s8090_s0 + $0x170] sm:$0xff] }
  0x32   :  { %255 = vmatpush2.msra.mxu0 %v190_v26  ;;  %4996 = vmatpush3.msra.mxu1 %v662_v13  ;;  %v659_v20 = vld [vmem:[%s8093_s3 + $0x20] sm:$0xff]  ;;  %v88_v22 = vld [vmem:[%s8090_s0 + $0x188] sm:$0xff]  ;;  %v5679_v23 = vld [vmem:[%s8093_s3 + $0x18] sm:$0xff] }
  0x33   :  { %256 = vmatprep.subr.mxu0 %v5325_v1  ;;  %4997 = vmatprep.subr.mxu1 %v661_v16  ;;  %v87_v24 = vld [vmem:[%s8090_s0 + $0x180] sm:$0xff]  ;;  %v90_v25 = vld [vmem:[%s8090_s0 + $0x198] sm:$0xff]  ;;  %v89_v26 = vld [vmem:[%s8090_s0 + $0x190] sm:$0xff] }
  0x34   :  { %257 = vmatpush2.msra.mxu0 %v189_v27  ;;  %4998 = vmatpush3.msra.mxu1 %v661_v16  ;;  %v92_v27 = vld [vmem:[%s8090_s0 + $0x1a8] sm:$0xff]  ;;  %v139_v16 = vld [vmem:[%s8090_s0 + $0x320] sm:$0xff] }
  0x35   :  { %258 = vmatprep.subr.mxu0 %v5325_v1  ;;  %4999 = vmatprep.subr.mxu1 %v660_v17 }
  0x36   :  { %259 = vmatpush2.msra.mxu0 %v188_v28  ;;  %5000 = vmatpush3.msra.mxu1 %v660_v17  ;;  %v91_v28 = vld [vmem:[%s8090_s0 + $0x1a0] sm:$0xff] }
  0x37   :  { %260 = vmatprep.subr.mxu0 %v5325_v1  ;;  %5001 = vmatprep.subr.mxu1 %v659_v20 }
  0x38   :  { %261 = vmatpush2.msra.mxu0 %v187_v29  ;;  %5002 = vmatpush3.msra.mxu1 %v659_v20  ;;  %v94_v29 = vld [vmem:[%s8090_s0 + $0x1b8] sm:$0xff]  ;;  %v141_v20 = vld [vmem:[%s8090_s0 + $0x330] sm:$0xff] }
  0x39   :  { %262 = vmatprep.subr.mxu0 %v5325_v1  ;;  %5009 = vmatprep.subr.mxu1 %v5679_v23 }
  0x3a   :  { %263 = vmatpush2.msra.mxu0 %v186_v30  ;;  %v93_v30 = vld [vmem:[%s8090_s0 + $0x1b0] sm:$0xff] }
  0x3b   :  { %264 = vmatprep.subr.mxu0 %v5325_v1 }
  0x3c   :  { %265 = vmatpush2.msra.mxu0 %v185_v31  ;;  %v96_v31 = vld [vmem:[%s8090_s0 + $0x1c8] sm:$0xff] }
  0x3d   :  { %266 = vmatprep.subr.mxu0 %v5325_v1 }
  0x3e   :  { %267 = vmatpush2.msra.mxu0 %v184_v32  ;;  %v95_v32 = vld [vmem:[%s8090_s0 + $0x1c0] sm:$0xff] }
  0x3f   :  { %268 = vmatprep.subr.mxu0 %v5325_v1 }
  0x40   :  { %269 = vmatpush2.msra.mxu0 %v183_v33  ;;  %v98_v33 = vld [vmem:[%s8090_s0 + $0x1d8] sm:$0xff] }
  0x41   :  { %271 = vmatmul.mubr.f32.vlgmr.msra.gmra.mxu0 %v39_v34  ;;  %v97_v34 = vld [vmem:[%s8090_s0 + $0x1d0] sm:$0xff] }
  0x42   :  { %275 = vmatprep.mubr.f32.mxu0 %v42_v35  ;;  %v100_v35 = vld [vmem:[%s8090_s0 + $0x1e8] sm:$0xff] }
  0x45   :  { %276 = vmatmul.mubr.f32.gmra.mxu0 %v41_v36  ;;  %v99_v36 = vld [vmem:[%s8090_s0 + $0x1e0] sm:$0xff] }
  0x46   :  { %280 = vmatprep.mubr.f32.mxu0 %v44_v37  ;;  %v102_v37 = vld [vmem:[%s8090_s0 + $0x1f8] sm:$0xff] }
  0x49   :  { %281 = vmatmul.mubr.f32.gmra.mxu0 %v43_v38  ;;  %v101_v38 = vld [vmem:[%s8090_s0 + $0x1f0] sm:$0xff] }
  0x4a   :  { %285 = vmatprep.mubr.f32.mxu0 %v46_v39  ;;  %v104_v39 = vld [vmem:[%s8090_s0 + $0x208] sm:$0xff] }
  0x4d   :  { %286 = vmatmul.mubr.f32.gmra.mxu0 %v45_v40  ;;  %v103_v40 = vld [vmem:[%s8090_s0 + $0x200] sm:$0xff] }
  0x4e   :  { %290 = vmatprep.mubr.f32.mxu0 %v48_v41  ;;  %v106_v41 = vld [vmem:[%s8090_s0 + $0x218] sm:$0xff] }
  0x51   :  { %291 = vmatmul.mubr.f32.gmra.mxu0 %v47_v42  ;;  %v105_v42 = vld [vmem:[%s8090_s0 + $0x210] sm:$0xff] }
  0x52   :  { %295 = vmatprep.mubr.f32.mxu0 %v50_v43  ;;  %v108_v43 = vld [vmem:[%s8090_s0 + $0x228] sm:$0xff] }
  0x55   :  { %296 = vmatmul.mubr.f32.gmra.mxu0 %v49_v44  ;;  %v107_v44 = vld [vmem:[%s8090_s0 + $0x220] sm:$0xff] }
  0x56   :  { %300 = vmatprep.mubr.f32.mxu0 %v52_v45  ;;  %v110_v45 = vld [vmem:[%s8090_s0 + $0x238] sm:$0xff] }
  0x59   :  { %301 = vmatmul.mubr.f32.gmra.mxu0 %v51_v46  ;;  %v109_v46 = vld [vmem:[%s8090_s0 + $0x230] sm:$0xff] }
  0x5a   :  { %305 = vmatprep.mubr.f32.mxu0 %v54_v47  ;;  %v112_v47 = vld [vmem:[%s8090_s0 + $0x248] sm:$0xff] }
  0x5d   :  { %306 = vmatmul.mubr.f32.gmra.mxu0 %v53_v48  ;;  %v111_v48 = vld [vmem:[%s8090_s0 + $0x240] sm:$0xff] }
  0x5e   :  { %310 = vmatprep.mubr.f32.mxu0 %v56_v49  ;;  %v114_v49 = vld [vmem:[%s8090_s0 + $0x258] sm:$0xff] }
  0x61   :  { %311 = vmatmul.mubr.f32.gmra.mxu0 %v55_v50  ;;  %v113_v50 = vld [vmem:[%s8090_s0 + $0x250] sm:$0xff] }
  0x62   :  { %315 = vmatprep.mubr.f32.mxu0 %v58_v51  ;;  %v116_v51 = vld [vmem:[%s8090_s0 + $0x268] sm:$0xff] }
  0x65   :  { %316 = vmatmul.mubr.f32.gmra.mxu0 %v57_v52  ;;  %v115_v52 = vld [vmem:[%s8090_s0 + $0x260] sm:$0xff] }
  0x66   :  { %320 = vmatprep.mubr.f32.mxu0 %v60_v53  ;;  %v118_v53 = vld [vmem:[%s8090_s0 + $0x278] sm:$0xff] }
  0x69   :  { %321 = vmatmul.mubr.f32.gmra.mxu0 %v59_v54  ;;  %v117_v54 = vld [vmem:[%s8090_s0 + $0x270] sm:$0xff] }
  0x6a   :  { %325 = vmatprep.mubr.f32.mxu0 %v62_v55  ;;  %v120_v55 = vld [vmem:[%s8090_s0 + $0x288] sm:$0xff] }
  0x6d   :  { %326 = vmatmul.mubr.f32.gmra.mxu0 %v61_v56  ;;  %v119_v56 = vld [vmem:[%s8090_s0 + $0x280] sm:$0xff] }
  0x6e   :  { %330 = vmatprep.mubr.f32.mxu0 %v64_v57  ;;  %v122_v57 = vld [vmem:[%s8090_s0 + $0x298] sm:$0xff] }
  0x71   :  { %331 = vmatmul.mubr.f32.gmra.mxu0 %v63_v58  ;;  %v121_v58 = vld [vmem:[%s8090_s0 + $0x290] sm:$0xff] }
  0x72   :  { %335 = vmatprep.mubr.f32.mxu0 %v66_v59  ;;  %v124_v59 = vld [vmem:[%s8090_s0 + $0x2a8] sm:$0xff] }
  0x75   :  { %336 = vmatmul.mubr.f32.gmra.mxu0 %v65_v60  ;;  %v123_v60 = vld [vmem:[%s8090_s0 + $0x2a0] sm:$0xff] }
  0x76   :  { %340 = vmatprep.mubr.f32.mxu0 %v68_v61  ;;  %v126_v61 = vld [vmem:[%s8090_s0 + $0x2b8] sm:$0xff] }
  0x79   :  { %341 = vmatmul.mubr.f32.gmra.mxu0 %v67_v62  ;;  %v125_v62 = vld [vmem:[%s8090_s0 + $0x2b0] sm:$0xff] }
  0x7a   :  { %345 = vmatprep.mubr.f32.mxu0 %v70_v63  ;;  %v128_v63 = vld [vmem:[%s8090_s0 + $0x2c8] sm:$0xff] }
  0x7d   :  { %346 = vmatmul.mubr.f32.gmra.mxu0 %v69_v0  ;;  %v127_v0 = vld [vmem:[%s8090_s0 + $0x2c0] sm:$0xff] }
  0x7e   :  { %350 = vmatprep.mubr.f32.mxu0 %v72_v2  ;;  %v130_v2 = vld [vmem:[%s8090_s0 + $0x2d8] sm:$0xff] }
  0x81   :  { %351 = vmatmul.mubr.f32.gmra.mxu0 %v71_v3  ;;  %v129_v3 = vld [vmem:[%s8090_s0 + $0x2d0] sm:$0xff] }
  0x82   :  { %355 = vmatprep.mubr.f32.mxu0 %v74_v4  ;;  %v132_v4 = vld [vmem:[%s8090_s0 + $0x2e8] sm:$0xff] }
  0x85   :  { %356 = vmatmul.mubr.f32.gmra.mxu0 %v73_v5  ;;  %v131_v5 = vld [vmem:[%s8090_s0 + $0x2e0] sm:$0xff] }
  0x86   :  { %360 = vmatprep.mubr.f32.mxu0 %v76_v6  ;;  %v134_v6 = vld [vmem:[%s8090_s0 + $0x2f8] sm:$0xff] }
  0x89   :  { %361 = vmatmul.mubr.f32.gmra.mxu0 %v75_v7  ;;  %v133_v7 = vld [vmem:[%s8090_s0 + $0x2f0] sm:$0xff] }
  0x8a   :  { %365 = vmatprep.mubr.f32.mxu0 %v78_v8  ;;  %v136_v8 = vld [vmem:[%s8090_s0 + $0x308] sm:$0xff] }
  0x8d   :  { %366 = vmatmul.mubr.f32.gmra.mxu0 %v77_v9  ;;  %v135_v9 = vld [vmem:[%s8090_s0 + $0x300] sm:$0xff] }
  0x8e   :  { %370 = vmatprep.mubr.f32.mxu0 %v80_v10  ;;  %v138_v10 = vld [vmem:[%s8090_s0 + $0x318] sm:$0xff] }
  0x91   :  { %371 = vmatmul.mubr.f32.gmra.mxu0 %v79_v11 }
  0x92   :  { %375 = vmatprep.mubr.f32.mxu0 %v82_v12  ;;  %v137_v12 = vld [vmem:[%s8090_s0 + $0x310] sm:$0xff] }
  0x95   :  { %376 = vmatmul.mubr.f32.gmra.mxu0 %v81_v14  ;;  %v140_v14 = vld [vmem:[%s8090_s0 + $0x328] sm:$0xff] }
  0x96   :  { %380 = vmatprep.mubr.f32.mxu0 %v84_v15 }
  0x99   :  { %381 = vmatmul.mubr.f32.gmra.mxu0 %v83_v18  ;;  %v142_v18 = vld [vmem:[%s8090_s0 + $0x338] sm:$0xff] }
  0x9a   :  { %385 = vmatprep.mubr.f32.mxu0 %v86_v19 }
  0x9d   :  { %386 = vmatmul.mubr.f32.gmra.mxu0 %v85_v21 }
  0x9e   :  { %390 = vmatprep.mubr.f32.mxu0 %v88_v22  ;;  %v144_v22 = vld [vmem:[%s8090_s0 + $0x348] sm:$0xff] }
  0xa1   :  { %391 = vmatmul.mubr.f32.gmra.mxu0 %v87_v24 }
  0xa2   :  { %395 = vmatprep.mubr.f32.mxu0 %v90_v25  ;;  %v143_v25 = vld [vmem:[%s8090_s0 + $0x340] sm:$0xff] }
  0xa5   :  { %396 = vmatmul.mubr.f32.gmra.mxu0 %v89_v26 }
  0xa6   :  { %400 = vmatprep.mubr.f32.mxu0 %v92_v27  ;;  %v146_v27 = vld [vmem:[%s8090_s0 + $0x358] sm:$0xff] }
  0xa9   :  { %401 = vmatmul.mubr.f32.gmra.mxu0 %v91_v28  ;;  %v5861_v28 = vld [vmem:[%s8092_s2] ss:$0 sm:$0xff] }
  0xaa   :  { %405 = vmatprep.mubr.f32.mxu0 %v94_v29 }
  0xad   :  { %406 = vmatmul.mubr.f32.gmra.mxu0 %v93_v30 }
  0xae   :  { %410 = vmatprep.mubr.f32.mxu0 %v96_v31  ;;  %v145_v31 = vld [vmem:[%s8090_s0 + $0x350] sm:$0xff] }
  0xb1   :  { %411 = vmatmul.mubr.f32.gmra.mxu0 %v95_v32 }
  0xb2   :  { %415 = vmatprep.mubr.f32.mxu0 %v98_v33  ;;  %v148_v33 = vld [vmem:[%s8090_s0 + $0x368] sm:$0xff] }
  0xb5   :  { %416 = vmatmul.mubr.f32.gmra.mxu0 %v97_v34 }
  0xb6   :  { %420 = vmatprep.mubr.f32.mxu0 %v100_v35 }
  0xb9   :  { %421 = vmatmul.mubr.f32.gmra.mxu0 %v99_v36 }
  0xba   :  { %425 = vmatprep.mubr.f32.mxu0 %v102_v37  ;;  %v147_v37 = vld [vmem:[%s8090_s0 + $0x360] sm:$0xff] }
  0xbd   :  { %426 = vmatmul.mubr.f32.gmra.mxu0 %v101_v38 }
  0xbe   :  { %430 = vmatprep.mubr.f32.mxu0 %v104_v39  ;;  %v150_v39 = vld [vmem:[%s8090_s0 + $0x378] sm:$0xff] }
  0xc1   :  { %431 = vmatmul.mubr.f32.gmra.mxu0 %v103_v40 }
  0xc2   :  { %435 = vmatprep.mubr.f32.mxu0 %v106_v41 }
  0xc5   :  { %436 = vmatmul.mubr.f32.gmra.mxu0 %v105_v42  ;;  %v657_v42 = vld [vmem:[%s8093_s3 + $0x10] sm:$0xff] }
  0xc6   :  { %440 = vmatprep.mubr.f32.mxu0 %v108_v43 }
  0xc9   :  { %441 = vmatmul.mubr.f32.gmra.mxu0 %v107_v44  ;;  %v149_v44 = vld [vmem:[%s8090_s0 + $0x370] sm:$0xff] }
  0xca   :  { %445 = vmatprep.mubr.f32.mxu0 %v110_v45 }
  0xcd   :  { %446 = vmatmul.mubr.f32.gmra.mxu0 %v109_v46  ;;  %v152_v46 = vld [vmem:[%s8090_s0 + $0x388] sm:$0xff] }
  0xce   :  { %450 = vmatprep.mubr.f32.mxu0 %v112_v47 }
  0xd1   :  { %451 = vmatmul.mubr.f32.gmra.mxu0 %v111_v48  ;;  %v656_v48 = vld [vmem:[%s8093_s3 + $0x8] sm:$0xff] }
  0xd2   :  { %455 = vmatprep.mubr.f32.mxu0 %v114_v49 }
  0xd5   :  { %456 = vmatmul.mubr.f32.gmra.mxu0 %v113_v50 }
  0xd6   :  { %460 = vmatprep.mubr.f32.mxu0 %v116_v51 }
  0xd9   :  { %461 = vmatmul.mubr.f32.gmra.mxu0 %v115_v52  ;;  %v655_v52 = vld [vmem:[%s8093_s3] sm:$0xff] }
  0xda   :  { %465 = vmatprep.mubr.f32.mxu0 %v118_v53 }
  0xdd   :  { %466 = vmatmul.mubr.f32.gmra.mxu0 %v117_v54  ;;  %v154_v54 = vld [vmem:[%s8090_s0 + $0x398] sm:$0xff] }
  0xde   :  { %470 = vmatprep.mubr.f32.mxu0 %v120_v55 }
  0xe1   :  { %471 = vmatmul.mubr.f32.gmra.mxu0 %v119_v56 }
  0xe2   :  { %475 = vmatprep.mubr.f32.mxu0 %v122_v57 }
  0xe5   :  { %476 = vmatmul.mubr.f32.gmra.mxu0 %v121_v58 }
  0xe6   :  { %480 = vmatprep.mubr.f32.mxu0 %v124_v59 }
  0xe9   :  { %481 = vmatmul.mubr.f32.gmra.mxu0 %v123_v60  ;;  %v861_v60 = vld [vmem:[%s8093_s3 + $0x58] sm:$0xff] }
  0xea   :  { %485 = vmatprep.mubr.f32.mxu0 %v126_v61  ;;  %v153_v61 = vld [vmem:[%s8090_s0 + $0x390] sm:$0xff] }
  0xed   :  { %486 = vmatmul.mubr.f32.gmra.mxu0 %v125_v62 }
  0xee   :  { %490 = vmatprep.mubr.f32.mxu0 %v128_v63  ;;  %v156_v63 = vld [vmem:[%s8090_s0 + $0x3a8] sm:$0xff] }
  0xf1   :  { %491 = vmatmul.mubr.f32.gmra.mxu0 %v127_v0 }
  0xf2   :  { %495 = vmatprep.mubr.f32.mxu0 %v130_v2 }
  0xf5   :  { %496 = vmatmul.mubr.f32.gmra.mxu0 %v129_v3 }
  0xf6   :  { %500 = vmatprep.mubr.f32.mxu0 %v132_v4 }
  0xf9   :  { %501 = vmatmul.mubr.f32.gmra.mxu0 %v131_v5 }
  0xfa   :  { %505 = vmatprep.mubr.f32.mxu0 %v134_v6  ;;  %v860_v6 = vld [vmem:[%s8093_s3 + $0x50] sm:$0xff] }
  0xfd   :  { %506 = vmatmul.mubr.f32.gmra.mxu0 %v133_v7  ;;  %v155_v7 = vld [vmem:[%s8090_s0 + $0x3a0] sm:$0xff] }
  0xfe   :  { %510 = vmatprep.mubr.f32.mxu0 %v136_v8 }
 0x101   :  { %v272_v11 = vpop.f32.mrf.mxu0  ;;  %511 = vmatmul.mubr.f32.gmra.mxu0 %v135_v9  ;;  %v859_v9 = vld [vmem:[%s8093_s3 + $0x48] sm:$0xff] }
 0x102   :  { %515 = vmatprep.mubr.f32.mxu0 %v138_v10  ;;  %v273_v49 = vadd.f32 %v5861_v28, %v272_v11 }
 0x103   :  { %v274_v13 = vpop.f32.mrf.mxu0 }
 0x104   :  { %v591_v57 = vmax.f32 %v273_v49, 0.0 }
 0x105   :  { %v277_v15 = vpop.f32.mrf.mxu0  ;;  %516 = vmatmul.mubr.f32.gmra.mxu0 %v137_v12 }
 0x106   :  { %520 = vmatprep.mubr.f32.mxu0 %v140_v14  ;;  %v278_v55 = vadd.f32 %v5861_v28, %v277_v15  ;;  %v158_v14 = vld [vmem:[%s8090_s0 + $0x3b8] sm:$0xff]  ;;  %v858_v15 = vld [vmem:[%s8093_s3 + $0x40] sm:$0xff] }
 0x107   :  { %v279_v17 = vpop.f32.mrf.mxu0 }
 0x108   :  { %v592_v0 = vmax.f32 %v278_v55, 0.0  ;;  %v157_v17 = vld [vmem:[%s8090_s0 + $0x3b0] sm:$0xff] }
 0x109   :  { %v282_v19 = vpop.f32.mrf.mxu0  ;;  %521 = vmatmul.mubr.f32.gmra.mxu0 %v139_v16 }
 0x10a   :  { %525 = vmatprep.mubr.f32.mxu0 %v142_v18  ;;  %v283_v58 = vadd.f32 %v5861_v28, %v282_v19  ;;  %v160_v19 = vld [vmem:[%s8090_s0 + $0x3c8] sm:$0xff] }
 0x10b   :  { %v284_v21 = vpop.f32.mrf.mxu0 }
 0x10c   :  { %v593_v3 = vmax.f32 %v283_v58, 0.0 }
 0x10d   :  { %v5850_v24 = vpop.f32.mrf.mxu0  ;;  %526 = vmatmul.mubr.f32.gmra.mxu0 %v141_v20 }
 0x10e   :  { %530 = vmatprep.mubr.f32.mxu0 %v144_v22  ;;  %v288_v2 = vadd.f32 %v5861_v28, %v5850_v24  ;;  %v966_v22 = vld [vmem:[%s8093_s3 + $0x78] sm:$0xff] }
 0x10f   :  { %v289_v26 = vpop.f32.mrf.mxu0 }
 0x110   :  { %v594_v10 = vmax.f32 %v288_v2, 0.0  ;;  %v159_v26 = vld [vmem:[%s8090_s0 + $0x3c0] sm:$0xff] }
 0x111   :  { %v292_v29 = vpop.f32.mrf.mxu0  ;;  %531 = vmatmul.mubr.f32.gmra.mxu0 %v143_v25 }
 0x112   :  { %v293_v30 = vadd.f32 %v5861_v28, %v292_v29  ;;  %535 = vmatprep.mubr.f32.mxu0 %v146_v27  ;;  %v965_v27 = vld [vmem:[%s8093_s3 + $0x70] sm:$0xff] }
 0x113   :  { %v294_v32 = vpop.f32.mrf.mxu0 }
 0x114   :  { %v595_v34 = vmax.f32 %v293_v30, 0.0  ;;  %v162_v30 = vld [vmem:[%s8090_s0 + $0x3d8] sm:$0xff] }
 0x115   :  { %v297_v35 = vpop.f32.mrf.mxu0  ;;  %536 = vmatmul.mubr.f32.gmra.mxu0 %v145_v31 }
 0x116   :  { %v298_v36 = vadd.f32 %v5861_v28, %v297_v35  ;;  %5003 = vmatprep.mubr.msk.f32.mxu1 %vm663_vm0, %v595_v34  ;;  %540 = vmatprep.mubr.f32.mxu0 %v148_v33  ;;  %v964_v33 = vld [vmem:[%s8093_s3 + $0x68] sm:$0xff]  ;;  %v161_v35 = vld [vmem:[%s8090_s0 + $0x3d0] sm:$0xff] }
 0x117   :  { %v299_v38 = vpop.f32.mrf.mxu0 }
 0x118   :  { %v596_v40 = vmax.f32 %v298_v36, 0.0 }
 0x119   :  { %v302_v41 = vpop.f32.mrf.mxu0  ;;  %541 = vmatmul.mubr.f32.gmra.mxu0 %v147_v37  ;;  %v164_v37 = vld [vmem:[%s8090_s0 + $0x3e8] sm:$0xff] }
 0x11a   :  { %v303_v43 = vadd.f32 %v5861_v28, %v302_v41  ;;  %5004 = vmatmul.mubr.msk.f32.vlgmr.msra.gmra.mxu1 %vm663_vm0, %v596_v40  ;;  %545 = vmatprep.mubr.f32.mxu0 %v150_v39  ;;  %v963_v39 = vld [vmem:[%s8093_s3 + $0x60] sm:$0xff] }
 0x11b   :  { %v304_v45 = vpop.f32.mrf.mxu0  ;;  %5010 = vmatpush3.msra.mxu1 %v5679_v23  ;;  %v151_v23 = vld [vmem:[%s8090_s0 + $0x380] sm:$0xff] }
 0x11c   :  { %v597_v47 = vmax.f32 %v303_v43, 0.0  ;;  %5011 = vmatprep.subr.mxu1 %v657_v42  ;;  %v1071_v43 = vld [vmem:[%s8093_s3 + $0x98] sm:$0xff] }
 0x11d   :  { %v307_v50 = vpop.f32.mrf.mxu0  ;;  %546 = vmatmul.mubr.f32.gmra.mxu0 %v149_v44  ;;  %5012 = vmatpush3.msra.mxu1 %v657_v42  ;;  %v163_v42 = vld [vmem:[%s8090_s0 + $0x3e0] sm:$0xff]  ;;  %v166_v45 = vld [vmem:[%s8090_s0 + $0x3f8] sm:$0xff] }
 0x11e   :  { %v308_v51 = vadd.f32 %v5861_v28, %v307_v50  ;;  %5006 = vmatprep.mubr.msk.f32.mxu1 %vm663_vm0, %v597_v47  ;;  %550 = vmatprep.mubr.f32.mxu0 %v152_v46  ;;  %v165_v50 = vld [vmem:[%s8090_s0 + $0x3f0] sm:$0xff] }
 0x11f   :  { %v309_v53 = vpop.f32.mrf.mxu0  ;;  %5013 = vmatprep.subr.mxu1 %v656_v48 }
 0x120   :  { %v598_v56 = vmax.f32 %v308_v51, 0.0  ;;  %5014 = vmatpush3.msra.mxu1 %v656_v48  ;;  %v1070_v48 = vld [vmem:[%s8093_s3 + $0x90] sm:$0xff] }
 0x121   :  { %v312_v59 = vpop.f32.mrf.mxu0  ;;  %551 = vmatmul.mubr.f32.gmra.mxu0 %v151_v23  ;;  %5015 = vmatprep.subr.mxu1 %v655_v52  ;;  %v1069_v23 = vld [vmem:[%s8093_s3 + $0x88] sm:$0xff] }
 0x122   :  { %5007 = vmatmul.mubr.msk.f32.gmra.mxu1 %vm663_vm0, %v598_v56  ;;  %555 = vmatprep.mubr.f32.mxu0 %v154_v54  ;;  %v313_v4 = vadd.f32 %v5861_v28, %v312_v59  ;;  %v1068_v54 = vld [vmem:[%s8093_s3 + $0x80] sm:$0xff] }
 0x123   :  { %v314_v62 = vpop.f32.mrf.mxu0  ;;  %5017 = vmatprep.mubr.msk.f32.mxu1 %vm663_vm0, %v591_v57  ;;  %5016 = vmatpush3.msra.mxu1 %v655_v52  ;;  %v1176_v57 = vld [vmem:[%s8093_s3 + $0xb8] sm:$0xff] }
 0x124   :  { %5023 = vmatprep.subr.mxu1 %v861_v60  ;;  %v599_v12 = vmax.f32 %v313_v4, 0.0 }
 0x125   :  { %v317_v5 = vpop.f32.mrf.mxu0  ;;  %556 = vmatmul.mubr.f32.gmra.mxu0 %v153_v61 }
 0x126   :  { %5018 = vmatmul.mubr.msk.f32.vlgmr.msra.gmra.mxu1 %vm663_vm0, %v592_v0  ;;  %560 = vmatprep.mubr.f32.mxu0 %v156_v63  ;;  %v318_v11 = vadd.f32 %v5861_v28, %v317_v5  ;;  %v1175_v5 = vld [vmem:[%s8093_s3 + $0xb0] sm:$0xff] }
 0x127   :  { %v319_v8 = vpop.f32.mrf.mxu0  ;;  %5020 = vmatprep.mubr.msk.f32.mxu1 %vm663_vm0, %v593_v3  ;;  %5024 = vmatpush3.msra.mxu1 %v861_v60 }
 0x128   :  { %5025 = vmatprep.subr.mxu1 %v860_v6  ;;  %v600_v20 = vmax.f32 %v318_v11, 0.0  ;;  %v1174_v8 = vld [vmem:[%s8093_s3 + $0xa8] sm:$0xff]  ;;  %v1173_v11 = vld [vmem:[%s8093_s3 + $0xa0] sm:$0xff] }
 0x129   :  { %v322_v13 = vpop.f32.mrf.mxu0  ;;  %561 = vmatmul.mubr.f32.gmra.mxu0 %v155_v7  ;;  %5026 = vmatpush3.msra.mxu1 %v860_v6 }
 0x12a   :  { %v323_v16 = vadd.f32 %v5861_v28, %v322_v13  ;;  %5021 = vmatmul.mubr.msk.f32.gmra.mxu1 %vm663_vm0, %v594_v10  ;;  %5027 = vmatprep.subr.mxu1 %v859_v9 }
 0x12b   :  { %v324_v18 = vpop.f32.mrf.mxu0  ;;  %5028 = vmatpush3.msra.mxu1 %v859_v9  ;;  %5031 = vmatprep.mubr.msk.f32.mxu1 %vm663_vm0, %v599_v12 }
 0x12c   :  { %v601_v21 = vmax.f32 %v323_v16, 0.0  ;;  %565 = vmatprep.mubr.f32.mxu0 %v158_v14  ;;  %5029 = vmatprep.subr.mxu1 %v858_v15  ;;  %v1281_v14 = vld [vmem:[%s8093_s3 + $0xd8] sm:$0xff] }
 0x12d   :  { %v327_v24 = vpop.f32.mrf.mxu0  ;;  %566 = vmatmul.mubr.f32.gmra.mxu0 %v157_v17  ;;  %5030 = vmatpush3.msra.mxu1 %v858_v15 }
 0x12e   :  { %v328_v25 = vadd.f32 %v5861_v28, %v327_v24  ;;  %5032 = vmatmul.mubr.msk.f32.vlgmr.msra.gmra.mxu1 %vm663_vm0, %v600_v20  ;;  %570 = vmatprep.mubr.f32.mxu0 %v160_v19 }
 0x12f   :  { %v329_v29 = vpop.f32.mrf.mxu0  ;;  %5034 = vmatprep.mubr.msk.f32.mxu1 %vm663_vm0, %v601_v21  ;;  %5037 = vmatprep.subr.mxu1 %v966_v22 }
 0x130   :  { %v602_v31 = vmax.f32 %v328_v25, 0.0  ;;  %5038 = vmatpush3.msra.mxu1 %v966_v22 }
 0x131   :  { %v332_v32 = vpop.f32.mrf.mxu0  ;;  %571 = vmatmul.mubr.f32.gmra.mxu0 %v159_v26  ;;  %5039 = vmatprep.subr.mxu1 %v965_v27  ;;  %v1280_v26 = vld [vmem:[%s8093_s3 + $0xd0] sm:$0xff] }
 0x132   :  { %v333_v34 = vadd.f32 %v5861_v28, %v332_v32  ;;  %5035 = vmatmul.mubr.msk.f32.gmra.mxu1 %vm663_vm0, %v602_v31  ;;  %575 = vmatprep.mubr.f32.mxu0 %v162_v30  ;;  %v1279_v30 = vld [vmem:[%s8093_s3 + $0xc8] sm:$0xff] }
 0x133   :  { %v334_v36 = vpop.f32.mrf.mxu0  ;;  %5040 = vmatpush3.msra.mxu1 %v965_v27 }
 0x134   :  { %v603_v38 = vmax.f32 %v333_v34, 0.0  ;;  %5041 = vmatprep.subr.mxu1 %v964_v33  ;;  %v1386_v36 = vld [vmem:[%s8093_s3 + $0xf8] sm:$0xff] }
 0x135   :  { %v337_v40 = vpop.f32.mrf.mxu0  ;;  %576 = vmatmul.mubr.f32.gmra.mxu0 %v161_v35  ;;  %5042 = vmatpush3.msra.mxu1 %v964_v33  ;;  %v1278_v33 = vld [vmem:[%s8093_s3 + $0xc0] sm:$0xff] }
 0x136   :  { %v338_v41 = vadd.f32 %v5861_v28, %v337_v40  ;;  %5045 = vmatprep.mubr.msk.f32.mxu1 %vm663_vm0, %v603_v38  ;;  %580 = vmatprep.mubr.f32.mxu0 %v164_v37 }
 0x137   :  { %v339_v44 = vpop.f32.mrf.mxu0  ;;  %5043 = vmatprep.subr.mxu1 %v963_v39 }
 0x138   :  { %v604_v46 = vmax.f32 %v338_v41, 0.0  ;;  %5044 = vmatpush3.msra.mxu1 %v963_v39 }
 0x139   :  { %v342_v47 = vpop.f32.mrf.mxu0  ;;  %581 = vmatmul.mubr.f32.gmra.mxu0 %v163_v42  ;;  %5051 = vmatprep.subr.mxu1 %v1071_v43 }
 0x13a   :  { %v343_v49 = vadd.f32 %v5861_v28, %v342_v47  ;;  %5046 = vmatmul.mubr.msk.f32.vlgmr.msra.gmra.mxu1 %vm663_vm0, %v604_v46  ;;  %585 = vmatprep.mubr.f32.mxu0 %v166_v45  ;;  %v1385_v47 = vld [vmem:[%s8093_s3 + $0xf0] sm:$0xff] }
 0x13b   :  { %v344_v51 = vpop.f32.mrf.mxu0  ;;  %5052 = vmatpush3.msra.mxu1 %v1071_v43 }
 0x13c   :  { %v605_v52 = vmax.f32 %v343_v49, 0.0  ;;  %5053 = vmatprep.subr.mxu1 %v1070_v48 }
 0x13d   :  { %v347_v53 = vpop.f32.mrf.mxu0  ;;  %586 = vmatmul.mubr.f32.gmra.mxu0 %v165_v50  ;;  %5054 = vmatpush3.msra.mxu1 %v1070_v48  ;;  %v1384_v50 = vld [vmem:[%s8093_s3 + $0xe8] sm:$0xff] }
 0x13e   :  { %v348_v55 = vadd.f32 %v5861_v28, %v347_v53  ;;  %5048 = vmatprep.mubr.msk.f32.mxu1 %vm663_vm0, %v605_v52  ;;  %5055 = vmatprep.subr.mxu1 %v1069_v23  ;;  %v1383_v52 = vld [vmem:[%s8093_s3 + $0xe0] sm:$0xff] }
 0x13f   :  { %v349_v56 = vpop.f32.mrf.mxu0  ;;  %5056 = vmatpush3.msra.mxu1 %v1069_v23  ;;  %3374 = vmatprep.mubr.f32.mxu0 %v5325_v1 }
 0x140   :  { %v606_v58 = vmax.f32 %v348_v55, 0.0  ;;  %5057 = vmatprep.subr.mxu1 %v1068_v54  ;;  %v1491_v55 = vld [vmem:[%s8093_s3 + $0x118] sm:$0xff] }
 0x141   :  { %v352_v59 = vpop.f32.mrf.mxu0  ;;  %5058 = vmatpush3.msra.mxu1 %v1068_v54 }
 0x142   :  { %v353_v60 = vadd.f32 %v5861_v28, %v352_v59  ;;  %5049 = vmatmul.mubr.msk.f32.gmra.mxu1 %vm663_vm0, %v606_v58  ;;  %5065 = vmatprep.subr.mxu1 %v1176_v57 }
 0x143   :  { %v354_v61 = vpop.f32.mrf.mxu0 }
 0x144   :  { %v607_v62 = vmax.f32 %v353_v60, 0.0 }
 0x145   :  { %v357_v63 = vpop.f32.mrf.mxu0 }
 0x146   :  { %v358_v0 = vadd.f32 %v5861_v28, %v357_v63  ;;  %5059 = vmatprep.mubr.msk.f32.mxu1 %vm663_vm0, %v607_v62 }
 0x147   :  { %v359_v2 = vpop.f32.mrf.mxu0 }
 0x148   :  { %v608_v3 = vmax.f32 %v358_v0, 0.0 }
 0x149   :  { %v362_v4 = vpop.f32.mrf.mxu0 }
 0x14a   :  { %v363_v6 = vadd.f32 %v5861_v28, %v362_v4  ;;  %5060 = vmatmul.mubr.msk.f32.vlgmr.msra.gmra.mxu1 %vm663_vm0, %v608_v3  ;;  %v1490_v3 = vld [vmem:[%s8093_s3 + $0x110] sm:$0xff] }
 0x14b   :  { %v364_v7 = vpop.f32.mrf.mxu0  ;;  %5066 = vmatpush3.msra.mxu1 %v1176_v57 }
 0x14c   :  { %v609_v9 = vmax.f32 %v363_v6, 0.0  ;;  %5067 = vmatprep.subr.mxu1 %v1175_v5  ;;  %v1489_v6 = vld [vmem:[%s8093_s3 + $0x108] sm:$0xff] }
 0x14d   :  { %v367_v10 = vpop.f32.mrf.mxu0  ;;  %5068 = vmatpush3.msra.mxu1 %v1175_v5 }
 0x14e   :  { %v368_v12 = vadd.f32 %v5861_v28, %v367_v10  ;;  %5062 = vmatprep.mubr.msk.f32.mxu1 %vm663_vm0, %v609_v9  ;;  %5069 = vmatprep.subr.mxu1 %v1174_v8  ;;  %v1488_v9 = vld [vmem:[%s8093_s3 + $0x100] sm:$0xff] }
 0x14f   :  { %v369_v13 = vpop.f32.mrf.mxu0  ;;  %5070 = vmatpush3.msra.mxu1 %v1174_v8 }
 0x150   :  { %v610_v15 = vmax.f32 %v368_v12, 0.0  ;;  %5071 = vmatprep.subr.mxu1 %v1173_v11  ;;  %v1596_v12 = vld [vmem:[%s8093_s3 + $0x138] sm:$0xff] }
 0x151   :  { %v372_v16 = vpop.f32.mrf.mxu0  ;;  %5072 = vmatpush3.msra.mxu1 %v1173_v11 }
 0x152   :  { %v373_v17 = vadd.f32 %v5861_v28, %v372_v16  ;;  %5063 = vmatmul.mubr.msk.f32.gmra.mxu1 %vm663_vm0, %v610_v15  ;;  %5079 = vmatprep.subr.mxu1 %v1281_v14 }
 0x153   :  { %v374_v18 = vpop.f32.mrf.mxu0 }
 0x154   :  { %v611_v19 = vmax.f32 %v373_v17, 0.0 }
 0x155   :  { %v377_v20 = vpop.f32.mrf.mxu0 }
 0x156   :  { %v378_v21 = vadd.f32 %v5861_v28, %v377_v20  ;;  %5073 = vmatprep.mubr.msk.f32.mxu1 %vm663_vm0, %v611_v19 }
 0x157   :  { %v379_v22 = vpop.f32.mrf.mxu0 }
 0x158   :  { %v612_v24 = vmax.f32 %v378_v21, 0.0 }
 0x159   :  { %v382_v25 = vpop.f32.mrf.mxu0 }
 0x15a   :  { %v383_v27 = vadd.f32 %v5861_v28, %v382_v25  ;;  %5074 = vmatmul.mubr.msk.f32.vlgmr.msra.gmra.mxu1 %vm663_vm0, %v612_v24  ;;  %v1595_v24 = vld [vmem:[%s8093_s3 + $0x130] sm:$0xff] }
 0x15b   :  { %v384_v29 = vpop.f32.mrf.mxu0  ;;  %5080 = vmatpush3.msra.mxu1 %v1281_v14 }
 0x15c   :  { %v613_v31 = vmax.f32 %v383_v27, 0.0  ;;  %5081 = vmatprep.subr.mxu1 %v1280_v26  ;;  %v1594_v27 = vld [vmem:[%s8093_s3 + $0x128] sm:$0xff] }
 0x15d   :  { %v387_v32 = vpop.f32.mrf.mxu0  ;;  %5082 = vmatpush3.msra.mxu1 %v1280_v26 }
 0x15e   :  { %v388_v34 = vadd.f32 %v5861_v28, %v387_v32  ;;  %5076 = vmatprep.mubr.msk.f32.mxu1 %vm663_vm0, %v613_v31  ;;  %5083 = vmatprep.subr.mxu1 %v1279_v30  ;;  %v1593_v31 = vld [vmem:[%s8093_s3 + $0x120] sm:$0xff] }
 0x15f   :  { %v389_v35 = vpop.f32.mrf.mxu0  ;;  %5084 = vmatpush3.msra.mxu1 %v1279_v30 }
 0x160   :  { %v614_v37 = vmax.f32 %v388_v34, 0.0  ;;  %5085 = vmatprep.subr.mxu1 %v1278_v33  ;;  %v1701_v34 = vld [vmem:[%s8093_s3 + $0x158] sm:$0xff] }
 0x161   :  { %v392_v38 = vpop.f32.mrf.mxu0  ;;  %5086 = vmatpush3.msra.mxu1 %v1278_v33 }
 0x162   :  { %v393_v39 = vadd.f32 %v5861_v28, %v392_v38  ;;  %5077 = vmatmul.mubr.msk.f32.gmra.mxu1 %vm663_vm0, %v614_v37  ;;  %5093 = vmatprep.subr.mxu1 %v1386_v36 }
 0x163   :  { %v394_v40 = vpop.f32.mrf.mxu0 }
 0x164   :  { %v615_v41 = vmax.f32 %v393_v39, 0.0 }
 0x165   :  { %v397_v42 = vpop.f32.mrf.mxu0 }
 0x166   :  { %v398_v43 = vadd.f32 %v5861_v28, %v397_v42  ;;  %5087 = vmatprep.mubr.msk.f32.mxu1 %vm663_vm0, %v615_v41 }
 0x167   :  { %v399_v44 = vpop.f32.mrf.mxu0 }
 0x168   :  { %v616_v45 = vmax.f32 %v398_v43, 0.0 }
 0x169   :  { %v402_v46 = vpop.f32.mrf.mxu0 }
 0x16a   :  { %v403_v48 = vadd.f32 %v5861_v28, %v402_v46  ;;  %5088 = vmatmul.mubr.msk.f32.vlgmr.msra.gmra.mxu1 %vm663_vm0, %v616_v45  ;;  %v1700_v45 = vld [vmem:[%s8093_s3 + $0x150] sm:$0xff] }
 0x16b   :  { %v404_v49 = vpop.f32.mrf.mxu0  ;;  %5094 = vmatpush3.msra.mxu1 %v1386_v36 }
 0x16c   :  { %v617_v51 = vmax.f32 %v403_v48, 0.0  ;;  %5095 = vmatprep.subr.mxu1 %v1385_v47  ;;  %v1699_v48 = vld [vmem:[%s8093_s3 + $0x148] sm:$0xff] }
 0x16d   :  { %v407_v23 = vpop.f32.mrf.mxu0  ;;  %5096 = vmatpush3.msra.mxu1 %v1385_v47 }
 0x16e   :  { %v408_v53 = vadd.f32 %v5861_v28, %v407_v23  ;;  %5090 = vmatprep.mubr.msk.f32.mxu1 %vm663_vm0, %v617_v51  ;;  %5097 = vmatprep.subr.mxu1 %v1384_v50  ;;  %v1698_v51 = vld [vmem:[%s8093_s3 + $0x140] sm:$0xff] }
 0x16f   :  { %v409_v54 = vpop.f32.mrf.mxu0  ;;  %5098 = vmatpush3.msra.mxu1 %v1384_v50 }
 0x170   :  { %v618_v56 = vmax.f32 %v408_v53, 0.0  ;;  %5099 = vmatprep.subr.mxu1 %v1383_v52  ;;  %v1806_v53 = vld [vmem:[%s8093_s3 + $0x178] sm:$0xff] }
 0x171   :  { %v412_v57 = vpop.f32.mrf.mxu0  ;;  %5100 = vmatpush3.msra.mxu1 %v1383_v52 }
 0x172   :  { %v413_v58 = vadd.f32 %v5861_v28, %v412_v57  ;;  %5091 = vmatmul.mubr.msk.f32.gmra.mxu1 %vm663_vm0, %v618_v56  ;;  %5107 = vmatprep.subr.mxu1 %v1491_v55 }
 0x173   :  { %v414_v59 = vpop.f32.mrf.mxu0 }
 0x174   :  { %v619_v60 = vmax.f32 %v413_v58, 0.0 }
 0x175   :  { %v417_v61 = vpop.f32.mrf.mxu0 }
 0x176   :  { %v418_v62 = vadd.f32 %v5861_v28, %v417_v61  ;;  %5101 = vmatprep.mubr.msk.f32.mxu1 %vm663_vm0, %v619_v60 }
 0x177   :  { %v419_v63 = vpop.f32.mrf.mxu0 }
 0x178   :  { %v620_v0 = vmax.f32 %v418_v62, 0.0 }
 0x179   :  { %v422_v2 = vpop.f32.mrf.mxu0 }
 0x17a   :  { %v423_v4 = vadd.f32 %v5861_v28, %v422_v2  ;;  %5102 = vmatmul.mubr.msk.f32.vlgmr.msra.gmra.mxu1 %vm663_vm0, %v620_v0  ;;  %v1805_v0 = vld [vmem:[%s8093_s3 + $0x170] sm:$0xff] }
 0x17b   :  { %v424_v5 = vpop.f32.mrf.mxu0  ;;  %5108 = vmatpush3.msra.mxu1 %v1491_v55 }
 0x17c   :  { %v621_v7 = vmax.f32 %v423_v4, 0.0  ;;  %5109 = vmatprep.subr.mxu1 %v1490_v3  ;;  %v1804_v4 = vld [vmem:[%s8093_s3 + $0x168] sm:$0xff] }
 0x17d   :  { %v427_v8 = vpop.f32.mrf.mxu0  ;;  %5110 = vmatpush3.msra.mxu1 %v1490_v3 }
 0x17e   :  { %v428_v10 = vadd.f32 %v5861_v28, %v427_v8  ;;  %5104 = vmatprep.mubr.msk.f32.mxu1 %vm663_vm0, %v621_v7  ;;  %5111 = vmatprep.subr.mxu1 %v1489_v6  ;;  %v1803_v7 = vld [vmem:[%s8093_s3 + $0x160] sm:$0xff] }
 0x17f   :  { %v429_v11 = vpop.f32.mrf.mxu0  ;;  %5112 = vmatpush3.msra.mxu1 %v1489_v6 }
 0x180   :  { %v622_v13 = vmax.f32 %v428_v10, 0.0  ;;  %5113 = vmatprep.subr.mxu1 %v1488_v9  ;;  %v1911_v10 = vld [vmem:[%s8093_s3 + $0x198] sm:$0xff] }
 0x181   :  { %v432_v14 = vpop.f32.mrf.mxu0  ;;  %5114 = vmatpush3.msra.mxu1 %v1488_v9 }
 0x182   :  { %v433_v15 = vadd.f32 %v5861_v28, %v432_v14  ;;  %5105 = vmatmul.mubr.msk.f32.gmra.mxu1 %vm663_vm0, %v622_v13  ;;  %5121 = vmatprep.subr.mxu1 %v1596_v12 }
 0x183   :  { %v434_v16 = vpop.f32.mrf.mxu0 }
 0x184   :  { %v623_v17 = vmax.f32 %v433_v15, 0.0 }
 0x185   :  { %v437_v18 = vpop.f32.mrf.mxu0 }
 0x186   :  { %v438_v19 = vadd.f32 %v5861_v28, %v437_v18  ;;  %5115 = vmatprep.mubr.msk.f32.mxu1 %vm663_vm0, %v623_v17 }
 0x187   :  { %v439_v20 = vpop.f32.mrf.mxu0 }
 0x188   :  { %v624_v21 = vmax.f32 %v438_v19, 0.0 }
 0x189   :  { %v442_v22 = vpop.f32.mrf.mxu0 }
 0x18a   :  { %v443_v25 = vadd.f32 %v5861_v28, %v442_v22  ;;  %5116 = vmatmul.mubr.msk.f32.vlgmr.msra.gmra.mxu1 %vm663_vm0, %v624_v21  ;;  %v1910_v21 = vld [vmem:[%s8093_s3 + $0x190] sm:$0xff] }
 0x18b   :  { %v444_v26 = vpop.f32.mrf.mxu0  ;;  %5122 = vmatpush3.msra.mxu1 %v1596_v12 }
 0x18c   :  { %v625_v29 = vmax.f32 %v443_v25, 0.0  ;;  %5123 = vmatprep.subr.mxu1 %v1595_v24  ;;  %v1909_v25 = vld [vmem:[%s8093_s3 + $0x188] sm:$0xff] }
 0x18d   :  { %v447_v30 = vpop.f32.mrf.mxu0  ;;  %5124 = vmatpush3.msra.mxu1 %v1595_v24 }
 0x18e   :  { %v448_v32 = vadd.f32 %v5861_v28, %v447_v30  ;;  %5118 = vmatprep.mubr.msk.f32.mxu1 %vm663_vm0, %v625_v29  ;;  %5125 = vmatprep.subr.mxu1 %v1594_v27  ;;  %v1908_v29 = vld [vmem:[%s8093_s3 + $0x180] sm:$0xff] }
 0x18f   :  { %v449_v33 = vpop.f32.mrf.mxu0  ;;  %5126 = vmatpush3.msra.mxu1 %v1594_v27 }
 0x190   :  { %v626_v35 = vmax.f32 %v448_v32, 0.0  ;;  %5127 = vmatprep.subr.mxu1 %v1593_v31  ;;  %v2016_v32 = vld [vmem:[%s8093_s3 + $0x1b8] sm:$0xff] }
 0x191   :  { %v452_v36 = vpop.f32.mrf.mxu0  ;;  %5128 = vmatpush3.msra.mxu1 %v1593_v31 }
 0x192   :  { %v453_v37 = vadd.f32 %v5861_v28, %v452_v36  ;;  %5119 = vmatmul.mubr.msk.f32.gmra.mxu1 %vm663_vm0, %v626_v35  ;;  %5135 = vmatprep.subr.mxu1 %v1701_v34 }
 0x193   :  { %v454_v38 = vpop.f32.mrf.mxu0 }
 0x194   :  { %v627_v39 = vmax.f32 %v453_v37, 0.0 }
 0x195   :  { %v457_v40 = vpop.f32.mrf.mxu0 }
 0x196   :  { %v458_v41 = vadd.f32 %v5861_v28, %v457_v40  ;;  %5129 = vmatprep.mubr.msk.f32.mxu1 %vm663_vm0, %v627_v39 }
 0x197   :  { %v459_v42 = vpop.f32.mrf.mxu0 }
 0x198   :  { %v628_v43 = vmax.f32 %v458_v41, 0.0 }
 0x199   :  { %v462_v44 = vpop.f32.mrf.mxu0 }
 0x19a   :  { %v463_v46 = vadd.f32 %v5861_v28, %v462_v44  ;;  %5130 = vmatmul.mubr.msk.f32.vlgmr.msra.gmra.mxu1 %vm663_vm0, %v628_v43  ;;  %v2015_v43 = vld [vmem:[%s8093_s3 + $0x1b0] sm:$0xff] }
 0x19b   :  { %v464_v47 = vpop.f32.mrf.mxu0  ;;  %5136 = vmatpush3.msra.mxu1 %v1701_v34 }
 0x19c   :  { %v629_v49 = vmax.f32 %v463_v46, 0.0  ;;  %5137 = vmatprep.subr.mxu1 %v1700_v45  ;;  %v2014_v46 = vld [vmem:[%s8093_s3 + $0x1a8] sm:$0xff] }
 0x19d   :  { %v467_v50 = vpop.f32.mrf.mxu0  ;;  %5138 = vmatpush3.msra.mxu1 %v1700_v45 }
 0x19e   :  { %v468_v23 = vadd.f32 %v5861_v28, %v467_v50  ;;  %5132 = vmatprep.mubr.msk.f32.mxu1 %vm663_vm0, %v629_v49  ;;  %5139 = vmatprep.subr.mxu1 %v1699_v48  ;;  %v2013_v49 = vld [vmem:[%s8093_s3 + $0x1a0] sm:$0xff] }
 0x19f   :  { %v469_v52 = vpop.f32.mrf.mxu0  ;;  %5140 = vmatpush3.msra.mxu1 %v1699_v48 }
 0x1a0   :  { %v630_v54 = vmax.f32 %v468_v23, 0.0  ;;  %5141 = vmatprep.subr.mxu1 %v1698_v51  ;;  %v2121_v23 = vld [vmem:[%s8093_s3 + $0x1d8] sm:$0xff] }
 0x1a1   :  { %v472_v55 = vpop.f32.mrf.mxu0  ;;  %5142 = vmatpush3.msra.mxu1 %v1698_v51 }
 0x1a2   :  { %v473_v56 = vadd.f32 %v5861_v28, %v472_v55  ;;  %5133 = vmatmul.mubr.msk.f32.gmra.mxu1 %vm663_vm0, %v630_v54  ;;  %5149 = vmatprep.subr.mxu1 %v1806_v53 }
 0x1a3   :  { %v474_v57 = vpop.f32.mrf.mxu0 }
 0x1a4   :  { %v631_v58 = vmax.f32 %v473_v56, 0.0 }
 0x1a5   :  { %v477_v59 = vpop.f32.mrf.mxu0 }
 0x1a6   :  { %v478_v60 = vadd.f32 %v5861_v28, %v477_v59  ;;  %5143 = vmatprep.mubr.msk.f32.mxu1 %vm663_vm0, %v631_v58 }
 0x1a7   :  { %v479_v61 = vpop.f32.mrf.mxu0 }
 0x1a8   :  { %v632_v62 = vmax.f32 %v478_v60, 0.0 }
 0x1a9   :  { %v482_v63 = vpop.f32.mrf.mxu0 }
 0x1aa   :  { %v483_v2 = vadd.f32 %v5861_v28, %v482_v63  ;;  %5144 = vmatmul.mubr.msk.f32.vlgmr.msra.gmra.mxu1 %vm663_vm0, %v632_v62  ;;  %v2120_v62 = vld [vmem:[%s8093_s3 + $0x1d0] sm:$0xff] }
 0x1ab   :  { %v484_v3 = vpop.f32.mrf.mxu0  ;;  %5150 = vmatpush3.msra.mxu1 %v1806_v53 }
 0x1ac   :  { %v633_v5 = vmax.f32 %v483_v2, 0.0  ;;  %5151 = vmatprep.subr.mxu1 %v1805_v0  ;;  %v2119_v2 = vld [vmem:[%s8093_s3 + $0x1c8] sm:$0xff] }
 0x1ad   :  { %v487_v6 = vpop.f32.mrf.mxu0  ;;  %5152 = vmatpush3.msra.mxu1 %v1805_v0 }
 0x1ae   :  { %v488_v8 = vadd.f32 %v5861_v28, %v487_v6  ;;  %5146 = vmatprep.mubr.msk.f32.mxu1 %vm663_vm0, %v633_v5  ;;  %5153 = vmatprep.subr.mxu1 %v1804_v4  ;;  %v2118_v6 = vld [vmem:[%s8093_s3 + $0x1c0] sm:$0xff] }
 0x1af   :  { %v489_v9 = vpop.f32.mrf.mxu0  ;;  %5154 = vmatpush3.msra.mxu1 %v1804_v4 }
 0x1b0   :  { %v634_v11 = vmax.f32 %v488_v8, 0.0  ;;  %5155 = vmatprep.subr.mxu1 %v1803_v7  ;;  %v2226_v9 = vld [vmem:[%s8093_s3 + $0x1f8] sm:$0xff] }
 0x1b1   :  { %v492_v12 = vpop.f32.mrf.mxu0  ;;  %5156 = vmatpush3.msra.mxu1 %v1803_v7 }
 0x1b2   :  { %v493_v13 = vadd.f32 %v5861_v28, %v492_v12  ;;  %5147 = vmatmul.mubr.msk.f32.gmra.mxu1 %vm663_vm0, %v634_v11  ;;  %5163 = vmatprep.subr.mxu1 %v1911_v10 }
 0x1b3   :  { %v494_v14 = vpop.f32.mrf.mxu0 }
 0x1b4   :  { %v635_v15 = vmax.f32 %v493_v13, 0.0 }
 0x1b5   :  { %v497_v16 = vpop.f32.mrf.mxu0 }
 0x1b6   :  { %v498_v17 = vadd.f32 %v5861_v28, %v497_v16  ;;  %5157 = vmatprep.mubr.msk.f32.mxu1 %vm663_vm0, %v635_v15 }
 0x1b7   :  { %v499_v18 = vpop.f32.mrf.mxu0 }
 0x1b8   :  { %v636_v19 = vmax.f32 %v498_v17, 0.0 }
 0x1b9   :  { %v502_v20 = vpop.f32.mrf.mxu0 }
 0x1ba   :  { %v503_v22 = vadd.f32 %v5861_v28, %v502_v20  ;;  %5158 = vmatmul.mubr.msk.f32.vlgmr.msra.gmra.mxu1 %vm663_vm0, %v636_v19 }
 0x1bb   :  { %v504_v24 = vpop.f32.mrf.mxu0  ;;  %5164 = vmatpush3.msra.mxu1 %v1911_v10 }
 0x1bc   :  { %v637_v26 = vmax.f32 %v503_v22, 0.0  ;;  %5165 = vmatprep.subr.mxu1 %v1910_v21 }
 0x1bd   :  { %v507_v27 = vpop.f32.mrf.mxu0  ;;  %5166 = vmatpush3.msra.mxu1 %v1910_v21 }
 0x1be   :  { %v508_v30 = vadd.f32 %v5861_v28, %v507_v27  ;;  %5160 = vmatprep.mubr.msk.f32.mxu1 %vm663_vm0, %v637_v26  ;;  %5167 = vmatprep.subr.mxu1 %v1909_v25 }
 0x1bf   :  { %v509_v31 = vpop.f32.mrf.mxu0  ;;  %5168 = vmatpush3.msra.mxu1 %v1909_v25 }
 0x1c0   :  { %v638_v33 = vmax.f32 %v508_v30, 0.0  ;;  %5169 = vmatprep.subr.mxu1 %v1908_v29 }
 0x1c1   :  { %v512_v34 = vpop.f32.mrf.mxu0  ;;  %5170 = vmatpush3.msra.mxu1 %v1908_v29  ;;  %v2225_v29 = vld [vmem:[%s8093_s3 + $0x1f0] sm:$0xff] }
 0x1c2   :  { %v513_v35 = vadd.f32 %v5861_v28, %v512_v34  ;;  %5161 = vmatmul.mubr.msk.f32.gmra.mxu1 %vm663_vm0, %v638_v33  ;;  %5177 = vmatprep.subr.mxu1 %v2016_v32  ;;  %v2224_v34 = vld [vmem:[%s8093_s3 + $0x1e8] sm:$0xff] }
 0x1c3   :  { %v514_v36 = vpop.f32.mrf.mxu0 }
 0x1c4   :  { %v639_v37 = vmax.f32 %v513_v35, 0.0 }
 0x1c5   :  { %v517_v38 = vpop.f32.mrf.mxu0 }
 0x1c6   :  { %v518_v39 = vadd.f32 %v5861_v28, %v517_v38  ;;  %5171 = vmatprep.mubr.msk.f32.mxu1 %vm663_vm0, %v639_v37 }
 0x1c7   :  { %v519_v40 = vpop.f32.mrf.mxu0 }
 0x1c8   :  { %v640_v41 = vmax.f32 %v518_v39, 0.0  ;;  %v5302_v39 = vld [vmem:[%s8092_s2] ss:$0 sm:$0xff] }
 0x1c9   :  { %v522_v42 = vpop.f32.mrf.mxu0 }
 0x1ca   :  { %v523_v44 = vadd.f32 %v5861_v28, %v522_v42  ;;  %5172 = vmatmul.mubr.msk.f32.vlgmr.msra.gmra.mxu1 %vm663_vm0, %v640_v41 }
 0x1cb   :  { %v524_v45 = vpop.f32.mrf.mxu0  ;;  %5178 = vmatpush3.msra.mxu1 %v2016_v32 }
 0x1cc   :  { %v641_v47 = vmax.f32 %v523_v44, 0.0  ;;  %5179 = vmatprep.subr.mxu1 %v2015_v43 }
 0x1cd   :  { %v527_v48 = vpop.f32.mrf.mxu0  ;;  %5180 = vmatpush3.msra.mxu1 %v2015_v43 }
 0x1ce   :  { %v528_v50 = vadd.f32 %v5861_v28, %v527_v48  ;;  %5174 = vmatprep.mubr.msk.f32.mxu1 %vm663_vm0, %v641_v47  ;;  %5181 = vmatprep.subr.mxu1 %v2014_v46 }
 0x1cf   :  { %v529_v51 = vpop.f32.mrf.mxu0  ;;  %5182 = vmatpush3.msra.mxu1 %v2014_v46 }
 0x1d0   :  { %v642_v52 = vmax.f32 %v528_v50, 0.0  ;;  %5183 = vmatprep.subr.mxu1 %v2013_v49 }
 0x1d1   :  { %v532_v53 = vpop.f32.mrf.mxu0  ;;  %5184 = vmatpush3.msra.mxu1 %v2013_v49 }
 0x1d2   :  { %v533_v54 = vadd.f32 %v5861_v28, %v532_v53  ;;  %5175 = vmatmul.mubr.msk.f32.gmra.mxu1 %vm663_vm0, %v642_v52  ;;  %5191 = vmatprep.subr.mxu1 %v2121_v23 }
 0x1d3   :  { %v534_v55 = vpop.f32.mrf.mxu0 }
 0x1d4   :  { %v643_v56 = vmax.f32 %v533_v54, 0.0 }
 0x1d5   :  { %v537_v57 = vpop.f32.mrf.mxu0 }
 0x1d6   :  { %v538_v58 = vadd.f32 %v5861_v28, %v537_v57  ;;  %5185 = vmatprep.mubr.msk.f32.mxu1 %vm663_vm0, %v643_v56 }
 0x1d7   :  { %v539_v59 = vpop.f32.mrf.mxu0 }
 0x1d8   :  { %v644_v60 = vmax.f32 %v538_v58, 0.0 }
 0x1d9   :  { %v542_v61 = vpop.f32.mrf.mxu0 }
 0x1da   :  { %v543_v63 = vadd.f32 %v5861_v28, %v542_v61  ;;  %5186 = vmatmul.mubr.msk.f32.vlgmr.msra.gmra.mxu1 %vm663_vm0, %v644_v60  ;;  %v5005_v4 = vpop.f32.mrf.mxu1 }
 0x1db   :  { %v544_v0 = vpop.f32.mrf.mxu0  ;;  %5192 = vmatpush3.msra.mxu1 %v2121_v23 }
 0x1dc   :  { %v645_v3 = vmax.f32 %v543_v63, 0.0  ;;  %5193 = vmatprep.subr.mxu1 %v2120_v62  ;;  %v742_v10 = vpop.f32.mrf.mxu1 }
 0x1dd   :  { %v547_v5 = vpop.f32.mrf.mxu0  ;;  %5194 = vmatpush3.msra.mxu1 %v2120_v62 }
 0x1de   :  { %v548_v7 = vadd.f32 %v5861_v28, %v547_v5  ;;  %5188 = vmatprep.mubr.msk.f32.mxu1 %vm663_vm0, %v645_v3  ;;  %5195 = vmatprep.subr.mxu1 %v2119_v2 }
 0x1df   :  { %v549_v8 = vpop.f32.mrf.mxu0  ;;  %5196 = vmatpush3.msra.mxu1 %v2119_v2 }
 0x1e0   :  { %v646_v11 = vmax.f32 %v548_v7, 0.0  ;;  %5197 = vmatprep.subr.mxu1 %v2118_v6 }
 0x1e1   :  { %v552_v12 = vpop.f32.mrf.mxu0  ;;  %5198 = vmatpush3.msra.mxu1 %v2118_v6 }
 0x1e2   :  { %v553_v13 = vadd.f32 %v5861_v28, %v552_v12  ;;  %v5008_v14 = vpop.f32.mrf.mxu1  ;;  %5189 = vmatmul.mubr.msk.f32.gmra.mxu1 %vm663_vm0, %v646_v11  ;;  %5205 = vmatprep.subr.mxu1 %v2226_v9 }
 0x1e3   :  { %v554_v15 = vpop.f32.mrf.mxu0 }
 0x1e4   :  { %v647_v16 = vmax.f32 %v553_v13, 0.0  ;;  %v752_v17 = vpop.f32.mrf.mxu1 }
 0x1e5   :  { %v557_v18 = vpop.f32.mrf.mxu0 }
 0x1e6   :  { %v558_v19 = vadd.f32 %v5861_v28, %v557_v18  ;;  %v5019_v20 = vpop.f32.mrf.mxu1  ;;  %5199 = vmatprep.mubr.msk.f32.mxu1 %vm663_vm0, %v647_v16 }
 0x1e7   :  { %v845_v21 = vadd.f32 %v5019_v20, %v5005_v4  ;;  %v559_v22 = vpop.f32.mrf.mxu0 }
 0x1e8   :  { %v648_v24 = vmax.f32 %v558_v19, 0.0  ;;  %v839_v25 = vpop.f32.mrf.mxu1 }
 0x1e9   :  { %v840_v26 = vadd.f32 %v839_v25, %v742_v10  ;;  %v562_v27 = vpop.f32.mrf.mxu0 }
 0x1ea   :  { %v563_v30 = vadd.f32 %v5861_v28, %v562_v27  ;;  %v5022_v31 = vpop.f32.mrf.mxu1  ;;  %5200 = vmatmul.mubr.msk.f32.vlgmr.msra.gmra.mxu1 %vm663_vm0, %v648_v24  ;;  %v2223_v28 = vld [vmem:[%s8093_s3 + $0x1e0] sm:$0xff] }
 0x1eb   :  { %v855_v32 = vadd.f32 %v5022_v31, %v5008_v14  ;;  %v564_v33 = vpop.f32.mrf.mxu0  ;;  %5206 = vmatpush3.msra.mxu1 %v2226_v9  ;;  %v2358_v31 = vld [vmem:[%s8095_s5 + $0x78] sm:$0xff] }
 0x1ec   :  { %v649_v35 = vmax.f32 %v563_v30, 0.0  ;;  %v849_v36 = vpop.f32.mrf.mxu1  ;;  %5207 = vmatprep.subr.mxu1 %v2225_v29  ;;  %v2357_v33 = vld [vmem:[%s8095_s5 + $0x70] sm:$0xff] }
 0x1ed   :  { %v850_v37 = vadd.f32 %v849_v36, %v752_v17  ;;  %v567_v38 = vpop.f32.mrf.mxu0  ;;  %5208 = vmatpush3.msra.mxu1 %v2225_v29  ;;  %v2356_v36 = vld [vmem:[%s8095_s5 + $0x68] sm:$0xff] }
 0x1ee   :  { %v568_v40 = vadd.f32 %v5302_v39, %v567_v38  ;;  %v5033_v41 = vpop.f32.mrf.mxu1  ;;  %5202 = vmatprep.mubr.msk.f32.mxu1 %vm663_vm0, %v649_v35  ;;  %5209 = vmatprep.subr.mxu1 %v2224_v34  ;;  %v2355_v38 = vld [vmem:[%s8095_s5 + $0x60] sm:$0xff] }
 0x1ef   :  { %v960_v42 = vadd.f32 %v5033_v41, %v845_v21  ;;  %v569_v43 = vpop.f32.mrf.mxu0  ;;  %5210 = vmatpush3.msra.mxu1 %v2224_v34  ;;  %v2352_v41 = vld [vmem:[%s8095_s5 + $0x48] sm:$0xff] }
 0x1f0   :  { %v650_v44 = vmax.f32 %v568_v40, 0.0  ;;  %v940_v45 = vpop.f32.mrf.mxu1  ;;  %5211 = vmatprep.subr.mxu1 %v2223_v28 }
 0x1f1   :  { %v959_v46 = vadd.f32 %v940_v45, %v840_v26  ;;  %v572_v47 = vpop.f32.mrf.mxu0  ;;  %5212 = vmatpush3.msra.mxu1 %v2223_v28  ;;  %v2354_v28 = vld [vmem:[%s8095_s5 + $0x58] sm:$0xff] }
 0x1f2   :  { %v573_v48 = vadd.f32 %v5302_v39, %v572_v47  ;;  %v5036_v49 = vpop.f32.mrf.mxu1  ;;  %5203 = vmatmul.mubr.msk.f32.gmra.mxu1 %vm663_vm0, %v650_v44  ;;  %5219 = vmatprep.subr.mxu1 %v5325_v1 }
 0x1f3   :  { %v962_v50 = vadd.f32 %v5036_v49, %v855_v32  ;;  %v574_v51 = vpop.f32.mrf.mxu0 }
 0x1f4   :  { %v651_v23 = vmax.f32 %v573_v48, 0.0  ;;  %v950_v52 = vpop.f32.mrf.mxu1 }
 0x1f5   :  { %v961_v53 = vadd.f32 %v950_v52, %v850_v37  ;;  %v577_v54 = vpop.f32.mrf.mxu0 }
 0x1f6   :  { %v578_v55 = vadd.f32 %v5302_v39, %v577_v54  ;;  %5213 = vmatprep.mubr.msk.f32.mxu1 %vm663_vm0, %v651_v23 }
 0x1f7   :  { %v579_v56 = vpop.f32.mrf.mxu0 }
 0x1f8   :  { %v652_v57 = vmax.f32 %v578_v55, 0.0 }
 0x1f9   :  { %v582_v58 = vpop.f32.mrf.mxu0 }
 0x1fa   :  { %v583_v59 = vadd.f32 %v5302_v39, %v582_v58  ;;  %v5047_v60 = vpop.f32.mrf.mxu1  ;;  %5214 = vmatmul.mubr.msk.f32.vlgmr.msra.gmra.mxu1 %vm663_vm0, %v652_v57 }
 0x1fb   :  { %v1065_v61 = vadd.f32 %v5047_v60, %v960_v42  ;;  %v584_v62 = vpop.f32.mrf.mxu0  ;;  %5220 = vmatpush3.msra.mxu1 %v2358_v31  ;;  %v2351_v42 = vld [vmem:[%s8095_s5 + $0x40] sm:$0xff]  ;;  %v2742_v60 = vld [vmem:[%s8097_s7 + $0x1f8] sm:$0xff] }
 0x1fc   :  { %v653_v63 = vmax.f32 %v583_v59, 0.0  ;;  %v1045_v0 = vpop.f32.mrf.mxu1  ;;  %5221 = vmatprep.subr.mxu1 %v5325_v1  ;;  %v2734_v62 = vld [vmem:[%s8097_s7 + $0x1b8] sm:$0xff]  ;;  %3326 = vmatprep.subr.mxu0 %v2742_v60  ;;  %v2344_v60 = vld [vmem:[%s8095_s5 + $0x8] sm:$0xff] }
 0x1fd   :  { %v1064_v2 = vadd.f32 %v1045_v0, %v959_v46  ;;  %v587_v3 = vpop.f32.mrf.mxu0  ;;  %5222 = vmatpush3.msra.mxu1 %v2357_v33  ;;  %v2733_v0 = vld [vmem:[%s8097_s7 + $0x1b0] sm:$0xff] }
 0x1fe   :  { %v588_v4 = vadd.f32 %v5302_v39, %v587_v3  ;;  %5216 = vmatprep.mubr.msk.f32.mxu1 %vm663_vm0, %v653_v63  ;;  %5223 = vmatprep.subr.mxu1 %v5325_v1  ;;  %v2353_v39 = vld [vmem:[%s8095_s5 + $0x50] sm:$0xff]  ;;  %v2726_v3 = vld [vmem:[%s8097_s7 + $0x178] sm:$0xff] }
 0x1ff   :  { %v589_v5 = vpop.f32.mrf.mxu0  ;;  %5224 = vmatpush3.msra.mxu1 %v2356_v36 }
 0x200   :  { %v654_v6 = vmax.f32 %v588_v4, 0.0  ;;  %5225 = vmatprep.subr.mxu1 %v5325_v1  ;;  %v2725_v4 = vld [vmem:[%s8097_s7 + $0x170] sm:$0xff]  ;;  %v2718_v5 = vld [vmem:[%s8097_s7 + $0x138] sm:$0xff] }
 0x201   :  { %5226 = vmatpush3.msra.mxu1 %v2355_v38 }
 0x202   :  { %v5050_v7 = vpop.f32.mrf.mxu1  ;;  %5217 = vmatmul.mubr.msk.f32.gmra.mxu1 %vm663_vm0, %v654_v6  ;;  %5227 = vmatprep.subr.mxu1 %v5325_v1  ;;  %v2717_v6 = vld [vmem:[%s8097_s7 + $0x130] sm:$0xff] }
 0x203   :  { %v1067_v8 = vadd.f32 %v5050_v7, %v962_v50  ;;  %5228 = vmatpush3.msra.mxu1 %v2354_v28  ;;  %5235 = vmatprep.mubr.msk.f32.mxu1 %vm5326_vm1, %v5325_v1 }
 0x204   :  { %v1055_v9 = vpop.f32.mrf.mxu1  ;;  %5229 = vmatprep.subr.mxu1 %v5325_v1 }
 0x205   :  { %v1066_v10 = vadd.f32 %v1055_v9, %v961_v53  ;;  %5230 = vmatpush3.msra.mxu1 %v2353_v39 }
 0x206   :  { %5231 = vmatprep.subr.mxu1 %v5325_v1 }
 0x207   :  { %5232 = vmatpush3.msra.mxu1 %v2352_v41 }
 0x208   :  { %5233 = vmatprep.subr.mxu1 %v5325_v1 }
 0x209   :  { %5234 = vmatpush3.msra.mxu1 %v2351_v42 }
 0x20a   :  { %v5061_v11 = vpop.f32.mrf.mxu1  ;;  %5238 = vmatprep.subr.mxu1 %v5325_v1 }
 0x20b   :  { %v6233_v12 = vadd.f32 %v5061_v11, %v1065_v61  ;;  %v2741_v61 = vld [vmem:[%s8097_s7 + $0x1f0] sm:$0xff] }
 0x20c   :  { %v1150_v13 = vpop.f32.mrf.mxu1  ;;  %3327 = vmatpush1.msra.mxu0 %v2741_v61 }
 0x20d   :  { %v1169_v14 = vadd.f32 %v1150_v13, %v1064_v2  ;;  %3328 = vmatprep.subr.mxu0 %v2734_v62  ;;  %v2343_v62 = vld [vmem:[%s8095_s5] sm:$0xff] }
 0x20e   :  { %3329 = vmatpush1.msra.mxu0 %v2733_v0 }
 0x20f   :  { %3330 = vmatprep.subr.mxu0 %v2726_v3  ;;  %v2512_v3 = vld [vmem:[%s8095_s5 + $0xb0] sm:$0xff] }
 0x210   :  { %3331 = vmatpush1.msra.mxu0 %v2725_v4 }
 0x211   :  { %3332 = vmatprep.subr.mxu0 %v2718_v5  ;;  %v2511_v5 = vld [vmem:[%s8095_s5 + $0xa8] sm:$0xff] }
 0x212   :  { %v5064_v15 = vpop.f32.mrf.mxu1  ;;  %3333 = vmatpush1.msra.mxu0 %v2717_v6 }
 0x213   :  { %v1172_v16 = vadd.f32 %v5064_v15, %v1067_v8 }
 0x214   :  { %v1160_v17 = vpop.f32.mrf.mxu1 }
 0x215   :  { %v1171_v18 = vadd.f32 %v1160_v17, %v1066_v10 }
 0x21a   :  { %v6235_v19 = vpop.f32.mrf.mxu1 }
 0x21c   :  { %v1255_v20 = vpop.f32.mrf.mxu1 }
 0x21d   :  { %v1274_v21 = vadd.f32 %v1255_v20, %v1169_v14 }
 0x222   :  { %v5078_v22 = vpop.f32.mrf.mxu1 }
 0x223   :  { %v1277_v24 = vadd.f32 %v5078_v22, %v1172_v16 }
 0x224   :  { %v1265_v25 = vpop.f32.mrf.mxu1 }
 0x225   :  { %v1276_v26 = vadd.f32 %v1265_v25, %v1171_v18 }
 0x22a   :  { %v6237_v27 = vpop.f32.mrf.mxu1 }
 0x22c   :  { %v1360_v29 = vpop.f32.mrf.mxu1 }
 0x22d   :  { %v6239_v30 = vadd.f32 %v1360_v29, %v1274_v21  ;;  %v1275_v21 = vadd.f32 %v6235_v19, %v6233_v12 }
 0x232   :  { %v5092_v32 = vpop.f32.mrf.mxu1 }
 0x233   :  { %v1382_v34 = vadd.f32 %v5092_v32, %v1277_v24  ;;  %v1380_v24 = vadd.f32 %v6237_v27, %v1275_v21 }
 0x234   :  { %v1370_v35 = vpop.f32.mrf.mxu1 }
 0x235   :  { %v1381_v37 = vadd.f32 %v1370_v35, %v1276_v26 }
 0x23a   :  { %v5103_v40 = vpop.f32.mrf.mxu1 }
 0x23b   :  { %v1485_v25 = vadd.f32 %v5103_v40, %v1380_v24  ;;  %v6329_v40 = vld [vmem:[%s8094_s4] ss:$0 sm:$0xff]  ;;  %v2594_v24 = vld [vmem:[%s8095_s5 + $0xf0] sm:$0xff] }
 0x23c   :  { %v6272_v43 = vpop.f32.mrf.mxu1 }
 0x23d   :  { %v1484_v38 = vadd.f32 %v6272_v43, %v6239_v30  ;;  %v2350_v30 = vld [vmem:[%s8095_s5 + $0x38] sm:$0xff] }
 0x242   :  { %v5106_v44 = vpop.f32.mrf.mxu1 }
 0x243   :  { %v1487_v45 = vadd.f32 %v5106_v44, %v1382_v34 }
 0x244   :  { %v1475_v46 = vpop.f32.mrf.mxu1 }
 0x245   :  { %v1486_v47 = vadd.f32 %v1475_v46, %v1381_v37 }
 0x24a   :  { %v5117_v48 = vpop.f32.mrf.mxu1 }
 0x24b   :  { %v1590_v29 = vadd.f32 %v5117_v48, %v1485_v25  ;;  %v2349_v48 = vld [vmem:[%s8095_s5 + $0x30] sm:$0xff] }
 0x24c   :  { %v1570_v49 = vpop.f32.mrf.mxu1 }
 0x24d   :  { %v1589_v28 = vadd.f32 %v1570_v49, %v1484_v38  ;;  %v2800_v38 = vld [vmem:[%s8097_s7 + $0x3c8] sm:$0xff] }
 0x252   :  { %v5120_v50 = vpop.f32.mrf.mxu1 }
 0x253   :  { %v1592_v51 = vadd.f32 %v5120_v50, %v1487_v45  ;;  %v2348_v50 = vld [vmem:[%s8095_s5 + $0x28] sm:$0xff] }
 0x254   :  { %v1580_v23 = vpop.f32.mrf.mxu1 }
 0x255   :  { %v6277_v52 = vadd.f32 %v1580_v23, %v1486_v47 }
 0x25a   :  { %v5131_v53 = vpop.f32.mrf.mxu1 }
 0x25b   :  { %v1695_v32 = vadd.f32 %v5131_v53, %v1590_v29  ;;  %v2347_v53 = vld [vmem:[%s8095_s5 + $0x20] sm:$0xff] }
 0x25c   :  { %v1675_v54 = vpop.f32.mrf.mxu1 }
 0x25d   :  { %v1694_v41 = vadd.f32 %v1675_v54, %v1589_v28  ;;  %v2791_v28 = vld [vmem:[%s8097_s7 + $0x380] sm:$0xff] }
 0x262   :  { %v5134_v55 = vpop.f32.mrf.mxu1 }
 0x263   :  { %v1697_v56 = vadd.f32 %v5134_v55, %v1592_v51  ;;  %v2346_v55 = vld [vmem:[%s8095_s5 + $0x18] sm:$0xff] }
 0x264   :  { %v6279_v57 = vpop.f32.mrf.mxu1 }
 0x26a   :  { %v5145_v58 = vpop.f32.mrf.mxu1 }
 0x26b   :  { %v1800_v33 = vadd.f32 %v5145_v58, %v1695_v32  ;;  %v1696_v58 = vadd.f32 %v6279_v57, %v6277_v52 }
 0x26c   :  { %v1780_v59 = vpop.f32.mrf.mxu1 }
 0x26d   :  { %v1799_v44 = vadd.f32 %v1780_v59, %v1694_v41  ;;  %v2775_v41 = vld [vmem:[%s8097_s7 + $0x300] sm:$0xff] }
 0x272   :  { %v5148_v63 = vpop.f32.mrf.mxu1 }
 0x273   :  { %v1802_v2 = vadd.f32 %v5148_v63, %v1697_v56  ;;  %v2345_v56 = vld [vmem:[%s8095_s5 + $0x10] sm:$0xff]  ;;  %v2513_v63 = vld [vmem:[%s8095_s5 + $0xb8] sm:$0xff] }
 0x274   :  { %v6305_v7 = vpop.f32.mrf.mxu1 }
 0x275   :  { %v1801_v61 = vadd.f32 %v6305_v7, %v1696_v58 }
 0x27a   :  { %v5159_v8 = vpop.f32.mrf.mxu1 }
 0x27b   :  { %v1905_v35 = vadd.f32 %v5159_v8, %v1800_v33  ;;  %v2510_v8 = vld [vmem:[%s8095_s5 + $0xa0] sm:$0xff]  ;;  %v2589_v33 = vld [vmem:[%s8095_s5 + $0xc8] sm:$0xff] }
 0x27c   :  { %v1885_v9 = vpop.f32.mrf.mxu1 }
 0x27d   :  { %v1904_v46 = vadd.f32 %v1885_v9, %v1799_v44  ;;  %v2702_v44 = vld [vmem:[%s8097_s7 + $0xb8] sm:$0xff] }
 0x282   :  { %v5162_v10 = vpop.f32.mrf.mxu1 }
 0x283   :  { %v6307_v11 = vadd.f32 %v5162_v10, %v1802_v2  ;;  %v2509_v10 = vld [vmem:[%s8095_s5 + $0x98] sm:$0xff] }
 0x284   :  { %v6309_v13 = vpop.f32.mrf.mxu1 }
 0x285   :  { %v1906_v52 = vadd.f32 %v6309_v13, %v1801_v61  ;;  %v2508_v13 = vld [vmem:[%s8095_s5 + $0x90] sm:$0xff] }
 0x28a   :  { %v5173_v14 = vpop.f32.mrf.mxu1 }
 0x28b   :  { %v2010_v37 = vadd.f32 %v5173_v14, %v1905_v35 }
 0x28c   :  { %v1990_v15 = vpop.f32.mrf.mxu1 }
 0x28d   :  { %v2009_v43 = vadd.f32 %v1990_v15, %v1904_v46  ;;  %v2507_v15 = vld [vmem:[%s8095_s5 + $0x88] sm:$0xff]  ;;  %v2701_v46 = vld [vmem:[%s8097_s7 + $0xb0] sm:$0xff] }
 0x292   :  { %v6311_v16 = vpop.f32.mrf.mxu1 }
 0x293   :  { %v2012_v21 = vadd.f32 %v6311_v16, %v6307_v11  ;;  %v2593_v11 = vld [vmem:[%s8095_s5 + $0xe8] sm:$0xff] }
 0x294   :  { %v6313_v17 = vpop.f32.mrf.mxu1 }
 0x295   :  { %v2011_v2 = vadd.f32 %v6313_v17, %v1906_v52  ;;  %v2506_v17 = vld [vmem:[%s8095_s5 + $0x80] sm:$0xff] }
 0x29a   :  { %v5187_v18 = vpop.f32.mrf.mxu1 }
 0x29b   :  { %v2115_v12 = vadd.f32 %v5187_v18, %v2010_v37  ;;  %v2709_v37 = vld [vmem:[%s8097_s7 + $0xf0] sm:$0xff] }
 0x29c   :  { %v2095_v20 = vpop.f32.mrf.mxu1 }
 0x29d   :  { %v2114_v49 = vadd.f32 %v2095_v20, %v2009_v43  ;;  %v2595_v20 = vld [vmem:[%s8095_s5 + $0xf8] sm:$0xff]  ;;  %v2759_v43 = vld [vmem:[%s8097_s7 + $0x280] sm:$0xff] }
 0x2a2   :  { %v6317_v22 = vpop.f32.mrf.mxu1 }
 0x2a3   :  { %v2117_v25 = vadd.f32 %v6317_v22, %v2012_v21  ;;  %v2591_v22 = vld [vmem:[%s8095_s5 + $0xd8] sm:$0xff] }
 0x2a4   :  { %v6320_v26 = vpop.f32.mrf.mxu1  ;;  %v3416_v21 = vld [vmem:[%s8097_s7 + $0x518] sm:$0xff] }
 0x2a5   :  { %v2116_v4 = vadd.f32 %v6320_v26, %v2011_v2  ;;  %v2592_v26 = vld [vmem:[%s8095_s5 + $0xe0] sm:$0xff] }
 0x2a6   :  { %v4814_v2 = vld [vmem:[%s8096_s6] ss:$0 sm:$0xff] }
 0x2aa   :  { %v5201_v31 = vpop.f32.mrf.mxu1 }
 0x2ab   :  { %v2220_v39 = vadd.f32 %v5201_v31, %v2115_v12  ;;  %v2590_v31 = vld [vmem:[%s8095_s5 + $0xd0] sm:$0xff]  ;;  %v2799_v12 = vld [vmem:[%s8097_s7 + $0x3c0] sm:$0xff] }
 0x2ac   :  { %v2200_v34 = vpop.f32.mrf.mxu1 }
 0x2ad   :  { %v2219_v23 = vadd.f32 %v2200_v34, %v2114_v49  ;;  %v2588_v34 = vld [vmem:[%s8095_s5 + $0xc0] sm:$0xff]  ;;  %v2752_v49 = vld [vmem:[%s8097_s7 + $0x248] sm:$0xff] }
 0x2b2   :  { %v6322_v36 = vpop.f32.mrf.mxu1 }
 0x2b3   :  { %v2222_v16 = vadd.f32 %v6322_v36, %v2117_v25  ;;  %v2710_v36 = vld [vmem:[%s8097_s7 + $0xf8] sm:$0xff]  ;;  %v3415_v25 = vld [vmem:[%s8097_s7 + $0x510] sm:$0xff] }
 0x2b4   :  { %v2210_v19 = vpop.f32.mrf.mxu1  ;;  %3334 = vmatprep.subr.mxu0 %v2710_v36  ;;  %v2761_v36 = vld [vmem:[%s8097_s7 + $0x290] sm:$0xff] }
 0x2b5   :  { %v2221_v7 = vadd.f32 %v2210_v19, %v2116_v4  ;;  %3335 = vmatpush1.msra.mxu0 %v2709_v37  ;;  %v2792_v19 = vld [vmem:[%s8097_s7 + $0x388] sm:$0xff]  ;;  %v3391_v37 = vld [vmem:[%s8097_s7 + $0x450] sm:$0xff] }
 0x2b6   :  { %3336 = vmatprep.subr.mxu0 %v2702_v44  ;;  %v2804_v44 = vld [vmem:[%s8097_s7 + $0x3e8] sm:$0xff] }
 0x2b7   :  { %3337 = vmatpush1.msra.mxu0 %v2701_v46  ;;  %v2803_v46 = vld [vmem:[%s8097_s7 + $0x3e0] sm:$0xff] }
 0x2ba   :  { %v5215_v27 = vpop.f32.mrf.mxu1 }
 0x2bb   :  { %v2325_v42 = vadd.f32 %v5215_v27, %v2220_v39  ;;  %v2784_v39 = vld [vmem:[%s8097_s7 + $0x348] sm:$0xff]  ;;  %v2783_v27 = vld [vmem:[%s8097_s7 + $0x340] sm:$0xff] }
 0x2bc   :  { %v2305_v51 = vpop.f32.mrf.mxu1 }
 0x2bd   :  { %v2336_v45 = vadd.f32 %v6329_v40, %v2325_v42  ;;  %v2324_v54 = vadd.f32 %v2305_v51, %v2219_v23  ;;  %v2768_v42 = vld [vmem:[%s8097_s7 + $0x2c8] sm:$0xff]  ;;  %v2751_v51 = vld [vmem:[%s8097_s7 + $0x240] sm:$0xff]  ;;  %v2685_v23 = vld [vmem:[%s8097_s7 + $0x30] sm:$0xff] }
 0x2bf   :  { %v2340_v47 = vmax.f32 %v2336_v45, 0.0  ;;  %v2335_v59 = vadd.f32 %v6329_v40, %v2324_v54  ;;  %v2767_v45 = vld [vmem:[%s8097_s7 + $0x2c0] sm:$0xff]  ;;  %v3440_v54 = vld [vmem:[%s8097_s7 + $0x5d8] sm:$0xff] }
 0x2c1   :  { %5236 = vmatmul.mubr.msk.f32.vlgmr.msra.gmra.mxu1 %vm2359_vm2, %v2340_v47  ;;  %v2339_v57 = vmax.f32 %v2335_v59, 0.0  ;;  %v2760_v47 = vld [vmem:[%s8097_s7 + $0x288] sm:$0xff] }
 0x2c2   :  { %5239 = vmatpush3.msra.mxu1 %v2350_v30  ;;  %5254 = vmatprep.mubr.msk.f32.mxu1 %vm5326_vm1, %v5325_v1  ;;  %v5218_v0 = vpop.f32.mrf.mxu1  ;;  %v2694_v30 = vld [vmem:[%s8097_s7 + $0x78] sm:$0xff] }
 0x2c3   :  { %5240 = vmatprep.subr.mxu1 %v5325_v1  ;;  %v2327_v29 = vadd.f32 %v5218_v0, %v2222_v16  ;;  %3338 = vmatprep.subr.mxu0 %v2694_v30  ;;  %v3408_v16 = vld [vmem:[%s8097_s7 + $0x4d8] sm:$0xff]  ;;  %v2796_v30 = vld [vmem:[%s8097_s7 + $0x3a8] sm:$0xff] }
 0x2c4   :  { %5241 = vmatpush3.msra.mxu1 %v2349_v48  ;;  %v2315_v6 = vpop.f32.mrf.mxu1  ;;  %v2693_v48 = vld [vmem:[%s8097_s7 + $0x70] sm:$0xff] }
 0x2c5   :  { %5242 = vmatprep.subr.mxu1 %v5325_v1  ;;  %v2326_v9 = vadd.f32 %v2315_v6, %v2221_v7  ;;  %v2338_v32 = vadd.f32 %v6329_v40, %v2327_v29  ;;  %3339 = vmatpush1.msra.mxu0 %v2693_v48  ;;  %v3439_v7 = vld [vmem:[%s8097_s7 + $0x5d0] sm:$0xff]  ;;  %v2795_v48 = vld [vmem:[%s8097_s7 + $0x3a0] sm:$0xff] }
 0x2c6   :  { %5243 = vmatpush3.msra.mxu1 %v2348_v50  ;;  %v2686_v50 = vld [vmem:[%s8097_s7 + $0x38] sm:$0xff]  ;;  %v3407_v29 = vld [vmem:[%s8097_s7 + $0x4d0] sm:$0xff] }
 0x2c7   :  { %5244 = vmatprep.subr.mxu1 %v5325_v1  ;;  %v2337_v14 = vadd.f32 %v6329_v40, %v2326_v9  ;;  %v2342_v35 = vmax.f32 %v2338_v32, 0.0  ;;  %v2776_v40 = vld [vmem:[%s8097_s7 + $0x308] sm:$0xff]  ;;  %3340 = vmatprep.subr.mxu0 %v2686_v50  ;;  %v2769_v32 = vld [vmem:[%s8097_s7 + $0x2d0] sm:$0xff] }
 0x2c8   :  { %5245 = vmatpush3.msra.mxu1 %v2347_v53  ;;  %3341 = vmatpush1.msra.mxu0 %v2685_v23  ;;  %v2744_v53 = vld [vmem:[%s8097_s7 + $0x208] sm:$0xff]  ;;  %v2787_v23 = vld [vmem:[%s8097_s7 + $0x360] sm:$0xff] }
 0x2c9   :  { %5246 = vmatprep.subr.mxu1 %v5325_v1  ;;  %v2341_v18 = vmax.f32 %v2337_v14, 0.0  ;;  %3535 = vmatprep.subr.mxu0 %v3440_v54  ;;  %v2794_v14 = vld [vmem:[%s8097_s7 + $0x398] sm:$0xff]  ;;  %v2788_v50 = vld [vmem:[%s8097_s7 + $0x368] sm:$0xff] }
 0x2ca   :  { %5247 = vmatpush3.msra.mxu1 %v2346_v55  ;;  %v2743_v55 = vld [vmem:[%s8097_s7 + $0x200] sm:$0xff]  ;;  %v2780_v54 = vld [vmem:[%s8097_s7 + $0x328] sm:$0xff] }
 0x2cb   :  { %5248 = vmatprep.subr.mxu1 %v5325_v1 }
 0x2cc   :  { %5249 = vmatpush3.msra.mxu1 %v2345_v56  ;;  %v2802_v56 = vld [vmem:[%s8097_s7 + $0x3d8] sm:$0xff] }
 0x2cd   :  { %5250 = vmatprep.subr.mxu1 %v5325_v1 }
 0x2ce   :  { %5251 = vmatpush3.msra.mxu1 %v2344_v60 }
 0x2cf   :  { %5252 = vmatprep.subr.mxu1 %v5325_v1 }
 0x2d0   :  { %5253 = vmatpush3.msra.mxu1 %v2343_v62 }
 0x2d1   :  { %5255 = vmatmul.mubr.msk.f32.vlgmr.msra.gmra.mxu1 %vm2359_vm2, %v2339_v57  ;;  %5257 = vmatprep.subr.mxu1 %v5325_v1 }
 0x2d2   :  { %5258 = vmatpush3.msra.mxu1 %v2513_v63  ;;  %5273 = vmatprep.mubr.msk.f32.mxu1 %vm5326_vm1, %v5325_v1 }
 0x2d3   :  { %5259 = vmatprep.subr.mxu1 %v5325_v1 }
 0x2d4   :  { %5260 = vmatpush3.msra.mxu1 %v2512_v3 }
 0x2d5   :  { %5261 = vmatprep.subr.mxu1 %v5325_v1 }
 0x2d6   :  { %5262 = vmatpush3.msra.mxu1 %v2511_v5 }
 0x2d7   :  { %5263 = vmatprep.subr.mxu1 %v5325_v1 }
 0x2d8   :  { %5264 = vmatpush3.msra.mxu1 %v2510_v8  ;;  %v3432_v8 = vld [vmem:[%s8097_s7 + $0x598] sm:$0xff] }
 0x2d9   :  { %5265 = vmatprep.subr.mxu1 %v5325_v1 }
 0x2da   :  { %5266 = vmatpush3.msra.mxu1 %v2509_v10  ;;  %v2801_v10 = vld [vmem:[%s8097_s7 + $0x3d0] sm:$0xff] }
 0x2db   :  { %5267 = vmatprep.subr.mxu1 %v5325_v1 }
 0x2dc   :  { %5268 = vmatpush3.msra.mxu1 %v2508_v13  ;;  %v3431_v13 = vld [vmem:[%s8097_s7 + $0x590] sm:$0xff] }
 0x2dd   :  { %5269 = vmatprep.subr.mxu1 %v5325_v1 }
 0x2de   :  { %5270 = vmatpush3.msra.mxu1 %v2507_v15  ;;  %v3424_v15 = vld [vmem:[%s8097_s7 + $0x558] sm:$0xff] }
 0x2df   :  { %5271 = vmatprep.subr.mxu1 %v5325_v1 }
 0x2e0   :  { %5272 = vmatpush3.msra.mxu1 %v2506_v17  ;;  %v2793_v17 = vld [vmem:[%s8097_s7 + $0x390] sm:$0xff] }
 0x2e1   :  { %5274 = vmatmul.mubr.msk.f32.vlgmr.msra.gmra.mxu1 %vm2359_vm2, %v2341_v18  ;;  %5276 = vmatprep.subr.mxu1 %v5325_v1  ;;  %v3423_v18 = vld [vmem:[%s8097_s7 + $0x550] sm:$0xff] }
 0x2e2   :  { %5277 = vmatpush3.msra.mxu1 %v2595_v20  ;;  %5292 = vmatprep.mubr.msk.f32.mxu1 %vm5326_vm1, %v5325_v1  ;;  %v2786_v20 = vld [vmem:[%s8097_s7 + $0x358] sm:$0xff] }
 0x2e3   :  { %5278 = vmatprep.subr.mxu1 %v5325_v1 }
 0x2e4   :  { %5279 = vmatpush3.msra.mxu1 %v2594_v24  ;;  %v2785_v24 = vld [vmem:[%s8097_s7 + $0x350] sm:$0xff] }
 0x2e5   :  { %5280 = vmatprep.subr.mxu1 %v5325_v1 }
 0x2e6   :  { %5281 = vmatpush3.msra.mxu1 %v2593_v11  ;;  %v2778_v11 = vld [vmem:[%s8097_s7 + $0x318] sm:$0xff] }
 0x2e7   :  { %5282 = vmatprep.subr.mxu1 %v5325_v1 }
 0x2e8   :  { %5283 = vmatpush3.msra.mxu1 %v2592_v26  ;;  %v2777_v26 = vld [vmem:[%s8097_s7 + $0x310] sm:$0xff] }
 0x2e9   :  { %5284 = vmatprep.subr.mxu1 %v5325_v1 }
 0x2ea   :  { %5285 = vmatpush3.msra.mxu1 %v2591_v22  ;;  %v2770_v22 = vld [vmem:[%s8097_s7 + $0x2d8] sm:$0xff] }
 0x2eb   :  { %5286 = vmatprep.subr.mxu1 %v5325_v1 }
 0x2ec   :  { %5287 = vmatpush3.msra.mxu1 %v2590_v31  ;;  %v3400_v31 = vld [vmem:[%s8097_s7 + $0x498] sm:$0xff] }
 0x2ed   :  { %5288 = vmatprep.subr.mxu1 %v5325_v1 }
 0x2ee   :  { %5289 = vmatpush3.msra.mxu1 %v2589_v33  ;;  %v3399_v33 = vld [vmem:[%s8097_s7 + $0x490] sm:$0xff] }
 0x2ef   :  { %5290 = vmatprep.subr.mxu1 %v5325_v1 }
 0x2f0   :  { %5291 = vmatpush3.msra.mxu1 %v2588_v34  ;;  %v2762_v34 = vld [vmem:[%s8097_s7 + $0x298] sm:$0xff] }
 0x2f1   :  { %5293 = vmatmul.mubr.msk.f32.vlgmr.msra.gmra.mxu1 %vm2359_vm2, %v2342_v35  ;;  %2827 = vmatprep.subr.mxu1 %v2800_v38  ;;  %v3392_v35 = vld [vmem:[%s8097_s7 + $0x458] sm:$0xff] }
 0x2f2   :  { %2875 = vmatprep.mubr.f32.mxu1 %v5325_v1  ;;  %2828 = vmatpush1.msra.mxu1 %v2799_v12  ;;  %v2754_v38 = vld [vmem:[%s8097_s7 + $0x258] sm:$0xff] }
 0x2f3   :  { %2829 = vmatprep.subr.mxu1 %v2792_v19  ;;  %v3384_v12 = vld [vmem:[%s8097_s7 + $0x418] sm:$0xff]  ;;  %v2753_v19 = vld [vmem:[%s8097_s7 + $0x250] sm:$0xff] }
 0x2f4   :  { %2830 = vmatpush1.msra.mxu1 %v2791_v28  ;;  %v3383_v28 = vld [vmem:[%s8097_s7 + $0x410] sm:$0xff] }
 0x2f5   :  { %2831 = vmatprep.subr.mxu1 %v2784_v39  ;;  %v2746_v39 = vld [vmem:[%s8097_s7 + $0x218] sm:$0xff] }
 0x2f6   :  { %2832 = vmatpush1.msra.mxu1 %v2783_v27 }
 0x2f7   :  { %2833 = vmatprep.subr.mxu1 %v2776_v40  ;;  %v3444_v40 = vld [vmem:[%s8097_s7 + $0x5f8] sm:$0xff] }
 0x2f8   :  { %2834 = vmatpush1.msra.mxu1 %v2775_v41  ;;  %v2745_v41 = vld [vmem:[%s8097_s7 + $0x210] sm:$0xff] }
 0x2f9   :  { %2835 = vmatprep.subr.mxu1 %v2768_v42  ;;  %v3443_v42 = vld [vmem:[%s8097_s7 + $0x5f0] sm:$0xff] }
 0x2fa   :  { %2836 = vmatpush1.msra.mxu1 %v2767_v45  ;;  %v3436_v45 = vld [vmem:[%s8097_s7 + $0x5b8] sm:$0xff] }
 0x2fb   :  { %2837 = vmatprep.subr.mxu1 %v2760_v47  ;;  %v3435_v47 = vld [vmem:[%s8097_s7 + $0x5b0] sm:$0xff] }
 0x2fc   :  { %2838 = vmatpush1.msra.mxu1 %v2759_v43  ;;  %v3428_v43 = vld [vmem:[%s8097_s7 + $0x578] sm:$0xff] }
 0x2fd   :  { %2839 = vmatprep.subr.mxu1 %v2752_v49  ;;  %v3427_v49 = vld [vmem:[%s8097_s7 + $0x570] sm:$0xff] }
 0x2fe   :  { %2840 = vmatpush1.msra.mxu1 %v2751_v51  ;;  %v3420_v51 = vld [vmem:[%s8097_s7 + $0x538] sm:$0xff] }
 0x2ff   :  { %2841 = vmatprep.subr.mxu1 %v2744_v53  ;;  %v3419_v53 = vld [vmem:[%s8097_s7 + $0x530] sm:$0xff] }
 0x300   :  { %2842 = vmatpush1.msra.mxu1 %v2743_v55  ;;  %v3412_v55 = vld [vmem:[%s8097_s7 + $0x4f8] sm:$0xff] }
 0x301   :  { %2898 = vmatprep.subr.mxu1 %v2802_v56  ;;  %v2779_v56 = vld [vmem:[%s8097_s7 + $0x320] sm:$0xff] }
 0x381   :  { %v2429_v58 = vpop.f32.mrf.mxu1 }
 0x383   :  { %v5237_v59 = vpop.f32.mrf.mxu1 }
 0x384   :  { %v2772_v59 = vld [vmem:[%s8097_s7 + $0x2e8] sm:$0xff] }
 0x391   :  { %v2502_v60 = vpop.f32.mrf.mxu1 }
 0x392   :  { %v2503_v57 = vadd.f32 %v2502_v60, %v2429_v58  ;;  %v3411_v58 = vld [vmem:[%s8097_s7 + $0x4f0] sm:$0xff]  ;;  %v3404_v60 = vld [vmem:[%s8097_s7 + $0x4b8] sm:$0xff] }
 0x393   :  { %v5256_v61 = vpop.f32.mrf.mxu1 }
 0x394   :  { %v2771_v61 = vld [vmem:[%s8097_s7 + $0x2e0] sm:$0xff] }
 0x3a1   :  { %v2583_v62 = vpop.f32.mrf.mxu1 }
 0x3a2   :  { %v2587_v63 = vadd.f32 %v2583_v62, %v2503_v57  ;;  %v3403_v62 = vld [vmem:[%s8097_s7 + $0x4b0] sm:$0xff]  ;;  %v3396_v57 = vld [vmem:[%s8097_s7 + $0x478] sm:$0xff] }
 0x3a3   :  { %v5275_v52 = vpop.f32.mrf.mxu1 }
 0x3a4   :  { %v2764_v52 = vld [vmem:[%s8097_s7 + $0x2a8] sm:$0xff] }
 0x3b1   :  { %v2665_v0 = vpop.f32.mrf.mxu1 }
 0x3b2   :  { %v2669_v3 = vadd.f32 %v2665_v0, %v2587_v63  ;;  %v2763_v63 = vld [vmem:[%s8097_s7 + $0x2a0] sm:$0xff]  ;;  %v3395_v0 = vld [vmem:[%s8097_s7 + $0x470] sm:$0xff] }
 0x3b3   :  { %v5294_v4 = vpop.f32.mrf.mxu1 }
 0x3b4   :  { %v2677_v5 = vadd.f32 %v4814_v2, %v2669_v3  ;;  %v2756_v2 = vld [vmem:[%s8097_s7 + $0x268] sm:$0xff]  ;;  %v3388_v3 = vld [vmem:[%s8097_s7 + $0x438] sm:$0xff]  ;;  %v2755_v4 = vld [vmem:[%s8097_s7 + $0x260] sm:$0xff] }
 0x3b6   :  { %v6532_v6 = vmax.f32 %v2677_v5, 0.0  ;;  %v3387_v5 = vld [vmem:[%s8097_s7 + $0x430] sm:$0xff] }
 0x3b8   :  { %4822 = vmatmul.mubr.msk.f32.vlgmr.msra.gmra.mxu0 %vm2359_vm2, %v6532_v6  ;;  %v6543_v9 = vrot.slane %v6532_v6, 2  ;;  %v6630_v27 = vrot.slane %v6532_v6, 4 }
 0x3b9   :  { %3536 = vmatpush1.msra.mxu0 %v3439_v7  ;;  %3583 = vmatprep.mubr.f32.mxu0 %v5325_v1  ;;  %v2748_v7 = vld [vmem:[%s8097_s7 + $0x228] sm:$0xff] }
 0x3ba   :  { %3537 = vmatprep.subr.mxu0 %v3432_v8  ;;  %4815 = vmatmul.mubr.msk.f32.vlgmr.msra.gmra.mxu1 %vm2359_vm2, %v6543_v9  ;;  %v3799_v8 = vld [vmem:[%s8097_s7 + $0x7d8] sm:$0xff] }
 0x3bb   :  { %2899 = vmatpush1.msra.mxu1 %v2801_v10  ;;  %3538 = vmatpush1.msra.mxu0 %v3431_v13  ;;  %v2747_v10 = vld [vmem:[%s8097_s7 + $0x220] sm:$0xff]  ;;  %v3798_v13 = vld [vmem:[%s8097_s7 + $0x7d0] sm:$0xff] }
 0x3bc   :  { %2900 = vmatprep.subr.mxu1 %v2794_v14  ;;  %3539 = vmatprep.subr.mxu0 %v3424_v15  ;;  %v2806_v14 = vld [vmem:[%s8097_s7 + $0x3f8] sm:$0xff] }
 0x3bd   :  { %2901 = vmatpush1.msra.mxu1 %v2793_v17  ;;  %3540 = vmatpush1.msra.mxu0 %v3423_v18  ;;  %v3791_v15 = vld [vmem:[%s8097_s7 + $0x798] sm:$0xff]  ;;  %v2805_v17 = vld [vmem:[%s8097_s7 + $0x3f0] sm:$0xff] }
 0x3be   :  { %2902 = vmatprep.subr.mxu1 %v2786_v20  ;;  %3541 = vmatprep.subr.mxu0 %v3416_v21  ;;  %v3790_v18 = vld [vmem:[%s8097_s7 + $0x790] sm:$0xff]  ;;  %v2798_v20 = vld [vmem:[%s8097_s7 + $0x3b8] sm:$0xff] }
 0x3bf   :  { %2903 = vmatpush1.msra.mxu1 %v2785_v24  ;;  %3542 = vmatpush1.msra.mxu0 %v3415_v25  ;;  %v3783_v21 = vld [vmem:[%s8097_s7 + $0x758] sm:$0xff]  ;;  %v2797_v24 = vld [vmem:[%s8097_s7 + $0x3b0] sm:$0xff] }
 0x3c0   :  { %2904 = vmatprep.subr.mxu1 %v2778_v11  ;;  %3543 = vmatprep.subr.mxu0 %v3408_v16  ;;  %v3782_v25 = vld [vmem:[%s8097_s7 + $0x750] sm:$0xff]  ;;  %v2790_v11 = vld [vmem:[%s8097_s7 + $0x378] sm:$0xff] }
 0x3c1   :  { %2905 = vmatpush1.msra.mxu1 %v2777_v26  ;;  %3544 = vmatpush1.msra.mxu0 %v3407_v29  ;;  %v3775_v16 = vld [vmem:[%s8097_s7 + $0x718] sm:$0xff]  ;;  %v2789_v26 = vld [vmem:[%s8097_s7 + $0x370] sm:$0xff] }
 0x3c2   :  { %2906 = vmatprep.subr.mxu1 %v2770_v22  ;;  %3545 = vmatprep.subr.mxu0 %v3400_v31  ;;  %v3774_v29 = vld [vmem:[%s8097_s7 + $0x710] sm:$0xff]  ;;  %v2782_v22 = vld [vmem:[%s8097_s7 + $0x338] sm:$0xff] }
 0x3c3   :  { %2907 = vmatpush1.msra.mxu1 %v2769_v32  ;;  %3546 = vmatpush1.msra.mxu0 %v3399_v33  ;;  %v3767_v31 = vld [vmem:[%s8097_s7 + $0x6d8] sm:$0xff]  ;;  %v2781_v32 = vld [vmem:[%s8097_s7 + $0x330] sm:$0xff] }
 0x3c4   :  { %2908 = vmatprep.subr.mxu1 %v2762_v34  ;;  %3547 = vmatprep.subr.mxu0 %v3392_v35  ;;  %v3766_v33 = vld [vmem:[%s8097_s7 + $0x6d0] sm:$0xff]  ;;  %v2774_v34 = vld [vmem:[%s8097_s7 + $0x2f8] sm:$0xff] }
 0x3c5   :  { %2909 = vmatpush1.msra.mxu1 %v2761_v36  ;;  %3548 = vmatpush1.msra.mxu0 %v3391_v37  ;;  %v3759_v35 = vld [vmem:[%s8097_s7 + $0x698] sm:$0xff]  ;;  %v2773_v36 = vld [vmem:[%s8097_s7 + $0x2f0] sm:$0xff] }
 0x3c6   :  { %2910 = vmatprep.subr.mxu1 %v2754_v38  ;;  %3549 = vmatprep.subr.mxu0 %v3384_v12  ;;  %v3758_v37 = vld [vmem:[%s8097_s7 + $0x690] sm:$0xff]  ;;  %v2766_v38 = vld [vmem:[%s8097_s7 + $0x2b8] sm:$0xff] }
 0x3c7   :  { %2911 = vmatpush1.msra.mxu1 %v2753_v19  ;;  %3550 = vmatpush1.msra.mxu0 %v3383_v28  ;;  %v3751_v12 = vld [vmem:[%s8097_s7 + $0x658] sm:$0xff]  ;;  %v2765_v19 = vld [vmem:[%s8097_s7 + $0x2b0] sm:$0xff] }
 0x3c8   :  { %2912 = vmatprep.subr.mxu1 %v2746_v39  ;;  %4824 = vmatmul.mubr.msk.f32.vlgmr.msra.gmra.mxu0 %vm2359_vm2, %v6630_v27  ;;  %v3750_v28 = vld [vmem:[%s8097_s7 + $0x650] sm:$0xff]  ;;  %v2758_v39 = vld [vmem:[%s8097_s7 + $0x278] sm:$0xff] }
 0x3c9   :  { %3677 = vmatprep.subr.mxu0 %v3444_v40  ;;  %2913 = vmatpush1.msra.mxu1 %v2745_v41  ;;  %v3743_v40 = vld [vmem:[%s8097_s7 + $0x618] sm:$0xff]  ;;  %v2757_v41 = vld [vmem:[%s8097_s7 + $0x270] sm:$0xff] }
 0x3ca   :  { %2946 = vmatprep.mubr.f32.mxu1 %v5325_v1  ;;  %3678 = vmatpush1.msra.mxu0 %v3443_v42  ;;  %v3742_v42 = vld [vmem:[%s8097_s7 + $0x610] sm:$0xff] }
 0x3cb   :  { %4816 = vmatmul.mubr.msk.f32.vlgmr.msra.gmra.mxu1 %vm2359_vm2, %v6543_v9  ;;  %2969 = vmatprep.subr.mxu1 %v2804_v44  ;;  %v2750_v44 = vld [vmem:[%s8097_s7 + $0x238] sm:$0xff] }
 0x3cc   :  { %3679 = vmatprep.subr.mxu0 %v3436_v45  ;;  %2970 = vmatpush1.msra.mxu1 %v2803_v46  ;;  %v6836_v45 = vrot.slane %v6532_v6, 6  ;;  %v3803_v46 = vld [vmem:[%s8097_s7 + $0x7f8] sm:$0xff] }
 0x3cd   :  { %3680 = vmatpush1.msra.mxu0 %v3435_v47  ;;  %2971 = vmatprep.subr.mxu1 %v2796_v30  ;;  %v2749_v47 = vld [vmem:[%s8097_s7 + $0x230] sm:$0xff] }
 0x3ce   :  { %3681 = vmatprep.subr.mxu0 %v3428_v43  ;;  %2972 = vmatpush1.msra.mxu1 %v2795_v48  ;;  %v3802_v30 = vld [vmem:[%s8097_s7 + $0x7f0] sm:$0xff]  ;;  %v2736_v43 = vld [vmem:[%s8097_s7 + $0x1c8] sm:$0xff]  ;;  %v3795_v48 = vld [vmem:[%s8097_s7 + $0x7b8] sm:$0xff] }
 0x3cf   :  { %3682 = vmatpush1.msra.mxu0 %v3427_v49  ;;  %2973 = vmatprep.subr.mxu1 %v2788_v50  ;;  %v2735_v49 = vld [vmem:[%s8097_s7 + $0x1c0] sm:$0xff]  ;;  %v3794_v50 = vld [vmem:[%s8097_s7 + $0x7b0] sm:$0xff] }
 0x3d0   :  { %3683 = vmatprep.subr.mxu0 %v3420_v51  ;;  %2974 = vmatpush1.msra.mxu1 %v2787_v23  ;;  %v2728_v51 = vld [vmem:[%s8097_s7 + $0x188] sm:$0xff]  ;;  %v3787_v23 = vld [vmem:[%s8097_s7 + $0x778] sm:$0xff] }
 0x3d1   :  { %3684 = vmatpush1.msra.mxu0 %v3419_v53  ;;  %2975 = vmatprep.subr.mxu1 %v2780_v54  ;;  %v2727_v53 = vld [vmem:[%s8097_s7 + $0x180] sm:$0xff]  ;;  %v3786_v54 = vld [vmem:[%s8097_s7 + $0x770] sm:$0xff] }
 0x3d2   :  { %3685 = vmatprep.subr.mxu0 %v3412_v55  ;;  %2976 = vmatpush1.msra.mxu1 %v2779_v56  ;;  %v2720_v55 = vld [vmem:[%s8097_s7 + $0x148] sm:$0xff]  ;;  %v2719_v56 = vld [vmem:[%s8097_s7 + $0x140] sm:$0xff] }
 0x3d3   :  { %3686 = vmatpush1.msra.mxu0 %v3411_v58  ;;  %2977 = vmatprep.subr.mxu1 %v2772_v59  ;;  %v3778_v58 = vld [vmem:[%s8097_s7 + $0x730] sm:$0xff]  ;;  %v2712_v59 = vld [vmem:[%s8097_s7 + $0x108] sm:$0xff] }
 0x3d4   :  { %3687 = vmatprep.subr.mxu0 %v3404_v60  ;;  %2978 = vmatpush1.msra.mxu1 %v2771_v61  ;;  %v3771_v60 = vld [vmem:[%s8097_s7 + $0x6f8] sm:$0xff]  ;;  %v2711_v61 = vld [vmem:[%s8097_s7 + $0x100] sm:$0xff] }
 0x3d5   :  { %3688 = vmatpush1.msra.mxu0 %v3403_v62  ;;  %2979 = vmatprep.subr.mxu1 %v2764_v52  ;;  %v3770_v62 = vld [vmem:[%s8097_s7 + $0x6f0] sm:$0xff]  ;;  %v2704_v52 = vld [vmem:[%s8097_s7 + $0xc8] sm:$0xff] }
 0x3d6   :  { %3689 = vmatprep.subr.mxu0 %v3396_v57  ;;  %2980 = vmatpush1.msra.mxu1 %v2763_v63  ;;  %v3763_v57 = vld [vmem:[%s8097_s7 + $0x6b8] sm:$0xff]  ;;  %v2703_v63 = vld [vmem:[%s8097_s7 + $0xc0] sm:$0xff] }
 0x3d7   :  { %3690 = vmatpush1.msra.mxu0 %v3395_v0  ;;  %2981 = vmatprep.subr.mxu1 %v2756_v2  ;;  %v3762_v0 = vld [vmem:[%s8097_s7 + $0x6b0] sm:$0xff]  ;;  %v2696_v2 = vld [vmem:[%s8097_s7 + $0x88] sm:$0xff] }
 0x3d8   :  { %3691 = vmatprep.subr.mxu0 %v3388_v3  ;;  %2982 = vmatpush1.msra.mxu1 %v2755_v4  ;;  %v3755_v3 = vld [vmem:[%s8097_s7 + $0x678] sm:$0xff]  ;;  %v2695_v4 = vld [vmem:[%s8097_s7 + $0x80] sm:$0xff] }
 0x3d9   :  { %3692 = vmatpush1.msra.mxu0 %v3387_v5  ;;  %3725 = vmatprep.mubr.f32.mxu0 %v5325_v1  ;;  %v3754_v5 = vld [vmem:[%s8097_s7 + $0x670] sm:$0xff] }
 0x3da   :  { %2983 = vmatprep.subr.mxu1 %v2748_v7  ;;  %4826 = vmatmul.mubr.msk.f32.vlgmr.msra.gmra.mxu0 %vm2359_vm2, %v6630_v27  ;;  %v2688_v7 = vld [vmem:[%s8097_s7 + $0x48] sm:$0xff] }
 0x3db   :  { %3894 = vmatprep.subr.mxu0 %v3799_v8  ;;  %2984 = vmatpush1.msra.mxu1 %v2747_v10  ;;  %v3747_v8 = vld [vmem:[%s8097_s7 + $0x638] sm:$0xff]  ;;  %v2687_v10 = vld [vmem:[%s8097_s7 + $0x40] sm:$0xff] }
 0x3dc   :  { %3017 = vmatprep.mubr.f32.mxu1 %v5325_v1  ;;  %3895 = vmatpush1.msra.mxu0 %v3798_v13  ;;  %v3746_v13 = vld [vmem:[%s8097_s7 + $0x630] sm:$0xff] }
 0x3dd   :  { %4817 = vmatmul.mubr.msk.f32.vlgmr.msra.gmra.mxu1 %vm2359_vm2, %v6543_v9  ;;  %3040 = vmatprep.subr.mxu1 %v2806_v14  ;;  %v2680_v14 = vld [vmem:[%s8097_s7 + $0x8] sm:$0xff] }
 0x3de   :  { %3896 = vmatprep.subr.mxu0 %v3791_v15  ;;  %3041 = vmatpush1.msra.mxu1 %v2805_v17  ;;  %v2679_v15 = vld [vmem:[%s8097_s7] sm:$0xff]  ;;  %v2738_v17 = vld [vmem:[%s8097_s7 + $0x1d8] sm:$0xff] }
 0x3df   :  { %3897 = vmatpush1.msra.mxu0 %v3790_v18  ;;  %3042 = vmatprep.subr.mxu1 %v2798_v20  ;;  %v2737_v18 = vld [vmem:[%s8097_s7 + $0x1d0] sm:$0xff]  ;;  %v2730_v20 = vld [vmem:[%s8097_s7 + $0x198] sm:$0xff] }
 0x3e0   :  { %3898 = vmatprep.subr.mxu0 %v3783_v21  ;;  %3043 = vmatpush1.msra.mxu1 %v2797_v24  ;;  %v2729_v21 = vld [vmem:[%s8097_s7 + $0x190] sm:$0xff]  ;;  %v2722_v24 = vld [vmem:[%s8097_s7 + $0x158] sm:$0xff] }
 0x3e1   :  { %3899 = vmatpush1.msra.mxu0 %v3782_v25  ;;  %3044 = vmatprep.subr.mxu1 %v2790_v11  ;;  %v2721_v25 = vld [vmem:[%s8097_s7 + $0x150] sm:$0xff]  ;;  %v2714_v11 = vld [vmem:[%s8097_s7 + $0x118] sm:$0xff] }
 0x3e2   :  { %3900 = vmatprep.subr.mxu0 %v3775_v16  ;;  %3045 = vmatpush1.msra.mxu1 %v2789_v26  ;;  %v2713_v16 = vld [vmem:[%s8097_s7 + $0x110] sm:$0xff]  ;;  %v2706_v26 = vld [vmem:[%s8097_s7 + $0xd8] sm:$0xff] }
 0x3e3   :  { %3901 = vmatpush1.msra.mxu0 %v3774_v29  ;;  %3046 = vmatprep.subr.mxu1 %v2782_v22  ;;  %v2705_v29 = vld [vmem:[%s8097_s7 + $0xd0] sm:$0xff]  ;;  %v2698_v22 = vld [vmem:[%s8097_s7 + $0x98] sm:$0xff] }
 0x3e4   :  { %3902 = vmatprep.subr.mxu0 %v3767_v31  ;;  %3047 = vmatpush1.msra.mxu1 %v2781_v32  ;;  %v2697_v31 = vld [vmem:[%s8097_s7 + $0x90] sm:$0xff]  ;;  %v2690_v32 = vld [vmem:[%s8097_s7 + $0x58] sm:$0xff] }
 0x3e5   :  { %3903 = vmatpush1.msra.mxu0 %v3766_v33  ;;  %3048 = vmatprep.subr.mxu1 %v2774_v34  ;;  %v2689_v33 = vld [vmem:[%s8097_s7 + $0x50] sm:$0xff]  ;;  %v2682_v34 = vld [vmem:[%s8097_s7 + $0x18] sm:$0xff] }
 0x3e6   :  { %3904 = vmatprep.subr.mxu0 %v3759_v35  ;;  %3049 = vmatpush1.msra.mxu1 %v2773_v36  ;;  %v2681_v35 = vld [vmem:[%s8097_s7 + $0x10] sm:$0xff]  ;;  %v2740_v36 = vld [vmem:[%s8097_s7 + $0x1e8] sm:$0xff] }
 0x3e7   :  { %3905 = vmatpush1.msra.mxu0 %v3758_v37  ;;  %3050 = vmatprep.subr.mxu1 %v2766_v38  ;;  %v4252_v37 = vld [vmem:[%s8099_s9 + $0x2f8] sm:$0xff]  ;;  %v2739_v38 = vld [vmem:[%s8097_s7 + $0x1e0] sm:$0xff] }
 0x3e8   :  { %3906 = vmatprep.subr.mxu0 %v3751_v12  ;;  %3051 = vmatpush1.msra.mxu1 %v2765_v19  ;;  %v2732_v12 = vld [vmem:[%s8097_s7 + $0x1a8] sm:$0xff]  ;;  %v2731_v19 = vld [vmem:[%s8097_s7 + $0x1a0] sm:$0xff] }
 0x3e9   :  { %3907 = vmatpush1.msra.mxu0 %v3750_v28  ;;  %3052 = vmatprep.subr.mxu1 %v2758_v39  ;;  %v2724_v28 = vld [vmem:[%s8097_s7 + $0x168] sm:$0xff]  ;;  %v2723_v39 = vld [vmem:[%s8097_s7 + $0x160] sm:$0xff] }
 0x3ea   :  { %3908 = vmatprep.subr.mxu0 %v3743_v40  ;;  %3053 = vmatpush1.msra.mxu1 %v2757_v41  ;;  %v2716_v40 = vld [vmem:[%s8097_s7 + $0x128] sm:$0xff]  ;;  %v2715_v41 = vld [vmem:[%s8097_s7 + $0x120] sm:$0xff] }
 0x3eb   :  { %3909 = vmatpush1.msra.mxu0 %v3742_v42  ;;  %3942 = vmatprep.mubr.f32.mxu0 %v5325_v1  ;;  %v2708_v42 = vld [vmem:[%s8097_s7 + $0xe8] sm:$0xff] }
 0x3ec   :  { %3054 = vmatprep.subr.mxu1 %v2750_v44  ;;  %4828 = vmatmul.mubr.msk.f32.vlgmr.msra.gmra.mxu0 %vm2359_vm2, %v6836_v45  ;;  %v2707_v44 = vld [vmem:[%s8097_s7 + $0xe0] sm:$0xff] }
 0x3ed   :  { %4036 = vmatprep.subr.mxu0 %v3803_v46  ;;  %3055 = vmatpush1.msra.mxu1 %v2749_v47  ;;  %v2700_v46 = vld [vmem:[%s8097_s7 + $0xa8] sm:$0xff]  ;;  %v2699_v47 = vld [vmem:[%s8097_s7 + $0xa0] sm:$0xff] }
 0x3ee   :  { %3088 = vmatprep.mubr.f32.mxu1 %v5325_v1  ;;  %4037 = vmatpush1.msra.mxu0 %v3802_v30  ;;  %v2692_v30 = vld [vmem:[%s8097_s7 + $0x68] sm:$0xff] }
 0x3ef   :  { %4818 = vmatmul.mubr.msk.f32.vlgmr.msra.gmra.mxu1 %vm2359_vm2, %v6543_v9  ;;  %3113 = vmatprep.subr.mxu1 %v2736_v43  ;;  %v3779_v9 = vld [vmem:[%s8097_s7 + $0x738] sm:$0xff]  ;;  %v2691_v43 = vld [vmem:[%s8097_s7 + $0x60] sm:$0xff] }
 0x3f0   :  { %4038 = vmatprep.subr.mxu0 %v3795_v48  ;;  %3114 = vmatpush1.msra.mxu1 %v2735_v49  ;;  %v4251_v48 = vld [vmem:[%s8099_s9 + $0x2f0] sm:$0xff]  ;;  %v4250_v49 = vld [vmem:[%s8099_s9 + $0x2e8] sm:$0xff] }
 0x3f1   :  { %4039 = vmatpush1.msra.mxu0 %v3794_v50  ;;  %3115 = vmatprep.subr.mxu1 %v2728_v51  ;;  %v2684_v50 = vld [vmem:[%s8097_s7 + $0x28] sm:$0xff]  ;;  %v2683_v51 = vld [vmem:[%s8097_s7 + $0x20] sm:$0xff] }
 0x3f2   :  { %4040 = vmatprep.subr.mxu0 %v3787_v23  ;;  %3116 = vmatpush1.msra.mxu1 %v2727_v53  ;;  %v3438_v23 = vld [vmem:[%s8097_s7 + $0x5c8] sm:$0xff]  ;;  %v4249_v53 = vld [vmem:[%s8099_s9 + $0x2e0] sm:$0xff] }
 0x3f3   :  { %4041 = vmatpush1.msra.mxu0 %v3786_v54  ;;  %3117 = vmatprep.subr.mxu1 %v2720_v55  ;;  %v4248_v54 = vld [vmem:[%s8099_s9 + $0x2d8] sm:$0xff]  ;;  %v3437_v55 = vld [vmem:[%s8097_s7 + $0x5c0] sm:$0xff] }
 0x3f4   :  { %4042 = vmatprep.subr.mxu0 %v3779_v9  ;;  %3118 = vmatpush1.msra.mxu1 %v2719_v56  ;;  %v3430_v9 = vld [vmem:[%s8097_s7 + $0x588] sm:$0xff]  ;;  %v4247_v56 = vld [vmem:[%s8099_s9 + $0x2d0] sm:$0xff] }
 0x3f5   :  { %4043 = vmatpush1.msra.mxu0 %v3778_v58  ;;  %3119 = vmatprep.subr.mxu1 %v2712_v59  ;;  %v3429_v58 = vld [vmem:[%s8097_s7 + $0x580] sm:$0xff]  ;;  %v4246_v59 = vld [vmem:[%s8099_s9 + $0x2c8] sm:$0xff] }
 0x3f6   :  { %4044 = vmatprep.subr.mxu0 %v3771_v60  ;;  %3120 = vmatpush1.msra.mxu1 %v2711_v61  ;;  %v3422_v60 = vld [vmem:[%s8097_s7 + $0x548] sm:$0xff]  ;;  %v3421_v61 = vld [vmem:[%s8097_s7 + $0x540] sm:$0xff] }
 0x3f7   :  { %4045 = vmatpush1.msra.mxu0 %v3770_v62  ;;  %3121 = vmatprep.subr.mxu1 %v2704_v52  ;;  %v4244_v62 = vld [vmem:[%s8099_s9 + $0x2b8] sm:$0xff]  ;;  %v3414_v52 = vld [vmem:[%s8097_s7 + $0x508] sm:$0xff] }
 0x3f8   :  { %4046 = vmatprep.subr.mxu0 %v3763_v57  ;;  %3122 = vmatpush1.msra.mxu1 %v2703_v63  ;;  %v4243_v57 = vld [vmem:[%s8099_s9 + $0x2b0] sm:$0xff]  ;;  %v3413_v63 = vld [vmem:[%s8097_s7 + $0x500] sm:$0xff] }
 0x3f9   :  { %4047 = vmatpush1.msra.mxu0 %v3762_v0  ;;  %3123 = vmatprep.subr.mxu1 %v2696_v2  ;;  %v4242_v0 = vld [vmem:[%s8099_s9 + $0x2a8] sm:$0xff] }
 0x3fa   :  { %4048 = vmatprep.subr.mxu0 %v3755_v3  ;;  %3124 = vmatpush1.msra.mxu1 %v2695_v4  ;;  %v3406_v2 = vld [vmem:[%s8097_s7 + $0x4c8] sm:$0xff]  ;;  %v4241_v3 = vld [vmem:[%s8099_s9 + $0x2a0] sm:$0xff] }
 0x3fb   :  { %4049 = vmatpush1.msra.mxu0 %v3754_v5  ;;  %3125 = vmatprep.subr.mxu1 %v2688_v7  ;;  %v3405_v4 = vld [vmem:[%s8097_s7 + $0x4c0] sm:$0xff]  ;;  %v4240_v5 = vld [vmem:[%s8099_s9 + $0x298] sm:$0xff]  ;;  %v3398_v7 = vld [vmem:[%s8097_s7 + $0x488] sm:$0xff] }
 0x3fc   :  { %4050 = vmatprep.subr.mxu0 %v3747_v8  ;;  %3126 = vmatpush1.msra.mxu1 %v2687_v10  ;;  %v4239_v8 = vld [vmem:[%s8099_s9 + $0x290] sm:$0xff]  ;;  %v3397_v10 = vld [vmem:[%s8097_s7 + $0x480] sm:$0xff] }
 0x3fd   :  { %4051 = vmatpush1.msra.mxu0 %v3746_v13  ;;  %4084 = vmatprep.mubr.f32.mxu0 %v5325_v1  ;;  %v4238_v13 = vld [vmem:[%s8099_s9 + $0x288] sm:$0xff] }
 0x3fe   :  { %3127 = vmatprep.subr.mxu1 %v2680_v14  ;;  %4830 = vmatmul.mubr.msk.f32.vlgmr.msra.gmra.mxu0 %vm2359_vm2, %v6836_v45  ;;  %v3390_v14 = vld [vmem:[%s8097_s7 + $0x448] sm:$0xff] }
 0x3ff   :  { %3128 = vmatpush1.msra.mxu1 %v2679_v15  ;;  %3161 = vmatprep.mubr.f32.mxu1 %v5325_v1  ;;  %v4237_v15 = vld [vmem:[%s8099_s9 + $0x280] sm:$0xff] }
 0x400   :  { %4819 = vmatmul.mubr.msk.f32.vlgmr.msra.gmra.mxu1 %vm2359_vm2, %v6532_v6  ;;  %3184 = vmatprep.subr.mxu1 %v2738_v17  ;;  %v3389_v17 = vld [vmem:[%s8097_s7 + $0x440] sm:$0xff] }
 0x401   :  { %3185 = vmatpush1.msra.mxu1 %v2737_v18  ;;  %3232 = vmatprep.mubr.f32.mxu1 %v5325_v1  ;;  %v4236_v18 = vld [vmem:[%s8099_s9 + $0x278] sm:$0xff] }
 0x402   :  { %3186 = vmatprep.subr.mxu1 %v2730_v20  ;;  %4496 = vmatprep.subr.mxu0 %v4252_v37  ;;  %v3382_v20 = vld [vmem:[%s8097_s7 + $0x408] sm:$0xff]  ;;  %v4229_v37 = vld [vmem:[%s8099_s9 + $0x240] sm:$0xff] }
 0x403   :  { %3187 = vmatpush1.msra.mxu1 %v2729_v21  ;;  %4497 = vmatpush1.msra.mxu0 %v4251_v48  ;;  %v3381_v21 = vld [vmem:[%s8097_s7 + $0x400] sm:$0xff]  ;;  %v4222_v48 = vld [vmem:[%s8099_s9 + $0x208] sm:$0xff] }
 0x404   :  { %3188 = vmatprep.subr.mxu1 %v2722_v24  ;;  %4498 = vmatprep.subr.mxu0 %v4250_v49  ;;  %v4235_v24 = vld [vmem:[%s8099_s9 + $0x270] sm:$0xff]  ;;  %v3386_v49 = vld [vmem:[%s8097_s7 + $0x428] sm:$0xff] }
 0x405   :  { %3189 = vmatpush1.msra.mxu1 %v2721_v25  ;;  %4499 = vmatpush1.msra.mxu0 %v4249_v53  ;;  %v4234_v25 = vld [vmem:[%s8099_s9 + $0x268] sm:$0xff] }
 0x406   :  { %3190 = vmatprep.subr.mxu1 %v2714_v11  ;;  %4500 = vmatprep.subr.mxu0 %v4248_v54  ;;  %v3442_v11 = vld [vmem:[%s8097_s7 + $0x5e8] sm:$0xff]  ;;  %v3796_v54 = vld [vmem:[%s8097_s7 + $0x7c0] sm:$0xff] }
 0x407   :  { %3191 = vmatpush1.msra.mxu1 %v2713_v16  ;;  %4501 = vmatpush1.msra.mxu0 %v4247_v56  ;;  %v3441_v16 = vld [vmem:[%s8097_s7 + $0x5e0] sm:$0xff]  ;;  %v3797_v53 = vld [vmem:[%s8097_s7 + $0x7c8] sm:$0xff] }
 0x408   :  { %3192 = vmatprep.subr.mxu1 %v2706_v26  ;;  %4502 = vmatprep.subr.mxu0 %v4246_v59  ;;  %v3434_v26 = vld [vmem:[%s8097_s7 + $0x5a8] sm:$0xff]  ;;  %v3788_v56 = vld [vmem:[%s8097_s7 + $0x780] sm:$0xff] }
 0x409   :  { %3193 = vmatpush1.msra.mxu1 %v2705_v29  ;;  %v4233_v29 = vld [vmem:[%s8099_s9 + $0x260] sm:$0xff]  ;;  %v3781_v59 = vld [vmem:[%s8097_s7 + $0x748] sm:$0xff] }
 0x40a   :  { %3194 = vmatprep.subr.mxu1 %v2698_v22  ;;  %v3433_v22 = vld [vmem:[%s8097_s7 + $0x5a0] sm:$0xff] }
 0x40b   :  { %3195 = vmatpush1.msra.mxu1 %v2697_v31  ;;  %v4232_v31 = vld [vmem:[%s8099_s9 + $0x258] sm:$0xff] }
 0x40c   :  { %3196 = vmatprep.subr.mxu1 %v2690_v32  ;;  %v3426_v32 = vld [vmem:[%s8097_s7 + $0x568] sm:$0xff] }
 0x40d   :  { %3197 = vmatpush1.msra.mxu1 %v2689_v33  ;;  %v4231_v33 = vld [vmem:[%s8099_s9 + $0x250] sm:$0xff] }
 0x40e   :  { %3198 = vmatprep.subr.mxu1 %v2682_v34  ;;  %v3425_v34 = vld [vmem:[%s8097_s7 + $0x560] sm:$0xff] }
 0x40f   :  { %3199 = vmatpush1.msra.mxu1 %v2681_v35  ;;  %v4230_v35 = vld [vmem:[%s8099_s9 + $0x248] sm:$0xff] }
 0x410   :  { %4820 = vmatmul.mubr.msk.f32.vlgmr.msra.gmra.mxu1 %vm2359_vm2, %v6532_v6  ;;  %3255 = vmatprep.subr.mxu1 %v2740_v36  ;;  %v3418_v36 = vld [vmem:[%s8097_s7 + $0x528] sm:$0xff] }
 0x411   :  { %3256 = vmatpush1.msra.mxu1 %v2739_v38  ;;  %3303 = vmatprep.mubr.f32.mxu1 %v5325_v1  ;;  %v3417_v38 = vld [vmem:[%s8097_s7 + $0x520] sm:$0xff] }
 0x412   :  { %3257 = vmatprep.subr.mxu1 %v2732_v12  ;;  %v4228_v12 = vld [vmem:[%s8099_s9 + $0x238] sm:$0xff] }
 0x413   :  { %3258 = vmatpush1.msra.mxu1 %v2731_v19  ;;  %v3410_v19 = vld [vmem:[%s8097_s7 + $0x4e8] sm:$0xff] }
 0x414   :  { %3259 = vmatprep.subr.mxu1 %v2724_v28  ;;  %v4227_v28 = vld [vmem:[%s8099_s9 + $0x230] sm:$0xff] }
 0x415   :  { %3260 = vmatpush1.msra.mxu1 %v2723_v39  ;;  %v3409_v39 = vld [vmem:[%s8097_s7 + $0x4e0] sm:$0xff] }
 0x416   :  { %3261 = vmatprep.subr.mxu1 %v2716_v40  ;;  %v4226_v40 = vld [vmem:[%s8099_s9 + $0x228] sm:$0xff] }
 0x417   :  { %3262 = vmatpush1.msra.mxu1 %v2715_v41  ;;  %v3402_v41 = vld [vmem:[%s8097_s7 + $0x4a8] sm:$0xff] }
 0x418   :  { %3263 = vmatprep.subr.mxu1 %v2708_v42  ;;  %v4225_v42 = vld [vmem:[%s8099_s9 + $0x220] sm:$0xff] }
 0x419   :  { %3264 = vmatpush1.msra.mxu1 %v2707_v44  ;;  %v3401_v44 = vld [vmem:[%s8097_s7 + $0x4a0] sm:$0xff] }
 0x41a   :  { %3265 = vmatprep.subr.mxu1 %v2700_v46  ;;  %v4224_v46 = vld [vmem:[%s8099_s9 + $0x218] sm:$0xff] }
 0x41b   :  { %3266 = vmatpush1.msra.mxu1 %v2699_v47  ;;  %v3394_v47 = vld [vmem:[%s8097_s7 + $0x468] sm:$0xff] }
 0x41c   :  { %3267 = vmatprep.subr.mxu1 %v2692_v30  ;;  %v4223_v30 = vld [vmem:[%s8099_s9 + $0x210] sm:$0xff] }
 0x41d   :  { %3268 = vmatpush1.msra.mxu1 %v2691_v43  ;;  %v3393_v43 = vld [vmem:[%s8097_s7 + $0x460] sm:$0xff] }
 0x41e   :  { %3269 = vmatprep.subr.mxu1 %v2684_v50  ;;  %v4221_v50 = vld [vmem:[%s8099_s9 + $0x200] sm:$0xff] }
 0x41f   :  { %3270 = vmatpush1.msra.mxu1 %v2683_v51  ;;  %v3385_v51 = vld [vmem:[%s8097_s7 + $0x420] sm:$0xff] }
 0x420   :  { %4821 = vmatmul.mubr.msk.f32.vlgmr.msra.gmra.mxu1 %vm2359_vm2, %v6532_v6  ;;  %3464 = vmatprep.subr.mxu1 %v3438_v23  ;;  %v4245_v6 = vld [vmem:[%s8099_s9 + $0x2c0] sm:$0xff]  ;;  %v4284_v23 = vld [vmem:[%s8099_s9 + $0x3f8] sm:$0xff] }
 0x421   :  { %3465 = vmatpush1.msra.mxu1 %v3437_v55  ;;  %3512 = vmatprep.mubr.f32.mxu1 %v5325_v1  ;;  %v3789_v55 = vld [vmem:[%s8097_s7 + $0x788] sm:$0xff] }
 0x422   :  { %3466 = vmatprep.subr.mxu1 %v3430_v9  ;;  %4503 = vmatpush1.msra.mxu0 %v4245_v6  ;;  %v4283_v9 = vld [vmem:[%s8099_s9 + $0x3f0] sm:$0xff]  ;;  %v4280_v6 = vld [vmem:[%s8099_s9 + $0x3d8] sm:$0xff] }
 0x423   :  { %3467 = vmatpush1.msra.mxu1 %v3429_v58  ;;  %4504 = vmatprep.subr.mxu0 %v4244_v62  ;;  %v4282_v58 = vld [vmem:[%s8099_s9 + $0x3e8] sm:$0xff]  ;;  %v4279_v62 = vld [vmem:[%s8099_s9 + $0x3d0] sm:$0xff] }
 0x424   :  { %3468 = vmatprep.subr.mxu1 %v3422_v60  ;;  %4505 = vmatpush1.msra.mxu0 %v4243_v57  ;;  %v3780_v60 = vld [vmem:[%s8097_s7 + $0x740] sm:$0xff]  ;;  %v4278_v57 = vld [vmem:[%s8099_s9 + $0x3c8] sm:$0xff] }
 0x425   :  { %3469 = vmatpush1.msra.mxu1 %v3421_v61  ;;  %4506 = vmatprep.subr.mxu0 %v4242_v0  ;;  %v3773_v61 = vld [vmem:[%s8097_s7 + $0x708] sm:$0xff]  ;;  %v4277_v0 = vld [vmem:[%s8099_s9 + $0x3c0] sm:$0xff] }
 0x426   :  { %3470 = vmatprep.subr.mxu1 %v3414_v52  ;;  %4507 = vmatpush1.msra.mxu0 %v4241_v3  ;;  %v3772_v52 = vld [vmem:[%s8097_s7 + $0x700] sm:$0xff]  ;;  %v4276_v3 = vld [vmem:[%s8099_s9 + $0x3b8] sm:$0xff] }
 0x427   :  { %3471 = vmatpush1.msra.mxu1 %v3413_v63  ;;  %4508 = vmatprep.subr.mxu0 %v4240_v5  ;;  %v3765_v63 = vld [vmem:[%s8097_s7 + $0x6c8] sm:$0xff]  ;;  %v4275_v5 = vld [vmem:[%s8099_s9 + $0x3b0] sm:$0xff] }
 0x428   :  { %3472 = vmatprep.subr.mxu1 %v3406_v2  ;;  %4509 = vmatpush1.msra.mxu0 %v4239_v8  ;;  %v3764_v2 = vld [vmem:[%s8097_s7 + $0x6c0] sm:$0xff]  ;;  %v4274_v8 = vld [vmem:[%s8099_s9 + $0x3a8] sm:$0xff] }
 0x429   :  { %3473 = vmatpush1.msra.mxu1 %v3405_v4  ;;  %4510 = vmatprep.subr.mxu0 %v4238_v13  ;;  %v3757_v4 = vld [vmem:[%s8097_s7 + $0x688] sm:$0xff]  ;;  %v4273_v13 = vld [vmem:[%s8099_s9 + $0x3a0] sm:$0xff] }
 0x42a   :  { %3474 = vmatprep.subr.mxu1 %v3398_v7  ;;  %4511 = vmatpush1.msra.mxu0 %v4237_v15  ;;  %v3756_v7 = vld [vmem:[%s8097_s7 + $0x680] sm:$0xff]  ;;  %v4272_v15 = vld [vmem:[%s8099_s9 + $0x398] sm:$0xff] }
 0x42b   :  { %3475 = vmatpush1.msra.mxu1 %v3397_v10  ;;  %4512 = vmatprep.subr.mxu0 %v4236_v18  ;;  %v3749_v10 = vld [vmem:[%s8097_s7 + $0x648] sm:$0xff]  ;;  %v4271_v18 = vld [vmem:[%s8099_s9 + $0x390] sm:$0xff] }
 0x42c   :  { %3476 = vmatprep.subr.mxu1 %v3390_v14  ;;  %4513 = vmatpush1.msra.mxu0 %v4235_v24  ;;  %v3748_v14 = vld [vmem:[%s8097_s7 + $0x640] sm:$0xff]  ;;  %v3801_v24 = vld [vmem:[%s8097_s7 + $0x7e8] sm:$0xff] }
 0x42d   :  { %3477 = vmatpush1.msra.mxu1 %v3389_v17  ;;  %4514 = vmatprep.subr.mxu0 %v4234_v25  ;;  %v3741_v17 = vld [vmem:[%s8097_s7 + $0x608] sm:$0xff]  ;;  %v3800_v25 = vld [vmem:[%s8097_s7 + $0x7e0] sm:$0xff] }
 0x42e   :  { %3478 = vmatprep.subr.mxu1 %v3382_v20  ;;  %4515 = vmatpush1.msra.mxu0 %v4233_v29  ;;  %v3740_v20 = vld [vmem:[%s8097_s7 + $0x600] sm:$0xff]  ;;  %v4268_v29 = vld [vmem:[%s8099_s9 + $0x378] sm:$0xff] }
 0x42f   :  { %3479 = vmatpush1.msra.mxu1 %v3381_v21  ;;  %4516 = vmatprep.subr.mxu0 %v4232_v31  ;;  %v4270_v21 = vld [vmem:[%s8099_s9 + $0x388] sm:$0xff]  ;;  %v4267_v31 = vld [vmem:[%s8099_s9 + $0x370] sm:$0xff] }
 0x430   :  { %4823 = vmatmul.mubr.msk.f32.vlgmr.msra.gmra.mxu1 %vm2359_vm2, %v6630_v27  ;;  %3606 = vmatprep.subr.mxu1 %v3442_v11  ;;  %v3793_v11 = vld [vmem:[%s8097_s7 + $0x7a8] sm:$0xff] }
 0x431   :  { %3607 = vmatpush1.msra.mxu1 %v3441_v16  ;;  %3654 = vmatprep.mubr.f32.mxu1 %v5325_v1  ;;  %v4269_v16 = vld [vmem:[%s8099_s9 + $0x380] sm:$0xff] }
 0x432   :  { %3608 = vmatprep.subr.mxu1 %v3434_v26  ;;  %4517 = vmatpush1.msra.mxu0 %v4231_v33  ;;  %v3792_v26 = vld [vmem:[%s8097_s7 + $0x7a0] sm:$0xff]  ;;  %v4266_v33 = vld [vmem:[%s8099_s9 + $0x368] sm:$0xff] }
 0x433   :  { %3609 = vmatpush1.msra.mxu1 %v3433_v22  ;;  %4518 = vmatprep.subr.mxu0 %v4230_v35  ;;  %v3785_v22 = vld [vmem:[%s8097_s7 + $0x768] sm:$0xff]  ;;  %v3776_v35 = vld [vmem:[%s8097_s7 + $0x720] sm:$0xff] }
 0x434   :  { %3610 = vmatprep.subr.mxu1 %v3426_v32  ;;  %4519 = vmatpush1.msra.mxu0 %v4229_v37  ;;  %v3784_v32 = vld [vmem:[%s8097_s7 + $0x760] sm:$0xff]  ;;  %v3769_v37 = vld [vmem:[%s8097_s7 + $0x6e8] sm:$0xff] }
 0x435   :  { %3611 = vmatpush1.msra.mxu1 %v3425_v34  ;;  %4520 = vmatprep.subr.mxu0 %v4228_v12  ;;  %v3777_v34 = vld [vmem:[%s8097_s7 + $0x728] sm:$0xff]  ;;  %v3768_v12 = vld [vmem:[%s8097_s7 + $0x6e0] sm:$0xff] }
 0x436   :  { %3612 = vmatprep.subr.mxu1 %v3418_v36  ;;  %4521 = vmatpush1.msra.mxu0 %v4227_v28  ;;  %v4264_v36 = vld [vmem:[%s8099_s9 + $0x358] sm:$0xff]  ;;  %v3761_v28 = vld [vmem:[%s8097_s7 + $0x6a8] sm:$0xff] }
 0x437   :  { %3613 = vmatpush1.msra.mxu1 %v3417_v38  ;;  %4522 = vmatprep.subr.mxu0 %v4226_v40  ;;  %v4263_v38 = vld [vmem:[%s8099_s9 + $0x350] sm:$0xff]  ;;  %v3760_v40 = vld [vmem:[%s8097_s7 + $0x6a0] sm:$0xff] }
 0x438   :  { %3614 = vmatprep.subr.mxu1 %v3410_v19  ;;  %4523 = vmatpush1.msra.mxu0 %v4225_v42  ;;  %v4262_v19 = vld [vmem:[%s8099_s9 + $0x348] sm:$0xff] }
 0x439   :  { %3615 = vmatpush1.msra.mxu1 %v3409_v39  ;;  %4524 = vmatprep.subr.mxu0 %v4224_v46  ;;  %v4261_v39 = vld [vmem:[%s8099_s9 + $0x340] sm:$0xff]  ;;  %v3753_v42 = vld [vmem:[%s8097_s7 + $0x668] sm:$0xff] }
 0x43a   :  { %3616 = vmatprep.subr.mxu1 %v3402_v41  ;;  %4525 = vmatpush1.msra.mxu0 %v4223_v30  ;;  %v4260_v41 = vld [vmem:[%s8099_s9 + $0x338] sm:$0xff]  ;;  %v3752_v46 = vld [vmem:[%s8097_s7 + $0x660] sm:$0xff]  ;;  %v3745_v30 = vld [vmem:[%s8097_s7 + $0x628] sm:$0xff] }
 0x43b   :  { %3617 = vmatpush1.msra.mxu1 %v3401_v44  ;;  %4526 = vmatprep.subr.mxu0 %v4222_v48  ;;  %v4259_v44 = vld [vmem:[%s8099_s9 + $0x330] sm:$0xff]  ;;  %v3744_v48 = vld [vmem:[%s8097_s7 + $0x620] sm:$0xff]  ;;  %s5328_s7 = smov [#allocation2]  }
 0x43c   :  { %3618 = vmatprep.subr.mxu1 %v3394_v47  ;;  %4527 = vmatpush1.msra.mxu0 %v4221_v50  ;;  %v4258_v47 = vld [vmem:[%s8099_s9 + $0x328] sm:$0xff]  ;;  %v4188_v50 = vld [vmem:[%s8099_s9 + $0xf8] sm:$0xff]  ;;  %s4736_s5 = sshll.u32 %s5328_s7, 4  ;;  %s4737_s5 = int_to_ptr.vmem [resolvable:$true] %s4736_s5 }
 0x43d   :  { %3619 = vmatpush1.msra.mxu1 %v3393_v43  ;;  %4528 = vmatprep.subr.mxu0 %v4284_v23  ;;  %v4257_v43 = vld [vmem:[%s8099_s9 + $0x320] sm:$0xff]  ;;  %v4255_v23 = vld [vmem:[%s8099_s9 + $0x310] sm:$0xff]  ;;  %s5303_s4 = scalar_lea.vmem %s4737_s5, 32  ;;  %p5308_p1 = scmp.lt.s32.totalorder %s4737_s5, %s4737_s5 }
 0x43e   :  { %3620 = vmatprep.subr.mxu1 %v3386_v49  ;;  %4529 = vmatpush2.msra.mxu0 %v4283_v9  ;;  %v4256_v49 = vld [vmem:[%s8099_s9 + $0x318] sm:$0xff]  ;;  %v4253_v9 = vld [vmem:[%s8099_s9 + $0x300] sm:$0xff]  ;;  %p5304_p0 = scmp.ne.s32.totalorder %s4737_s5, %s5303_s4  ;;  %p5309_p2 = scmp.lt.s32.totalorder %s5303_s4, %s5303_s4 }
 0x43f   :  { %3621 = vmatpush1.msra.mxu1 %v3385_v51  ;;  %4530 = vmatprep.subr.mxu0 %v4282_v58  ;;  %v4187_v51 = vld [vmem:[%s8099_s9 + $0xf0] sm:$0xff]  ;;  %v4380_v58 = vld [vmem:[%s8099_s9 + $0x6f8] sm:$0xff] }
 0x440   :  { %4825 = vmatmul.mubr.msk.f32.vlgmr.msra.gmra.mxu1 %vm2359_vm2, %v6630_v27  ;;  %3823 = vmatprep.subr.mxu1 %v3797_v53  ;;  %v4281_v27 = vld [vmem:[%s8099_s9 + $0x3e0] sm:$0xff]  ;;  %v4186_v53 = vld [vmem:[%s8099_s9 + $0xe8] sm:$0xff]  ;;  %p5310_p3 = por %p5309_p2, %p5308_p1 }
 0x441   :  { %3824 = vmatpush1.msra.mxu1 %v3796_v54  ;;  %3871 = vmatprep.mubr.f32.mxu1 %v5325_v1  ;;  %v4254_v54 = vld [vmem:[%s8099_s9 + $0x308] sm:$0xff] }
 0x442   :  { %3825 = vmatprep.subr.mxu1 %v3789_v55  ;;  %4531 = vmatpush2.msra.mxu0 %v4281_v27  ;;  %v4185_v55 = vld [vmem:[%s8099_s9 + $0xe0] sm:$0xff]  ;;  %p5311_p4 = pnand %p5310_p3, %p5304_p0 }
 0x443   :  { %3826 = vmatpush1.msra.mxu1 %v3788_v56  ;;  %4532 = vmatprep.subr.mxu0 %v4280_v6  ;;  %v4184_v56 = vld [vmem:[%s8099_s9 + $0xd8] sm:$0xff]  ;;  %v4181_v27 = vld [vmem:[%s8099_s9 + $0xc0] sm:$0xff]  ;;  %v4179_v6 = vld [vmem:[%s8099_s9 + $0xb0] sm:$0xff] }
 0x444   :  { %3827 = vmatprep.subr.mxu1 %v3781_v59  ;;  %4533 = vmatpush2.msra.mxu0 %v4279_v62  ;;  %v4182_v59 = vld [vmem:[%s8099_s9 + $0xc8] sm:$0xff]  ;;  %v4177_v62 = vld [vmem:[%s8099_s9 + $0xa0] sm:$0xff] }
 0x445   :  { %3828 = vmatpush1.msra.mxu1 %v3780_v60  ;;  %4534 = vmatprep.subr.mxu0 %v4278_v57  ;;  %v4180_v60 = vld [vmem:[%s8099_s9 + $0xb8] sm:$0xff]  ;;  %v4175_v57 = vld [vmem:[%s8099_s9 + $0x90] sm:$0xff] }
 0x446   :  { %3829 = vmatprep.subr.mxu1 %v3773_v61  ;;  %4535 = vmatpush2.msra.mxu0 %v4277_v0  ;;  %v4178_v61 = vld [vmem:[%s8099_s9 + $0xa8] sm:$0xff]  ;;  %v4173_v0 = vld [vmem:[%s8099_s9 + $0x80] sm:$0xff] }
 0x447   :  { %3830 = vmatpush1.msra.mxu1 %v3772_v52  ;;  %4536 = vmatprep.subr.mxu0 %v4276_v3  ;;  %v4176_v52 = vld [vmem:[%s8099_s9 + $0x98] sm:$0xff]  ;;  %v4171_v3 = vld [vmem:[%s8099_s9 + $0x70] sm:$0xff] }
 0x448   :  { %3831 = vmatprep.subr.mxu1 %v3765_v63  ;;  %4537 = vmatpush2.msra.mxu0 %v4275_v5  ;;  %v4174_v63 = vld [vmem:[%s8099_s9 + $0x88] sm:$0xff]  ;;  %v4169_v5 = vld [vmem:[%s8099_s9 + $0x60] sm:$0xff] }
 0x449   :  { %3832 = vmatpush1.msra.mxu1 %v3764_v2  ;;  %4538 = vmatprep.subr.mxu0 %v4274_v8  ;;  %v4172_v2 = vld [vmem:[%s8099_s9 + $0x78] sm:$0xff]  ;;  %v4167_v8 = vld [vmem:[%s8099_s9 + $0x50] sm:$0xff] }
 0x44a   :  { %3833 = vmatprep.subr.mxu1 %v3757_v4  ;;  %4539 = vmatpush2.msra.mxu0 %v4273_v13  ;;  %v4170_v4 = vld [vmem:[%s8099_s9 + $0x68] sm:$0xff]  ;;  %v4165_v13 = vld [vmem:[%s8099_s9 + $0x40] sm:$0xff] }
 0x44b   :  { %3834 = vmatpush1.msra.mxu1 %v3756_v7  ;;  %4540 = vmatprep.subr.mxu0 %v4272_v15  ;;  %v4168_v7 = vld [vmem:[%s8099_s9 + $0x58] sm:$0xff]  ;;  %v4163_v15 = vld [vmem:[%s8099_s9 + $0x30] sm:$0xff] }
 0x44c   :  { %3835 = vmatprep.subr.mxu1 %v3749_v10  ;;  %4541 = vmatpush2.msra.mxu0 %v4271_v18  ;;  %v4166_v10 = vld [vmem:[%s8099_s9 + $0x48] sm:$0xff]  ;;  %v4161_v18 = vld [vmem:[%s8099_s9 + $0x20] sm:$0xff] }
 0x44d   :  { %3836 = vmatpush1.msra.mxu1 %v3748_v14  ;;  %4542 = vmatprep.subr.mxu0 %v4270_v21  ;;  %v4164_v14 = vld [vmem:[%s8099_s9 + $0x38] sm:$0xff]  ;;  %v4159_v21 = vld [vmem:[%s8099_s9 + $0x10] sm:$0xff] }
 0x44e   :  { %3837 = vmatprep.subr.mxu1 %v3741_v17  ;;  %4543 = vmatpush2.msra.mxu0 %v4269_v16  ;;  %v4162_v17 = vld [vmem:[%s8099_s9 + $0x28] sm:$0xff]  ;;  %v4219_v16 = vld [vmem:[%s8099_s9 + $0x1f0] sm:$0xff] }
 0x44f   :  { %3838 = vmatpush1.msra.mxu1 %v3740_v20  ;;  %4544 = vmatprep.subr.mxu0 %v4268_v29  ;;  %v4160_v20 = vld [vmem:[%s8099_s9 + $0x18] sm:$0xff]  ;;  %v4217_v29 = vld [vmem:[%s8099_s9 + $0x1e0] sm:$0xff] }
 0x450   :  { %4827 = vmatmul.mubr.msk.f32.vlgmr.msra.gmra.mxu1 %vm2359_vm2, %v6836_v45  ;;  %3965 = vmatprep.subr.mxu1 %v3801_v24  ;;  %v4158_v24 = vld [vmem:[%s8099_s9 + $0x8] sm:$0xff] }
 0x451   :  { %3966 = vmatpush1.msra.mxu1 %v3800_v25  ;;  %4013 = vmatprep.mubr.f32.mxu1 %v5325_v1  ;;  %v4265_v1 = vld [vmem:[%s8099_s9 + $0x360] sm:$0xff] }
 0x452   :  { %3967 = vmatprep.subr.mxu1 %v3793_v11  ;;  %4545 = vmatpush2.msra.mxu0 %v4267_v31  ;;  %v4157_v25 = vld [vmem:[%s8099_s9] sm:$0xff]  ;;  %v4220_v11 = vld [vmem:[%s8099_s9 + $0x1f8] sm:$0xff]  ;;  %v4215_v31 = vld [vmem:[%s8099_s9 + $0x1d0] sm:$0xff] }
 0x453   :  { %3968 = vmatpush1.msra.mxu1 %v3792_v26  ;;  %4546 = vmatprep.subr.mxu0 %v4266_v33  ;;  %v4218_v26 = vld [vmem:[%s8099_s9 + $0x1e8] sm:$0xff]  ;;  %v4213_v33 = vld [vmem:[%s8099_s9 + $0x1c0] sm:$0xff] }
 0x454   :  { %3969 = vmatprep.subr.mxu1 %v3785_v22  ;;  %4547 = vmatpush2.msra.mxu0 %v4265_v1  ;;  %v4216_v22 = vld [vmem:[%s8099_s9 + $0x1d8] sm:$0xff]  ;;  %v4211_v1 = vld [vmem:[%s8099_s9 + $0x1b0] sm:$0xff] }
 0x455   :  { %3970 = vmatpush1.msra.mxu1 %v3784_v32  ;;  %4548 = vmatprep.subr.mxu0 %v4264_v36  ;;  %v4214_v32 = vld [vmem:[%s8099_s9 + $0x1c8] sm:$0xff]  ;;  %v4209_v36 = vld [vmem:[%s8099_s9 + $0x1a0] sm:$0xff] }
 0x456   :  { %3971 = vmatprep.subr.mxu1 %v3777_v34  ;;  %4549 = vmatpush2.msra.mxu0 %v4263_v38  ;;  %v4212_v34 = vld [vmem:[%s8099_s9 + $0x1b8] sm:$0xff]  ;;  %v4207_v38 = vld [vmem:[%s8099_s9 + $0x190] sm:$0xff] }
 0x457   :  { %3972 = vmatpush1.msra.mxu1 %v3776_v35  ;;  %4550 = vmatprep.subr.mxu0 %v4262_v19  ;;  %v4210_v35 = vld [vmem:[%s8099_s9 + $0x1a8] sm:$0xff]  ;;  %v4205_v19 = vld [vmem:[%s8099_s9 + $0x180] sm:$0xff] }
 0x458   :  { %3973 = vmatprep.subr.mxu1 %v3769_v37  ;;  %4551 = vmatpush2.msra.mxu0 %v4261_v39  ;;  %v4208_v37 = vld [vmem:[%s8099_s9 + $0x198] sm:$0xff]  ;;  %v4203_v39 = vld [vmem:[%s8099_s9 + $0x170] sm:$0xff] }
 0x459   :  { %3974 = vmatpush1.msra.mxu1 %v3768_v12  ;;  %4552 = vmatprep.subr.mxu0 %v4260_v41  ;;  %v4206_v12 = vld [vmem:[%s8099_s9 + $0x188] sm:$0xff]  ;;  %v4201_v41 = vld [vmem:[%s8099_s9 + $0x160] sm:$0xff] }
 0x45a   :  { %3975 = vmatprep.subr.mxu1 %v3761_v28  ;;  %4553 = vmatpush2.msra.mxu0 %v4259_v44  ;;  %v4204_v28 = vld [vmem:[%s8099_s9 + $0x178] sm:$0xff]  ;;  %v4199_v44 = vld [vmem:[%s8099_s9 + $0x150] sm:$0xff] }
 0x45b   :  { %3976 = vmatpush1.msra.mxu1 %v3760_v40  ;;  %4554 = vmatprep.subr.mxu0 %v4258_v47  ;;  %v4202_v40 = vld [vmem:[%s8099_s9 + $0x168] sm:$0xff]  ;;  %v4197_v47 = vld [vmem:[%s8099_s9 + $0x140] sm:$0xff] }
 0x45c   :  { %3977 = vmatprep.subr.mxu1 %v3753_v42  ;;  %4555 = vmatpush2.msra.mxu0 %v4257_v43  ;;  %v4200_v42 = vld [vmem:[%s8099_s9 + $0x158] sm:$0xff]  ;;  %v4195_v43 = vld [vmem:[%s8099_s9 + $0x130] sm:$0xff] }
 0x45d   :  { %3978 = vmatpush1.msra.mxu1 %v3752_v46  ;;  %4556 = vmatprep.subr.mxu0 %v4256_v49  ;;  %v4198_v46 = vld [vmem:[%s8099_s9 + $0x148] sm:$0xff]  ;;  %v4193_v49 = vld [vmem:[%s8099_s9 + $0x120] sm:$0xff] }
 0x45e   :  { %3979 = vmatprep.subr.mxu1 %v3745_v30  ;;  %4557 = vmatpush2.msra.mxu0 %v4255_v23  ;;  %v4196_v30 = vld [vmem:[%s8099_s9 + $0x138] sm:$0xff]  ;;  %v4190_v23 = vld [vmem:[%s8099_s9 + $0x108] sm:$0xff] }
 0x45f   :  { %3980 = vmatpush1.msra.mxu1 %v3744_v48  ;;  %4558 = vmatprep.subr.mxu0 %v4254_v54  ;;  %v4194_v48 = vld [vmem:[%s8099_s9 + $0x128] sm:$0xff] }
 0x460   :  { %4829 = vmatmul.mubr.msk.f32.vlgmr.msra.gmra.mxu1 %vm2359_vm2, %v6836_v45  ;;  %4425 = vmatprep.subr.mxu1 %v4188_v50  ;;  %v4183_v45 = vld [vmem:[%s8099_s9 + $0xd0] sm:$0xff]  ;;  %v4192_v50 = vld [vmem:[%s8099_s9 + $0x118] sm:$0xff] }
 0x461   :  { %4426 = vmatpush1.msra.mxu1 %v4187_v51  ;;  %4559 = vmatpush2.msra.mxu0 %v4253_v9  ;;  %v4191_v51 = vld [vmem:[%s8099_s9 + $0x110] sm:$0xff] }
 0x462   :  { %4427 = vmatprep.subr.mxu1 %v4186_v53  ;;  %4638 = vmatprep.subr.mxu0 %v4380_v58  ;;  %v4189_v53 = vld [vmem:[%s8099_s9 + $0x100] sm:$0xff] }
 0x463   :  { %4428 = vmatpush1.msra.mxu1 %v4185_v55  ;;  %v4316_v55 = vld [vmem:[%s8099_s9 + $0x4f8] sm:$0xff] }
 0x464   :  { %4429 = vmatprep.subr.mxu1 %v4184_v56 }
 0x465   :  { %4430 = vmatpush1.msra.mxu1 %v4183_v45 }
 0x466   :  { %4431 = vmatprep.subr.mxu1 %v4182_v59 }
 0x467   :  { %4432 = vmatpush1.msra.mxu1 %v4181_v27 }
 0x468   :  { %4433 = vmatprep.subr.mxu1 %v4180_v60 }
 0x469   :  { %4434 = vmatpush1.msra.mxu1 %v4179_v6 }
 0x46a   :  { %4435 = vmatprep.subr.mxu1 %v4178_v61 }
 0x46b   :  { %4436 = vmatpush1.msra.mxu1 %v4177_v62 }
 0x46c   :  { %4437 = vmatprep.subr.mxu1 %v4176_v52 }
 0x46d   :  { %4438 = vmatpush1.msra.mxu1 %v4175_v57 }
 0x46e   :  { %4439 = vmatprep.subr.mxu1 %v4174_v63 }
 0x46f   :  { %4440 = vmatpush1.msra.mxu1 %v4173_v0 }
 0x470   :  { %4441 = vmatprep.subr.mxu1 %v4172_v2 }
 0x471   :  { %4442 = vmatpush1.msra.mxu1 %v4171_v3 }
 0x472   :  { %4443 = vmatprep.subr.mxu1 %v4170_v4 }
 0x473   :  { %4444 = vmatpush1.msra.mxu1 %v4169_v5 }
 0x474   :  { %4445 = vmatprep.subr.mxu1 %v4168_v7 }
 0x475   :  { %4446 = vmatpush1.msra.mxu1 %v4167_v8 }
 0x476   :  { %4447 = vmatprep.subr.mxu1 %v4166_v10 }
 0x477   :  { %4448 = vmatpush1.msra.mxu1 %v4165_v13 }
 0x478   :  { %4449 = vmatprep.subr.mxu1 %v4164_v14  ;;  %v3376_v58 = vpop.f32.mrf.mxu0  ;;  %v4101_v14 = vlaneseq }
 0x479   :  { %4450 = vmatpush1.msra.mxu1 %v4163_v15 }
 0x47a   :  { %4451 = vmatprep.subr.mxu1 %v4162_v17  ;;  %v7642_v54 = vpop.f32.mrf.mxu1  ;;  %v3378_v59 = vpop.f32.mrf.mxu0  ;;  %v7657_v15 = vshrl.u32 %v4101_v14, 7  ;;  %v4350_v14 = vld [vmem:[%s8099_s9 + $0x608] sm:$0xff] }
 0x47b   :  { %4452 = vmatpush1.msra.mxu1 %v4161_v18 }
 0x47c   :  { %4453 = vmatprep.subr.mxu1 %v4160_v20  ;;  %v2879_v9 = vpop.f32.mrf.mxu1  ;;  %v4131_v18 = vsub.s32 7, %v7657_v15 }
 0x47d   :  { %4454 = vmatpush1.msra.mxu1 %v4159_v21  ;;  %v4111_v21 = vsub.s32 2, %v7657_v15 }
 0x47e   :  { %4455 = vmatprep.subr.mxu1 %v4158_v24 }
 0x47f   :  { %4456 = vmatpush1.msra.mxu1 %v4157_v25  ;;  %v4115_v25 = vsub.s32 3, %v7657_v15 }
 0x480   :  { %4457 = vmatprep.subr.mxu1 %v4220_v11 }
 0x481   :  { %4458 = vmatpush2.msra.mxu1 %v4219_v16 }
 0x482   :  { %4459 = vmatprep.subr.mxu1 %v4218_v26  ;;  %v7665_v26 = vld [vmem:[%s8098_s8] sm:$0xff] }
 0x483   :  { %4460 = vmatpush2.msra.mxu1 %v4217_v29 }
 0x484   :  { %4461 = vmatprep.subr.mxu1 %v4216_v22 }
 0x485   :  { %4462 = vmatpush2.msra.mxu1 %v4215_v31 }
 0x486   :  { %4463 = vmatprep.subr.mxu1 %v4214_v32  ;;  %v4132_v32 = vrot.slane %v7665_v26, %v4131_v18  ;;  %v4349_v18 = vld [vmem:[%s8099_s9 + $0x600] sm:$0xff] }
 0x487   :  { %4464 = vmatpush2.msra.mxu1 %v4213_v33  ;;  %v4112_v33 = vrot.slane %v7665_v26, %v4111_v21  ;;  %v4411_v21 = vld [vmem:[%s8099_s9 + $0x7f0] sm:$0xff] }
 0x488   :  { %4465 = vmatprep.subr.mxu1 %v4212_v34  ;;  %v3585_v60 = vpop.f32.mrf.mxu0 }
 0x489   :  { %4466 = vmatpush2.msra.mxu1 %v4211_v1 }
 0x48a   :  { %4467 = vmatprep.subr.mxu1 %v4210_v35  ;;  %v3587_v61 = vpop.f32.mrf.mxu0 }
 0x48b   :  { %4468 = vmatpush2.msra.mxu1 %v4209_v36  ;;  %v2948_v56 = vpop.f32.mrf.mxu1  ;;  %v4116_v36 = vrot.slane %v7665_v26, %v4115_v25 }
 0x48c   :  { %4469 = vmatprep.subr.mxu1 %v4208_v37 }
 0x48d   :  { %4470 = vmatpush2.msra.mxu1 %v4207_v38  ;;  %v2950_v45 = vpop.f32.mrf.mxu1 }
 0x48e   :  { %4471 = vmatprep.subr.mxu1 %v4206_v12 }
 0x48f   :  { %4472 = vmatpush2.msra.mxu1 %v4205_v19 }
 0x490   :  { %4473 = vmatprep.subr.mxu1 %v4204_v28 }
 0x491   :  { %4474 = vmatpush2.msra.mxu1 %v4203_v39 }
 0x492   :  { %4475 = vmatprep.subr.mxu1 %v4202_v40  ;;  %v4379_v40 = vld [vmem:[%s8099_s9 + $0x6f0] sm:$0xff] }
 0x493   :  { %4476 = vmatpush2.msra.mxu1 %v4201_v41 }
 0x494   :  { %4477 = vmatprep.subr.mxu1 %v4200_v42  ;;  %v4378_v42 = vld [vmem:[%s8099_s9 + $0x6e8] sm:$0xff] }
 0x495   :  { %4478 = vmatpush2.msra.mxu1 %v4199_v44  ;;  %v4377_v44 = vld [vmem:[%s8099_s9 + $0x6e0] sm:$0xff] }
 0x496   :  { %4479 = vmatprep.subr.mxu1 %v4198_v46  ;;  %v4376_v46 = vld [vmem:[%s8099_s9 + $0x6d8] sm:$0xff] }
 0x497   :  { %4480 = vmatpush2.msra.mxu1 %v4197_v47  ;;  %v4375_v47 = vld [vmem:[%s8099_s9 + $0x6d0] sm:$0xff] }
 0x498   :  { %4481 = vmatprep.subr.mxu1 %v4196_v30  ;;  %v4374_v30 = vld [vmem:[%s8099_s9 + $0x6c8] sm:$0xff] }
 0x499   :  { %4482 = vmatpush2.msra.mxu1 %v4195_v43  ;;  %v4373_v43 = vld [vmem:[%s8099_s9 + $0x6c0] sm:$0xff] }
 0x49a   :  { %4483 = vmatprep.subr.mxu1 %v4194_v48  ;;  %v3727_v57 = vpop.f32.mrf.mxu0  ;;  %v4372_v48 = vld [vmem:[%s8099_s9 + $0x6b8] sm:$0xff] }
 0x49b   :  { %4484 = vmatpush2.msra.mxu1 %v4193_v49  ;;  %v4371_v49 = vld [vmem:[%s8099_s9 + $0x6b0] sm:$0xff] }
 0x49c   :  { %4485 = vmatprep.subr.mxu1 %v4192_v50  ;;  %v3729_v0 = vpop.f32.mrf.mxu0  ;;  %v4370_v50 = vld [vmem:[%s8099_s9 + $0x6a8] sm:$0xff] }
 0x49d   :  { %4486 = vmatpush2.msra.mxu1 %v4191_v51  ;;  %v7647_v27 = vpop.f32.mrf.mxu1  ;;  %v4369_v51 = vld [vmem:[%s8099_s9 + $0x6a0] sm:$0xff] }
 0x49e   :  { %4487 = vmatprep.subr.mxu1 %v4190_v23  ;;  %v4368_v23 = vld [vmem:[%s8099_s9 + $0x698] sm:$0xff] }
 0x49f   :  { %4488 = vmatpush2.msra.mxu1 %v4189_v53  ;;  %v7649_v6 = vpop.f32.mrf.mxu1  ;;  %v4367_v53 = vld [vmem:[%s8099_s9 + $0x690] sm:$0xff] }
 0x4a0   :  { %4567 = vmatprep.subr.mxu1 %v4316_v55  ;;  %v4366_v55 = vld [vmem:[%s8099_s9 + $0x688] sm:$0xff] }
 0x4ac   :  { %v3944_v2 = vpop.f32.mrf.mxu0 }
 0x4ae   :  { %v3946_v3 = vpop.f32.mrf.mxu0 }
 0x4af   :  { %v3090_v62 = vpop.f32.mrf.mxu1 }
 0x4b0   :  { %v3377_v52 = vadd.f32 %v3376_v58, %v3090_v62  ;;  %v4363_v58 = vld [vmem:[%s8099_s9 + $0x670] sm:$0xff]  ;;  %v4358_v62 = vld [vmem:[%s8099_s9 + $0x648] sm:$0xff] }
 0x4b1   :  { %v3092_v4 = vpop.f32.mrf.mxu1 }
 0x4b2   :  { %v3738_v63 = vadd.f32 %v3727_v57, %v3377_v52  ;;  %v3379_v17 = vadd.f32 %v3378_v59, %v3092_v4  ;;  %v4361_v59 = vld [vmem:[%s8099_s9 + $0x660] sm:$0xff]  ;;  %v4356_v57 = vld [vmem:[%s8099_s9 + $0x638] sm:$0xff] }
 0x4b3   :  { %v4357_v52 = vld [vmem:[%s8099_s9 + $0x640] sm:$0xff]  ;;  %v4352_v4 = vld [vmem:[%s8099_s9 + $0x618] sm:$0xff] }
 0x4b4   :  { %v3739_v29 = vadd.f32 %v3729_v0, %v3379_v17  ;;  %v4355_v0 = vld [vmem:[%s8099_s9 + $0x630] sm:$0xff] }
 0x4be   :  { %v4086_v5 = vpop.f32.mrf.mxu0 }
 0x4bf   :  { %v7651_v7 = vadd.f32 %v4086_v5, %v3738_v63 }
 0x4c0   :  { %v7653_v8 = vpop.f32.mrf.mxu1  ;;  %v4088_v11 = vpop.f32.mrf.mxu0 }
 0x4c1   :  { %v4098_v34 = vadd.f32 %v4088_v11, %v3739_v29  ;;  %v4409_v11 = vld [vmem:[%s8099_s9 + $0x7e0] sm:$0xff]  ;;  %v4408_v29 = vld [vmem:[%s8099_s9 + $0x7d8] sm:$0xff] }
 0x4c2   :  { %v3165_v10 = vpop.f32.mrf.mxu1 }
 0x4c3   :  { %v7655_v13 = vadd.f32 %v3165_v10, %v2879_v9  ;;  %v4148_v12 = vadd.f32 %v4132_v32, %v4098_v34  ;;  %v4365_v9 = vld [vmem:[%s8099_s9 + $0x680] sm:$0xff]  ;;  %v4351_v10 = vld [vmem:[%s8099_s9 + $0x610] sm:$0xff]  ;;  %v4404_v34 = vld [vmem:[%s8099_s9 + $0x7b8] sm:$0xff] }
 0x4c5   :  { %v4156_v41 = vmax.f32 %v4148_v12, 0.0  ;;  %v4398_v12 = vld [vmem:[%s8099_s9 + $0x788] sm:$0xff] }
 0x4d0   :  { %v3234_v20 = vpop.f32.mrf.mxu1 }
 0x4d1   :  { %v3235_v24 = vadd.f32 %v3234_v20, %v2948_v56  ;;  %v4364_v56 = vld [vmem:[%s8099_s9 + $0x678] sm:$0xff] }
 0x4d2   :  { %v3236_v16 = vpop.f32.mrf.mxu1  ;;  %v4412_v20 = vld [vmem:[%s8099_s9 + $0x7f8] sm:$0xff] }
 0x4d3   :  { %v3734_v22 = vadd.f32 %v3585_v60, %v3235_v24  ;;  %v3237_v31 = vadd.f32 %v3236_v16, %v2950_v45  ;;  %v4362_v45 = vld [vmem:[%s8099_s9 + $0x668] sm:$0xff]  ;;  %v4360_v60 = vld [vmem:[%s8099_s9 + $0x658] sm:$0xff] }
 0x4d4   :  { %v4410_v24 = vld [vmem:[%s8099_s9 + $0x7e8] sm:$0xff] }
 0x4d5   :  { %v4093_v1 = vadd.f32 %v3944_v2, %v3734_v22  ;;  %v3735_v35 = vadd.f32 %v3587_v61, %v3237_v31  ;;  %v4359_v61 = vld [vmem:[%s8099_s9 + $0x650] sm:$0xff]  ;;  %v4354_v2 = vld [vmem:[%s8099_s9 + $0x628] sm:$0xff] }
 0x4d6   :  { %v4407_v31 = vld [vmem:[%s8099_s9 + $0x7d0] sm:$0xff] }
 0x4d7   :  { %v4094_v37 = vadd.f32 %v3946_v3, %v3735_v35  ;;  %v4143_v38 = vadd.f32 %v4112_v33, %v4093_v1  ;;  %v4353_v3 = vld [vmem:[%s8099_s9 + $0x620] sm:$0xff]  ;;  %v4406_v33 = vld [vmem:[%s8099_s9 + $0x7c8] sm:$0xff]  ;;  %v4403_v1 = vld [vmem:[%s8099_s9 + $0x7b0] sm:$0xff] }
 0x4d8   :  { %v4402_v35 = vld [vmem:[%s8099_s9 + $0x7a8] sm:$0xff] }
 0x4d9   :  { %v4144_v19 = vadd.f32 %v4116_v36, %v4094_v37  ;;  %v4151_v39 = vmax.f32 %v4143_v38, 0.0  ;;  %v4401_v36 = vld [vmem:[%s8099_s9 + $0x7a0] sm:$0xff]  ;;  %v4400_v37 = vld [vmem:[%s8099_s9 + $0x798] sm:$0xff]  ;;  %v4399_v38 = vld [vmem:[%s8099_s9 + $0x790] sm:$0xff] }
 0x4db   :  { %v4152_v28 = vmax.f32 %v4144_v19, 0.0  ;;  %v4397_v19 = vld [vmem:[%s8099_s9 + $0x780] sm:$0xff] }
 0x4dd   :  { %4560 = vmatprep.mubr.f32.mxu0 %v4152_v28  ;;  %v4396_v28 = vld [vmem:[%s8099_s9 + $0x778] sm:$0xff] }
 0x4de   :  { %4561 = vmatmul.mubr.f32.vlgmr.msra.gmra.mxu0 %v4151_v39  ;;  %v4395_v39 = vld [vmem:[%s8099_s9 + $0x770] sm:$0xff] }
 0x4df   :  { %4639 = vmatpush1.msra.mxu0 %v4379_v40  ;;  %4702 = vmatprep.mubr.f32.mxu0 %v4156_v41  ;;  %v4103_v40 = vsub.s32 0, %v7657_v15  ;;  %v3164_v41 = vadd.f32 %v7653_v8, %v7642_v54  ;;  %v4392_v54 = vld [vmem:[%s8099_s9 + $0x758] sm:$0xff]  ;;  %v4127_v8 = vsub.s32 6, %v7657_v15 }
 0x4e0   :  { %4640 = vmatprep.subr.mxu0 %v4378_v42  ;;  %v3305_v63 = vpop.f32.mrf.mxu1  ;;  %v4394_v42 = vld [vmem:[%s8099_s9 + $0x768] sm:$0xff] }
 0x4e1   :  { %4641 = vmatpush1.msra.mxu0 %v4377_v44  ;;  %v3306_v16 = vadd.f32 %v3305_v63, %v7647_v27  ;;  %v4405_v27 = vld [vmem:[%s8099_s9 + $0x7c0] sm:$0xff]  ;;  %v4107_v44 = vsub.s32 1, %v7657_v15 }
 0x4e2   :  { %4642 = vmatprep.subr.mxu0 %v4376_v46  ;;  %v7754_v5 = vpop.f32.mrf.mxu1 }
 0x4e3   :  { %4643 = vmatpush1.msra.mxu0 %v4375_v47  ;;  %v4393_v47 = vld [vmem:[%s8099_s9 + $0x760] sm:$0xff] }
 0x4e4   :  { %4644 = vmatprep.subr.mxu0 %v4374_v30 }
 0x4e5   :  { %4645 = vmatpush1.msra.mxu0 %v4373_v43 }
 0x4e6   :  { %4646 = vmatprep.subr.mxu0 %v4372_v48  ;;  %v4104_v48 = vrot.slane %v7665_v26, %v4103_v40 }
 0x4e7   :  { %4647 = vmatpush1.msra.mxu0 %v4371_v49  ;;  %v4391_v49 = vld [vmem:[%s8099_s9 + $0x750] sm:$0xff] }
 0x4e8   :  { %4648 = vmatprep.subr.mxu0 %v4370_v50 }
 0x4e9   :  { %4649 = vmatpush1.msra.mxu0 %v4369_v51 }
 0x4ea   :  { %4650 = vmatprep.subr.mxu0 %v4368_v23  ;;  %v4108_v23 = vrot.slane %v7665_v26, %v4107_v44 }
 0x4eb   :  { %4651 = vmatpush1.msra.mxu0 %v4367_v53  ;;  %v4390_v53 = vld [vmem:[%s8099_s9 + $0x748] sm:$0xff] }
 0x4ec   :  { %4652 = vmatprep.subr.mxu0 %v4366_v55 }
 0x4ed   :  { %4653 = vmatpush1.msra.mxu0 %v4365_v9  ;;  %v4389_v9 = vld [vmem:[%s8099_s9 + $0x740] sm:$0xff] }
 0x4ee   :  { %4654 = vmatprep.subr.mxu0 %v4364_v56 }
 0x4ef   :  { %4655 = vmatpush1.msra.mxu0 %v4363_v58  ;;  %v4128_v58 = vrot.slane %v7665_v26, %v4127_v8  ;;  %v4291_v8 = vld [vmem:[%s8099_s9 + $0x430] sm:$0xff] }
 0x4f0   :  { %4656 = vmatprep.subr.mxu0 %v4362_v45  ;;  %v3514_v17 = vpop.f32.mrf.mxu1 }
 0x4f1   :  { %4657 = vmatpush1.msra.mxu0 %v4361_v59  ;;  %v3732_v30 = vadd.f32 %v3514_v17, %v3164_v41  ;;  %v4387_v59 = vld [vmem:[%s8099_s9 + $0x730] sm:$0xff]  ;;  %v4147_v63 = vadd.f32 %v4128_v58, %v7651_v7  ;;  %v4382_v7 = vld [vmem:[%s8099_s9 + $0x708] sm:$0xff]  ;;  %v4312_v17 = vld [vmem:[%s8099_s9 + $0x4d8] sm:$0xff] }
 0x4f2   :  { %4658 = vmatprep.subr.mxu0 %v4360_v60  ;;  %v3516_v25 = vpop.f32.mrf.mxu1  ;;  %v4297_v41 = vld [vmem:[%s8099_s9 + $0x460] sm:$0xff]  ;;  %v4343_v58 = vld [vmem:[%s8099_s9 + $0x5d0] sm:$0xff] }
 0x4f3   :  { %4659 = vmatpush1.msra.mxu0 %v4359_v61  ;;  %v3733_v50 = vadd.f32 %v3516_v25, %v7655_v13  ;;  %v4388_v13 = vld [vmem:[%s8099_s9 + $0x738] sm:$0xff]  ;;  %v4386_v61 = vld [vmem:[%s8099_s9 + $0x728] sm:$0xff]  ;;  %v4309_v25 = vld [vmem:[%s8099_s9 + $0x4c0] sm:$0xff] }
 0x4f4   :  { %4660 = vmatprep.subr.mxu0 %v4358_v62  ;;  %v4385_v62 = vld [vmem:[%s8099_s9 + $0x720] sm:$0xff] }
 0x4f5   :  { %4661 = vmatpush1.msra.mxu0 %v4357_v52 }
 0x4f6   :  { %4662 = vmatprep.subr.mxu0 %v4356_v57  ;;  %v4384_v57 = vld [vmem:[%s8099_s9 + $0x718] sm:$0xff] }
 0x4f7   :  { %4663 = vmatpush1.msra.mxu0 %v4355_v0 }
 0x4f8   :  { %4664 = vmatprep.subr.mxu0 %v4354_v2  ;;  %v4315_v2 = vld [vmem:[%s8099_s9 + $0x4f0] sm:$0xff] }
 0x4f9   :  { %4665 = vmatpush1.msra.mxu0 %v4353_v3  ;;  %v4383_v3 = vld [vmem:[%s8099_s9 + $0x710] sm:$0xff] }
 0x4fa   :  { %4666 = vmatprep.subr.mxu0 %v4352_v4  ;;  %v4314_v4 = vld [vmem:[%s8099_s9 + $0x4e8] sm:$0xff] }
 0x4fb   :  { %4667 = vmatpush1.msra.mxu0 %v4351_v10  ;;  %v4313_v10 = vld [vmem:[%s8099_s9 + $0x4e0] sm:$0xff] }
 0x4fc   :  { %4668 = vmatprep.subr.mxu0 %v4350_v14  ;;  %v4381_v14 = vld [vmem:[%s8099_s9 + $0x700] sm:$0xff] }
 0x4fd   :  { %4669 = vmatpush1.msra.mxu0 %v4349_v18  ;;  %v4155_v18 = vmax.f32 %v4147_v63, 0.0  ;;  %v4335_v63 = vld [vmem:[%s8099_s9 + $0x590] sm:$0xff] }
 0x4fe   :  { %4670 = vmatprep.subr.mxu0 %v4412_v20  ;;  %v4311_v20 = vld [vmem:[%s8099_s9 + $0x4d0] sm:$0xff] }
 0x4ff   :  { %4671 = vmatpush2.msra.mxu0 %v4411_v21  ;;  %v4310_v21 = vld [vmem:[%s8099_s9 + $0x4c8] sm:$0xff] }
 0x500   :  { %4672 = vmatprep.subr.mxu0 %v4410_v24  ;;  %v3656_v22 = vpop.f32.mrf.mxu1  ;;  %v4123_v24 = vsub.s32 5, %v7657_v15 }
 0x501   :  { %v7784_v32 = vadd.f32 %v3656_v22, %v3306_v16  ;;  %4673 = vmatpush2.msra.mxu0 %v4409_v11  ;;  %v3308_v11 = vadd.f32 %v7754_v5, %v7649_v6  ;;  %v4308_v16 = vld [vmem:[%s8099_s9 + $0x4b8] sm:$0xff]  ;;  %v4307_v22 = vld [vmem:[%s8099_s9 + $0x4b0] sm:$0xff]  ;;  %v4306_v6 = vld [vmem:[%s8099_s9 + $0x4a8] sm:$0xff] }
 0x502   :  { %4674 = vmatprep.subr.mxu0 %v4408_v29  ;;  %v7829_v46 = vpop.f32.mrf.mxu1 }
 0x503   :  { %4675 = vmatpush2.msra.mxu0 %v4407_v31  ;;  %v3737_v31 = vadd.f32 %v7829_v46, %v3308_v11  ;;  %v4295_v46 = vld [vmem:[%s8099_s9 + $0x450] sm:$0xff] }
 0x504   :  { %4676 = vmatprep.subr.mxu0 %v4406_v33  ;;  %v4124_v33 = vrot.slane %v7665_v26, %v4123_v24  ;;  %v4324_v24 = vld [vmem:[%s8099_s9 + $0x538] sm:$0xff] }
 0x505   :  { %4677 = vmatpush2.msra.mxu0 %v4405_v27  ;;  %v4305_v27 = vld [vmem:[%s8099_s9 + $0x4a0] sm:$0xff] }
 0x506   :  { %4678 = vmatprep.subr.mxu0 %v4404_v34 }
 0x507   :  { %4679 = vmatpush2.msra.mxu0 %v4403_v1  ;;  %v4304_v1 = vld [vmem:[%s8099_s9 + $0x498] sm:$0xff] }
 0x508   :  { %4680 = vmatprep.subr.mxu0 %v4402_v35  ;;  %v4303_v35 = vld [vmem:[%s8099_s9 + $0x490] sm:$0xff] }
 0x509   :  { %4681 = vmatpush2.msra.mxu0 %v4401_v36 }
 0x50a   :  { %4682 = vmatprep.subr.mxu0 %v4400_v37  ;;  %v4302_v37 = vld [vmem:[%s8099_s9 + $0x488] sm:$0xff] }
 0x50b   :  { %4683 = vmatpush2.msra.mxu0 %v4399_v38  ;;  %v4301_v38 = vld [vmem:[%s8099_s9 + $0x480] sm:$0xff] }
 0x50c   :  { %4684 = vmatprep.subr.mxu0 %v4398_v12 }
 0x50d   :  { %4685 = vmatpush2.msra.mxu0 %v4397_v19  ;;  %v4300_v19 = vld [vmem:[%s8099_s9 + $0x478] sm:$0xff] }
 0x50e   :  { %4686 = vmatprep.subr.mxu0 %v4396_v28  ;;  %v4299_v28 = vld [vmem:[%s8099_s9 + $0x470] sm:$0xff] }
 0x50f   :  { %4687 = vmatpush2.msra.mxu0 %v4395_v39  ;;  %v4298_v39 = vld [vmem:[%s8099_s9 + $0x468] sm:$0xff] }
 0x510   :  { %4688 = vmatprep.subr.mxu0 %v4394_v42  ;;  %v3873_v43 = vpop.f32.mrf.mxu1  ;;  %v4296_v42 = vld [vmem:[%s8099_s9 + $0x458] sm:$0xff] }
 0x511   :  { %v4091_v51 = vadd.f32 %v3873_v43, %v3732_v30  ;;  %4689 = vmatpush2.msra.mxu0 %v4393_v47  ;;  %v4294_v47 = vld [vmem:[%s8099_s9 + $0x448] sm:$0xff]  ;;  %v4293_v30 = vld [vmem:[%s8099_s9 + $0x440] sm:$0xff] }
 0x512   :  { %4690 = vmatprep.subr.mxu0 %v4392_v54  ;;  %v3875_v55 = vpop.f32.mrf.mxu1  ;;  %v4292_v54 = vld [vmem:[%s8099_s9 + $0x438] sm:$0xff]  ;;  %v4290_v43 = vld [vmem:[%s8099_s9 + $0x428] sm:$0xff] }
 0x513   :  { %v4092_v56 = vadd.f32 %v3875_v55, %v3733_v50  ;;  %4691 = vmatpush2.msra.mxu0 %v4391_v49  ;;  %v4141_v45 = vadd.f32 %v4104_v48, %v4091_v51  ;;  %v4289_v48 = vld [vmem:[%s8099_s9 + $0x420] sm:$0xff]  ;;  %v4288_v49 = vld [vmem:[%s8099_s9 + $0x418] sm:$0xff]  ;;  %v4287_v50 = vld [vmem:[%s8099_s9 + $0x410] sm:$0xff] }
 0x514   :  { %4692 = vmatprep.subr.mxu0 %v4390_v53  ;;  %v4286_v51 = vld [vmem:[%s8099_s9 + $0x408] sm:$0xff]  ;;  %v4348_v53 = vld [vmem:[%s8099_s9 + $0x5f8] sm:$0xff]  ;;  %v4347_v55 = vld [vmem:[%s8099_s9 + $0x5f0] sm:$0xff] }
 0x515   :  { %v4142_v60 = vadd.f32 %v4108_v23, %v4092_v56  ;;  %4693 = vmatpush2.msra.mxu0 %v4389_v9  ;;  %v4149_v0 = vmax.f32 %v4141_v45, 0.0  ;;  %v4285_v23 = vld [vmem:[%s8099_s9 + $0x400] sm:$0xff]  ;;  %v4346_v9 = vld [vmem:[%s8099_s9 + $0x5e8] sm:$0xff] }
 0x516   :  { %4694 = vmatprep.subr.mxu0 %v4388_v13  ;;  %v4345_v56 = vld [vmem:[%s8099_s9 + $0x5e0] sm:$0xff]  ;;  %v4344_v13 = vld [vmem:[%s8099_s9 + $0x5d8] sm:$0xff]  ;;  %v4342_v45 = vld [vmem:[%s8099_s9 + $0x5c8] sm:$0xff] }
 0x517   :  { %v4150_v52 = vmax.f32 %v4142_v60, 0.0  ;;  %4695 = vmatpush2.msra.mxu0 %v4387_v59  ;;  %v4341_v59 = vld [vmem:[%s8099_s9 + $0x5c0] sm:$0xff]  ;;  %v4340_v60 = vld [vmem:[%s8099_s9 + $0x5b8] sm:$0xff] }
 0x518   :  { %4696 = vmatprep.subr.mxu0 %v4386_v61  ;;  %v4339_v61 = vld [vmem:[%s8099_s9 + $0x5b0] sm:$0xff] }
 0x519   :  { %4697 = vmatpush2.msra.mxu0 %v4385_v62  ;;  %4489 = vmatprep.mubr.f32.mxu1 %v4150_v52  ;;  %v4338_v62 = vld [vmem:[%s8099_s9 + $0x5a8] sm:$0xff]  ;;  %v4337_v52 = vld [vmem:[%s8099_s9 + $0x5a0] sm:$0xff] }
 0x51a   :  { %4698 = vmatprep.subr.mxu0 %v4384_v57  ;;  %4490 = vmatmul.mubr.f32.vlgmr.msra.gmra.mxu1 %v4149_v0  ;;  %v4336_v57 = vld [vmem:[%s8099_s9 + $0x598] sm:$0xff]  ;;  %v4334_v0 = vld [vmem:[%s8099_s9 + $0x588] sm:$0xff] }
 0x51b   :  { %4568 = vmatpush1.msra.mxu1 %v4315_v2  ;;  %4699 = vmatpush2.msra.mxu0 %v4383_v3  ;;  %v4333_v2 = vld [vmem:[%s8099_s9 + $0x580] sm:$0xff]  ;;  %v4332_v3 = vld [vmem:[%s8099_s9 + $0x578] sm:$0xff] }
 0x51c   :  { %4569 = vmatprep.subr.mxu1 %v4314_v4  ;;  %4700 = vmatprep.subr.mxu0 %v4382_v7  ;;  %v4331_v4 = vld [vmem:[%s8099_s9 + $0x570] sm:$0xff]  ;;  %v4330_v7 = vld [vmem:[%s8099_s9 + $0x568] sm:$0xff] }
 0x51d   :  { %4570 = vmatpush1.msra.mxu1 %v4313_v10  ;;  %4701 = vmatpush2.msra.mxu0 %v4381_v14  ;;  %v4329_v10 = vld [vmem:[%s8099_s9 + $0x560] sm:$0xff]  ;;  %v4328_v14 = vld [vmem:[%s8099_s9 + $0x558] sm:$0xff] }
 0x51e   :  { %4571 = vmatprep.subr.mxu1 %v4312_v17  ;;  %4703 = vmatmul.mubr.f32.vlgmr.msra.gmra.mxu0 %v4155_v18  ;;  %v4119_v17 = vsub.s32 4, %v7657_v15  ;;  %v4327_v18 = vld [vmem:[%s8099_s9 + $0x550] sm:$0xff] }
 0x51f   :  { %4572 = vmatpush1.msra.mxu1 %v4311_v20  ;;  %v4326_v20 = vld [vmem:[%s8099_s9 + $0x548] sm:$0xff] }
 0x520   :  { %4573 = vmatprep.subr.mxu1 %v4310_v21  ;;  %v7907_v29 = vpop.f32.mrf.mxu1  ;;  %v4325_v21 = vld [vmem:[%s8099_s9 + $0x540] sm:$0xff]  ;;  %v4120_v11 = vrot.slane %v7665_v26, %v4119_v17  ;;  %v4320_v26 = vld [vmem:[%s8099_s9 + $0x518] sm:$0xff] }
 0x521   :  { %4574 = vmatpush1.msra.mxu1 %v4309_v25  ;;  %v4095_v25 = vadd.f32 %v7907_v29, %v7784_v32  ;;  %v4319_v29 = vld [vmem:[%s8099_s9 + $0x510] sm:$0xff] }
 0x522   :  { %4575 = vmatprep.subr.mxu1 %v4308_v16  ;;  %v4017_v5 = vpop.f32.mrf.mxu1  ;;  %v4323_v16 = vld [vmem:[%s8099_s9 + $0x530] sm:$0xff] }
 0x523   :  { %v4096_v34 = vadd.f32 %v4017_v5, %v3737_v31  ;;  %4576 = vmatpush1.msra.mxu1 %v4307_v22  ;;  %v4322_v22 = vld [vmem:[%s8099_s9 + $0x528] sm:$0xff]  ;;  %v4321_v31 = vld [vmem:[%s8099_s9 + $0x520] sm:$0xff]  ;;  %v4145_v32 = vadd.f32 %v4120_v11, %v4095_v25 }
 0x524   :  { %4577 = vmatprep.subr.mxu1 %v4306_v6  ;;  %v4317_v6 = vld [vmem:[%s8099_s9 + $0x500] sm:$0xff] }
 0x525   :  { %v4146_v36 = vadd.f32 %v4124_v33, %v4096_v34  ;;  %4578 = vmatpush1.msra.mxu1 %v4305_v27  ;;  %v4318_v33 = vld [vmem:[%s8099_s9 + $0x508] sm:$0xff]  ;;  %v4153_v5 = vmax.f32 %v4145_v32, 0.0  ;;  %v5327_v27 = vmov 0   ;;  %v4413_v34 = vld [vmem:[%s8100_s10] sm:$0x3] }
 0x526   :  { %4579 = vmatprep.subr.mxu1 %v4304_v1  ;;  %5301 = vset.pattern.permute.xlu0 %v5327_v27  ;;  %v4418_v1 = vrot.slane %v4413_v34, %v4103_v40 }
 0x527   :  { %v4154_v12 = vmax.f32 %v4146_v36, 0.0  ;;  %4580 = vmatpush1.msra.mxu1 %v4303_v35 }
 0x528   :  { %4581 = vmatprep.subr.mxu1 %v4302_v37 }
 0x529   :  { %4582 = vmatpush1.msra.mxu1 %v4301_v38  ;;  %4631 = vmatprep.mubr.f32.mxu1 %v4154_v12 }
 0x52a   :  { %4583 = vmatprep.subr.mxu1 %v4300_v19 }
 0x52b   :  { %4584 = vmatpush1.msra.mxu1 %v4299_v28 }
 0x52c   :  { %4585 = vmatprep.subr.mxu1 %v4298_v39 }
 0x52d   :  { %4586 = vmatpush1.msra.mxu1 %v4297_v41 }
 0x52e   :  { %4587 = vmatprep.subr.mxu1 %v4296_v42 }
 0x52f   :  { %4588 = vmatpush1.msra.mxu1 %v4295_v46 }
 0x530   :  { %4589 = vmatprep.subr.mxu1 %v4294_v47  ;;  %v4422_v47 = vrot.slane %v4413_v34, %v4107_v44 }
 0x531   :  { %4590 = vmatpush1.msra.mxu1 %v4293_v30 }
 0x532   :  { %4591 = vmatprep.subr.mxu1 %v4292_v54 }
 0x533   :  { %4592 = vmatpush1.msra.mxu1 %v4291_v8 }
 0x534   :  { %4593 = vmatprep.subr.mxu1 %v4290_v43 }
 0x535   :  { %4594 = vmatpush1.msra.mxu1 %v4289_v48 }
 0x536   :  { %4595 = vmatprep.subr.mxu1 %v4288_v49 }
 0x537   :  { %4596 = vmatpush1.msra.mxu1 %v4287_v50 }
 0x538   :  { %4597 = vmatprep.subr.mxu1 %v4286_v51 }
 0x539   :  { %4598 = vmatpush1.msra.mxu1 %v4285_v23 }
 0x53a   :  { %4599 = vmatprep.subr.mxu1 %v4348_v53 }
 0x53b   :  { %4600 = vmatpush2.msra.mxu1 %v4347_v55 }
 0x53c   :  { %4601 = vmatprep.subr.mxu1 %v4346_v9 }
 0x53d   :  { %4602 = vmatpush2.msra.mxu1 %v4345_v56 }
 0x53e   :  { %4603 = vmatprep.subr.mxu1 %v4344_v13 }
 0x53f   :  { %4604 = vmatpush2.msra.mxu1 %v4343_v58 }
 0x540   :  { %4605 = vmatprep.subr.mxu1 %v4342_v45 }
 0x541   :  { %4606 = vmatpush2.msra.mxu1 %v4341_v59 }
 0x542   :  { %4607 = vmatprep.subr.mxu1 %v4340_v60 }
 0x543   :  { %4608 = vmatpush2.msra.mxu1 %v4339_v61 }
 0x544   :  { %4609 = vmatprep.subr.mxu1 %v4338_v62 }
 0x545   :  { %4610 = vmatpush2.msra.mxu1 %v4337_v52 }
 0x546   :  { %4611 = vmatprep.subr.mxu1 %v4336_v57 }
 0x547   :  { %4612 = vmatpush2.msra.mxu1 %v4335_v63 }
 0x548   :  { %4613 = vmatprep.subr.mxu1 %v4334_v0 }
 0x549   :  { %4614 = vmatpush2.msra.mxu1 %v4333_v2 }
 0x54a   :  { %4615 = vmatprep.subr.mxu1 %v4332_v3 }
 0x54b   :  { %4616 = vmatpush2.msra.mxu1 %v4331_v4 }
 0x54c   :  { %4617 = vmatprep.subr.mxu1 %v4330_v7 }
 0x54d   :  { %4618 = vmatpush2.msra.mxu1 %v4329_v10 }
 0x54e   :  { %4619 = vmatprep.subr.mxu1 %v4328_v14 }
 0x54f   :  { %4620 = vmatpush2.msra.mxu1 %v4327_v18 }
 0x550   :  { %4621 = vmatprep.subr.mxu1 %v4326_v20 }
 0x551   :  { %4622 = vmatpush2.msra.mxu1 %v4325_v21 }
 0x552   :  { %4623 = vmatprep.subr.mxu1 %v4324_v24 }
 0x553   :  { %4624 = vmatpush2.msra.mxu1 %v4323_v16 }
 0x554   :  { %4625 = vmatprep.subr.mxu1 %v4322_v22 }
 0x555   :  { %4626 = vmatpush2.msra.mxu1 %v4321_v31 }
 0x556   :  { %4627 = vmatprep.subr.mxu1 %v4320_v26 }
 0x557   :  { %4628 = vmatpush2.msra.mxu1 %v4319_v29 }
 0x558   :  { %4629 = vmatprep.subr.mxu1 %v4318_v33 }
 0x559   :  { %4630 = vmatpush2.msra.mxu1 %v4317_v6 }
 0x55a   :  { %4632 = vmatmul.mubr.f32.vlgmr.msra.gmra.mxu1 %v4153_v5 }
 0x59e   :  { %v4562_v37 = vpop.f32.mrf.mxu0 }
 0x5a0   :  { %v4564_v19 = vpop.f32.mrf.mxu0 }
 0x5da   :  { %v4491_v35 = vpop.f32.mrf.mxu1 }
 0x5db   :  { %v4492_v36 = vadd.f32 %v4491_v35, %v4418_v1 }
 0x5dc   :  { %v4493_v38 = vpop.f32.mrf.mxu1 }
 0x5dd   :  { %v4563_v12 = vadd.f32 %v4562_v37, %v4492_v36  ;;  %v4494_v30 = vadd.f32 %v4493_v38, %v4422_v47 }
 0x5de   :  { %v4704_v41 = vpop.f32.mrf.mxu0 }
 0x5df   :  { %v4565_v8 = vadd.f32 %v4564_v19, %v4494_v30 }
 0x5e0   :  { %v4706_v43 = vpop.f32.mrf.mxu0 }
 0x61a   :  { %v4633_v28 = vpop.f32.mrf.mxu1 }
 0x61b   :  { %v4634_v39 = vadd.f32 %v4633_v28, %v4563_v12 }
 0x61c   :  { %v4635_v54 = vpop.f32.mrf.mxu1 }
 0x61d   :  { %v4705_v42 = vadd.f32 %v4704_v41, %v4634_v39  ;;  %v4636_v40 = vadd.f32 %v4635_v54, %v4565_v8 }
 0x61f   :  { %v4710_v46 = vsel %vm4709_vm3, %v4705_v42, 0.0  ;;  %v4707_v48 = vadd.f32 %v4706_v43, %v4636_v40 }
 0x620   :  { %4711 = vadd.xlane.f32.xlu0 %v4710_v46 }
 0x636   :  { %4723 = vperm.xlu0 %5301, %v4707_v48  }
 0x6a9   :  { %v4712_v49 = vpop.xlane.xlu0 %4711 }
 0x6aa   :  { %v4713_v50 = vrot.slane %v4712_v49, 4 }
 0x6ac   :  { %v4714_v51 = vadd.f32 %v4713_v50, %v4712_v49 }
 0x6ae   :  { %v4715_v23 = vrot.slane %v4714_v51, 2 }
 0x6b0   :  { %v4716_v53 = vadd.f32 %v4715_v23, %v4714_v51 }
 0x6b1   :  { %v4724_v56 = vpop.permute.xlu0 %4723 }
 0x6b2   :  { %v4717_v55 = vrot.slane %v4716_v53, 1  ;;  %v4726_v15 = vadd.f32 %v4724_v56, %v4705_v42 }
 0x6b4   :  { %v4718_v9 = vadd.f32 %v4717_v55, %v4716_v53 }
 0x6b6   :  { %5295 = vpush %v4718_v9 }
 0x6e7   :  { %s5296_s9 = spop %5295 }
 0x6e8   :  { %s4720_s10 = smul.f32 0.083333336, %s5296_s9 }
 0x6ea   :  { %v4727_v44 = vstv %s4720_s10 }
 0x6eb   :  { %v4728_v13 = vsub.f32 %v4726_v15, %v4727_v44 }
 0x6ed   :  { %4729 = vst [vmem:[#allocation2] sm:$0x3] %v4728_v13 }
 0x6ee   :  { %5314 = shalt.err (!%p5311_p4)
}
 0x6ef   :  { %4739 = dma.vmem_to_hbm [thread:$0]  %s4737_s5, 32, %s8101_s11, [#allocation3]  }
 0x6f0   :  { %5323 = dma.done.wait [#allocation3], 32  }
 0x6f1   :  { %5324 = vsyncadd [#allocation3], 4294967264 }
 0x6f2   :  { %4743 = vsyncpa [#allocation3], 1 }

</bundles_post_ra>
